<compile_context>
chip_gen: v7x
topology: tpu7x:2x2x1
jax: 0.10.0
libtpu: 0.0.40
codegen_flags: <defaults>
</compile_context>

<pallas_src>
import functools

import jax
import jax.numpy as jnp
from jax import lax
from jax.experimental import pallas as pl
from jax.experimental.pallas import tpu as pltpu


def _round_up(x, m):
    return (x + m - 1) // m * m


# ---------------------------------------------------------------------------
# Pallas kernel 1: single-pass (M,K)x(K,N) matmul + bias + optional ReLU.
# Full-K / full-N blocks -> no K grid axis, no accumulator scratch.
# A and B are bf16 (A cast is a no-op when already bf16); accumulate and
# bias/ReLU epilogue in f32, final store in out dtype.
# ---------------------------------------------------------------------------
def _matmul_bias_kernel(a_ref, b_ref, bias_ref, o_ref, *, relu):
    a = a_ref[...].astype(jnp.bfloat16)
    out = jnp.dot(a, b_ref[...], preferred_element_type=jnp.float32)
    out = out + bias_ref[...]                      # (tm,N) + (1,N) broadcast
    if relu:
        out = jnp.maximum(out, 0.0)
    o_ref[...] = out.astype(o_ref.dtype)


def matmul_bias(a, b_bf16, bias_row, *, relu, out_dtype=jnp.bfloat16,
                m_blocks=1):
    """y = a @ b + bias (optionally ReLU'd) with a single-pass Pallas kernel.

    a: (M, K) bf16/f32, b_bf16: (K, N) bf16, bias_row: (1, N) f32.
    Only M is padded (to 16*m_blocks sublanes); K and N use full-extent
    blocks, which is legal even when they are not multiples of 128.
    """
    M, K = a.shape
    Kb, N = b_bf16.shape
    assert K == Kb and bias_row.shape == (1, N)

    tm = _round_up(-(-M // m_blocks), 16)          # bf16-safe sublane multiple
    Mp = tm * m_blocks
    a_p = jnp.pad(a, ((0, Mp - M), (0, 0))) if Mp != M else a

    out = pl.pallas_call(
        functools.partial(_matmul_bias_kernel, relu=relu),
        out_shape=jax.ShapeDtypeStruct((Mp, N), out_dtype),
        grid_spec=pltpu.PrefetchScalarGridSpec(
            num_scalar_prefetch=0,
            grid=(m_blocks,),
            in_specs=[
                pl.BlockSpec((tm, K), lambda i: (i, 0)),   # A tile
                pl.BlockSpec((K, N), lambda i: (0, 0)),    # full weight
                pl.BlockSpec((1, N), lambda i: (0, 0)),    # bias row
            ],
            out_specs=pl.BlockSpec((tm, N), lambda i: (i, 0)),
        ),
        compiler_params=pltpu.CompilerParams(
            dimension_semantics=("parallel",)),
    )(a_p, b_bf16, bias_row)
    return out[:M] if Mp != M else out


# ---------------------------------------------------------------------------
# Pallas kernel 2: fused MLP head  (linear1 + ReLU + linear3) in one call.
# Everything (x, w1, b1, w2, b2) fits in VMEM; single grid step.
# ---------------------------------------------------------------------------
def _mlp_head_kernel(x_ref, w1_ref, b1_ref, w2_ref, b2_ref, o_ref):
    x = x_ref[...].astype(jnp.bfloat16)
    h = jnp.dot(x, w1_ref[...], preferred_element_type=jnp.float32)
    h = jnp.maximum(h + b1_ref[...], 0.0)
    o = jnp.dot(h.astype(jnp.bfloat16), w2_ref[...],
                preferred_element_type=jnp.float32)
    o_ref[...] = o + b2_ref[...]


def mlp_head(x, w1_bf16, b1_row, w2_bf16, b2_row):
    M, K = x.shape
    _, H = w1_bf16.shape
    _, A = w2_bf16.shape
    Mp = _round_up(M, 16)
    x_p = jnp.pad(x, ((0, Mp - M), (0, 0))) if Mp != M else x

    out = pl.pallas_call(
        _mlp_head_kernel,
        out_shape=jax.ShapeDtypeStruct((Mp, A), jnp.float32),
        grid_spec=pltpu.PrefetchScalarGridSpec(
            num_scalar_prefetch=0,
            grid=(1,),
            in_specs=[
                pl.BlockSpec((Mp, K), lambda i: (0, 0)),
                pl.BlockSpec((K, H), lambda i: (0, 0)),
                pl.BlockSpec((1, H), lambda i: (0, 0)),
                pl.BlockSpec((H, A), lambda i: (0, 0)),
                pl.BlockSpec((1, A), lambda i: (0, 0)),
            ],
            out_specs=pl.BlockSpec((Mp, A), lambda i: (0, 0)),
        ),
        compiler_params=pltpu.CompilerParams(
            dimension_semantics=("arbitrary",)),
    )(x_p, w1_bf16, b1_row, w2_bf16, b2_row)
    return out[:M] if Mp != M else out


# ---------------------------------------------------------------------------
# Conv = fused patch extraction (one XLA op) + Pallas matmul
# ---------------------------------------------------------------------------
def conv2d_relu(x, w_mm, bias_row, *, ksize, stride, pad,
                in_layout="NHWC", m_blocks=1):
    """x: (B, ...) bf16 in `in_layout`; w_mm: (Cin*k*k, Cout) bf16 with rows in
    (c, kh, kw) order; output NHWC bf16."""
    B = x.shape[0]
    patches = lax.conv_general_dilated_patches(
        x, filter_shape=(ksize, ksize), window_strides=(stride, stride),
        padding=((pad, pad), (pad, pad)),
        dimension_numbers=(in_layout, "OIHW", "NHWC"))
    _, Ho, Wo, KK = patches.shape
    cols = patches.reshape(B * Ho * Wo, KK)
    y = matmul_bias(cols, w_mm, bias_row, relu=True,
                    out_dtype=jnp.bfloat16, m_blocks=m_blocks)
    return y.reshape(B, Ho, Wo, w_mm.shape[1])


# ---------------------------------------------------------------------------
# Parameters: PyTorch-layout synthesis + one-time conversion to kernel layout
# ---------------------------------------------------------------------------
def init_torch_params(key, input_channel, action_size):
    ks = jax.random.split(key, 5)

    def conv_w(k_, cout, cin, ksz):
        fan_in = cin * ksz * ksz
        return jax.random.normal(k_, (cout, cin, ksz, ksz),
                                 jnp.float32) * jnp.sqrt(2.0 / fan_in)

    def lin_w(k_, fout, fin):          # kaiming_normal_(nonlinearity='relu')
        return jax.random.normal(k_, (fout, fin),
                                 jnp.float32) * jnp.sqrt(2.0 / fin)

    return {
        "w1": conv_w(ks[0], 16, input_channel, 8), "b1": jnp.zeros((16,), jnp.float32),
        "w2": conv_w(ks[1], 32, 16, 5),            "b2": jnp.zeros((32,), jnp.float32),
        "w3": conv_w(ks[2], 64, 32, 3),            "b3": jnp.zeros((64,), jnp.float32),
        "wl1": lin_w(ks[3], 256, 64 * 9 * 9),      "bl1": jnp.zeros((256,), jnp.float32),
        "wl3": lin_w(ks[4], action_size, 256),     "bl3": jnp.zeros((action_size,), jnp.float32),
    }


def prepare_params(p):
    """One-time (off the hot path) conversion of PyTorch-layout weights:
    conv (Cout,Cin,k,k) -> (Cin*k*k, Cout) bf16 matching the patch feature
    order; wl1 rows permuted from CHW-flatten to HWC-flatten (removes the
    runtime flatten transpose); wl3 transposed; biases kept f32 as (1, N)."""
    def conv_w(w):
        cout, cin, k, _ = w.shape
        return jnp.transpose(w, (1, 2, 3, 0)).reshape(cin * k * k,
                                                      cout).astype(jnp.bfloat16)

    def bias(b):
        return b.reshape(1, -1).astype(jnp.float32)

    wl1_hwc = (p["wl1"].reshape(256, 64, 9, 9)
               .transpose(2, 3, 1, 0).reshape(64 * 9 * 9, 256))
    return {
        "w1": conv_w(p["w1"]), "b1": bias(p["b1"]),
        "w2": conv_w(p["w2"]), "b2": bias(p["b2"]),
        "w3": conv_w(p["w3"]), "b3": bias(p["b3"]),
        "wl1": wl1_hwc.astype(jnp.bfloat16), "bl1": bias(p["bl1"]),
        "wl3": p["wl3"].T.astype(jnp.bfloat16), "bl3": bias(p["bl3"]),
    }


# ---------------------------------------------------------------------------
# Forward pass (matches CnnNetwork4.forward, eval mode)
# ---------------------------------------------------------------------------
def cnn_network4_forward(params, x_nchw):
    # TODO(synk): training-mode dropout (p=0.1 / 0.03) not implemented (eval).
    # conv1 consumes NCHW directly; the NCHW->NHWC relayout is folded into the
    # patch extraction's dimension_numbers (no standalone transpose op).
    x = x_nchw.astype(jnp.bfloat16)
    x = conv2d_relu(x, params["w1"], params["b1"], ksize=8, stride=4,
                    pad=4, in_layout="NCHW", m_blocks=2)               # (B,25,25,16)
    x = conv2d_relu(x, params["w2"], params["b2"], ksize=5, stride=3, pad=2)  # (B,9,9,32)
    x = conv2d_relu(x, params["w3"], params["b3"], ksize=3, stride=1, pad=1)  # (B,9,9,64)
    # NHWC flatten; wl1 rows were permuted once at init, so this is a pure
    # reshape (no transpose) and matches PyTorch's NCHW-flatten semantics.
    x = x.reshape(x.shape[0], -1)                                             # (B, 5184)
    return mlp_head(x, params["wl1"], params["bl1"],
                    params["wl3"], params["bl3"])                             # (B, A)


# ---------------------------------------------------------------------------
# Pure-JAX reference (PyTorch-layout weights, NCHW, same bf16 rounding points)
# ---------------------------------------------------------------------------
def reference_forward(p, x_nchw):
    def conv_block(x, w, b, stride, pad):
        y = lax.conv_general_dilated(
            x, w.astype(jnp.bfloat16),
            window_strides=(stride, stride),
            padding=((pad, pad), (pad, pad)),
            dimension_numbers=("NCHW", "OIHW", "NCHW"),
            preferred_element_type=jnp.float32)
        y = jnp.maximum(y + b.reshape(1, -1, 1, 1), 0.0)
        return y.astype(jnp.bfloat16)

    x = conv_block(x_nchw.astype(jnp.bfloat16), p["w1"], p["b1"], 4, 4)
    x = conv_block(x, p["w2"], p["b2"], 3, 2)
    x = conv_block(x, p["w3"], p["b3"], 1, 1)
    x = x.reshape(x.shape[0], -1)                   # NCHW flatten (c, h, w)
    h = jnp.dot(x, p["wl1"].T.astype(jnp.bfloat16),
                preferred_element_type=jnp.float32) + p["bl1"]
    h = jnp.maximum(h, 0.0).astype(jnp.bfloat16)
    return jnp.dot(h, p["wl3"].T.astype(jnp.bfloat16),
                   preferred_element_type=jnp.float32) + p["bl3"]


if __name__ == "__main__":
    key = jax.random.PRNGKey(0)
    k_param, k_x = jax.random.split(key)

    input_channel = 4
    action_size = 5
    batch = 2
    # Spatial size is fixed to 96x96 by linear1's in_features = 64*9*9.
    x = jax.random.normal(k_x, (batch, input_channel, 96, 96), jnp.float32)

    torch_params = init_torch_params(k_param, input_channel, action_size)
    params = prepare_params(torch_params)
    params = jax.tree_util.tree_map(jax.block_until_ready, params)  # one-time prep

    fwd = jax.jit(cnn_network4_forward)
    out = jax.block_until_ready(fwd(params, x))

    ref = jax.block_until_ready(jax.jit(reference_forward)(torch_params, x))

    assert out.shape == (batch, action_size), out.shape
    assert bool(jnp.all(jnp.isfinite(out)))
    assert bool(jnp.allclose(out, ref, rtol=5e-2, atol=5e-2)), (
        float(jnp.max(jnp.abs(out - ref))))
    print("KERNEL_OK")
</pallas_src>

<mosaic_0001>
module attributes {stable_mosaic.version = 11 : i64} {
  func.func @_matmul_bias_kernel(%arg0: i32, %arg1: memref<640x256xbf16, #tpu.memory_space<vmem>>, %arg2: memref<256x16xbf16, #tpu.memory_space<vmem>>, %arg3: memref<1x16xf32, #tpu.memory_space<vmem>>, %arg4: memref<640x16xbf16, #tpu.memory_space<vmem>>) attributes {dimension_semantics = [#tpu.dimension_semantics<parallel>], iteration_bounds = array<i64: 2>, scalar_prefetch = 0 : i64, scratch_operands = 0 : i64, tpu.core_type = #tpu.core_type<tc>, window_params = [{transform_indices = @transform_0, window_bounds = array<i64: 640, 256>}, {pipeline_mode = #tpu.pipeline_mode<synchronous>, transform_indices = @transform_1, window_bounds = array<i64: 256, 16>}, {pipeline_mode = #tpu.pipeline_mode<synchronous>, transform_indices = @transform_2, window_bounds = array<i64: 1, 16>}, {transform_indices = @transform_3, window_bounds = array<i64: 640, 16>}]} {
    %c0 = arith.constant 0 : index
    %c0_0 = arith.constant 0 : index
    %0 = vector.load %arg1[%c0, %c0_0] : memref<640x256xbf16, #tpu.memory_space<vmem>>, vector<640x256xbf16>
    %c0_1 = arith.constant 0 : index
    %c0_2 = arith.constant 0 : index
    %1 = vector.load %arg2[%c0_1, %c0_2] : memref<256x16xbf16, #tpu.memory_space<vmem>>, vector<256x16xbf16>
    %cst = arith.constant dense<0.000000e+00> : vector<640x16xf32>
    %2 = tpu.matmul %0, %1, %cst {dimension_numbers = #tpu.dot_dimension_numbers<[1], [0], [0], [1], [0, 0, 1, 1], [], []>} : vector<640x256xbf16>, vector<256x16xbf16>, vector<640x16xf32> -> vector<640x16xf32>
    %c0_3 = arith.constant 0 : index
    %c0_4 = arith.constant 0 : index
    %3 = vector.load %arg3[%c0_3, %c0_4] : memref<1x16xf32, #tpu.memory_space<vmem>>, vector<1x16xf32>
    %4 = vector.broadcast %3 : vector<1x16xf32> to vector<640x16xf32>
    %5 = arith.addf %2, %4 : vector<640x16xf32>
    %cst_5 = arith.constant 0.000000e+00 : f32
    %6 = vector.broadcast %cst_5 : f32 to vector<640x16xf32>
    %7 = arith.maximumf %5, %6 : vector<640x16xf32>
    %8 = arith.truncf %7 : vector<640x16xf32> to vector<640x16xbf16>
    %c0_6 = arith.constant 0 : index
    %c0_7 = arith.constant 0 : index
    %9 = vector.load %arg4[%c0_6, %c0_7] : memref<640x16xbf16, #tpu.memory_space<vmem>>, vector<640x16xbf16>
    tpu.vector_store %arg4[%c0_6, %c0_7], %8 {strides = array<i32>} : memref<640x16xbf16, #tpu.memory_space<vmem>>, vector<640x16xbf16>,
    return
  }
  func.func @transform_0(%arg0: i32) -> (i32, i32) {
    %c0_i32 = arith.constant 0 : i32
    %c0_i32_0 = arith.constant 0 : i32
    return %arg0, %c0_i32 : i32, i32
  }
  func.func @transform_1(%arg0: i32) -> (i32, i32) {
    %c0_i32 = arith.constant 0 : i32
    %c0_i32_0 = arith.constant 0 : i32
    %c0_i32_1 = arith.constant 0 : i32
    return %c0_i32, %c0_i32_0 : i32, i32
  }
  func.func @transform_2(%arg0: i32) -> (i32, i32) {
    %c0_i32 = arith.constant 0 : i32
    %c0_i32_0 = arith.constant 0 : i32
    %c0_i32_1 = arith.constant 0 : i32
    return %c0_i32, %c0_i32_0 : i32, i32
  }
  func.func @transform_3(%arg0: i32) -> (i32, i32) {
    %c0_i32 = arith.constant 0 : i32
    %c0_i32_0 = arith.constant 0 : i32
    return %arg0, %c0_i32 : i32, i32
  }
}

module attributes {stable_mosaic.version = 11 : i64} {
  func.func @_matmul_bias_kernel(%arg0: i32, %arg1: memref<176x400xbf16, #tpu.memory_space<vmem>>, %arg2: memref<400x32xbf16, #tpu.memory_space<vmem>>, %arg3: memref<1x32xf32, #tpu.memory_space<vmem>>, %arg4: memref<176x32xbf16, #tpu.memory_space<vmem>>) attributes {dimension_semantics = [#tpu.dimension_semantics<parallel>], iteration_bounds = array<i64: 1>, scalar_prefetch = 0 : i64, scratch_operands = 0 : i64, tpu.core_type = #tpu.core_type<tc>, window_params = [{transform_indices = @transform_0, window_bounds = array<i64: 176, 400>}, {pipeline_mode = #tpu.pipeline_mode<synchronous>, transform_indices = @transform_1, window_bounds = array<i64: 400, 32>}, {pipeline_mode = #tpu.pipeline_mode<synchronous>, transform_indices = @transform_2, window_bounds = array<i64: 1, 32>}, {transform_indices = @transform_3, window_bounds = array<i64: 176, 32>}]} {
    %c0 = arith.constant 0 : index
    %c0_0 = arith.constant 0 : index
    %0 = vector.load %arg1[%c0, %c0_0] : memref<176x400xbf16, #tpu.memory_space<vmem>>, vector<176x400xbf16>
    %c0_1 = arith.constant 0 : index
    %c0_2 = arith.constant 0 : index
    %1 = vector.load %arg2[%c0_1, %c0_2] : memref<400x32xbf16, #tpu.memory_space<vmem>>, vector<400x32xbf16>
    %cst = arith.constant dense<0.000000e+00> : vector<176x32xf32>
    %2 = tpu.matmul %0, %1, %cst {dimension_numbers = #tpu.dot_dimension_numbers<[1], [0], [0], [1], [0, 0, 1, 1], [], []>} : vector<176x400xbf16>, vector<400x32xbf16>, vector<176x32xf32> -> vector<176x32xf32>
    %c0_3 = arith.constant 0 : index
    %c0_4 = arith.constant 0 : index
    %3 = vector.load %arg3[%c0_3, %c0_4] : memref<1x32xf32, #tpu.memory_space<vmem>>, vector<1x32xf32>
    %4 = vector.broadcast %3 : vector<1x32xf32> to vector<176x32xf32>
    %5 = arith.addf %2, %4 : vector<176x32xf32>
    %cst_5 = arith.constant 0.000000e+00 : f32
    %6 = vector.broadcast %cst_5 : f32 to vector<176x32xf32>
    %7 = arith.maximumf %5, %6 : vector<176x32xf32>
    %8 = arith.truncf %7 : vector<176x32xf32> to vector<176x32xbf16>
    %c0_6 = arith.constant 0 : index
    %c0_7 = arith.constant 0 : index
    %9 = vector.load %arg4[%c0_6, %c0_7] : memref<176x32xbf16, #tpu.memory_space<vmem>>, vector<176x32xbf16>
    tpu.vector_store %arg4[%c0_6, %c0_7], %8 {strides = array<i32>} : memref<176x32xbf16, #tpu.memory_space<vmem>>, vector<176x32xbf16>,
    return
  }
  func.func @transform_0(%arg0: i32) -> (i32, i32) {
    %c0_i32 = arith.constant 0 : i32
    %c0_i32_0 = arith.constant 0 : i32
    return %arg0, %c0_i32 : i32, i32
  }
  func.func @transform_1(%arg0: i32) -> (i32, i32) {
    %c0_i32 = arith.constant 0 : i32
    %c0_i32_0 = arith.constant 0 : i32
    %c0_i32_1 = arith.constant 0 : i32
    return %c0_i32, %c0_i32_0 : i32, i32
  }
  func.func @transform_2(%arg0: i32) -> (i32, i32) {
    %c0_i32 = arith.constant 0 : i32
    %c0_i32_0 = arith.constant 0 : i32
    %c0_i32_1 = arith.constant 0 : i32
    return %c0_i32, %c0_i32_0 : i32, i32
  }
  func.func @transform_3(%arg0: i32) -> (i32, i32) {
    %c0_i32 = arith.constant 0 : i32
    %c0_i32_0 = arith.constant 0 : i32
    return %arg0, %c0_i32 : i32, i32
  }
}

module attributes {stable_mosaic.version = 11 : i64} {
  func.func @_matmul_bias_kernel(%arg0: i32, %arg1: memref<176x288xbf16, #tpu.memory_space<vmem>>, %arg2: memref<288x64xbf16, #tpu.memory_space<vmem>>, %arg3: memref<1x64xf32, #tpu.memory_space<vmem>>, %arg4: memref<176x64xbf16, #tpu.memory_space<vmem>>) attributes {dimension_semantics = [#tpu.dimension_semantics<parallel>], iteration_bounds = array<i64: 1>, scalar_prefetch = 0 : i64, scratch_operands = 0 : i64, tpu.core_type = #tpu.core_type<tc>, window_params = [{transform_indices = @transform_0, window_bounds = array<i64: 176, 288>}, {pipeline_mode = #tpu.pipeline_mode<synchronous>, transform_indices = @transform_1, window_bounds = array<i64: 288, 64>}, {pipeline_mode = #tpu.pipeline_mode<synchronous>, transform_indices = @transform_2, window_bounds = array<i64: 1, 64>}, {transform_indices = @transform_3, window_bounds = array<i64: 176, 64>}]} {
    %c0 = arith.constant 0 : index
    %c0_0 = arith.constant 0 : index
    %0 = vector.load %arg1[%c0, %c0_0] : memref<176x288xbf16, #tpu.memory_space<vmem>>, vector<176x288xbf16>
    %c0_1 = arith.constant 0 : index
    %c0_2 = arith.constant 0 : index
    %1 = vector.load %arg2[%c0_1, %c0_2] : memref<288x64xbf16, #tpu.memory_space<vmem>>, vector<288x64xbf16>
    %cst = arith.constant dense<0.000000e+00> : vector<176x64xf32>
    %2 = tpu.matmul %0, %1, %cst {dimension_numbers = #tpu.dot_dimension_numbers<[1], [0], [0], [1], [0, 0, 1, 1], [], []>} : vector<176x288xbf16>, vector<288x64xbf16>, vector<176x64xf32> -> vector<176x64xf32>
    %c0_3 = arith.constant 0 : index
    %c0_4 = arith.constant 0 : index
    %3 = vector.load %arg3[%c0_3, %c0_4] : memref<1x64xf32, #tpu.memory_space<vmem>>, vector<1x64xf32>
    %4 = vector.broadcast %3 : vector<1x64xf32> to vector<176x64xf32>
    %5 = arith.addf %2, %4 : vector<176x64xf32>
    %cst_5 = arith.constant 0.000000e+00 : f32
    %6 = vector.broadcast %cst_5 : f32 to vector<176x64xf32>
    %7 = arith.maximumf %5, %6 : vector<176x64xf32>
    %8 = arith.truncf %7 : vector<176x64xf32> to vector<176x64xbf16>
    %c0_6 = arith.constant 0 : index
    %c0_7 = arith.constant 0 : index
    %9 = vector.load %arg4[%c0_6, %c0_7] : memref<176x64xbf16, #tpu.memory_space<vmem>>, vector<176x64xbf16>
    tpu.vector_store %arg4[%c0_6, %c0_7], %8 {strides = array<i32>} : memref<176x64xbf16, #tpu.memory_space<vmem>>, vector<176x64xbf16>,
    return
  }
  func.func @transform_0(%arg0: i32) -> (i32, i32) {
    %c0_i32 = arith.constant 0 : i32
    %c0_i32_0 = arith.constant 0 : i32
    return %arg0, %c0_i32 : i32, i32
  }
  func.func @transform_1(%arg0: i32) -> (i32, i32) {
    %c0_i32 = arith.constant 0 : i32
    %c0_i32_0 = arith.constant 0 : i32
    %c0_i32_1 = arith.constant 0 : i32
    return %c0_i32, %c0_i32_0 : i32, i32
  }
  func.func @transform_2(%arg0: i32) -> (i32, i32) {
    %c0_i32 = arith.constant 0 : i32
    %c0_i32_0 = arith.constant 0 : i32
    %c0_i32_1 = arith.constant 0 : i32
    return %c0_i32, %c0_i32_0 : i32, i32
  }
  func.func @transform_3(%arg0: i32) -> (i32, i32) {
    %c0_i32 = arith.constant 0 : i32
    %c0_i32_0 = arith.constant 0 : i32
    return %arg0, %c0_i32 : i32, i32
  }
}

module attributes {stable_mosaic.version = 11 : i64} {
  func.func @_mlp_head_kernel(%arg0: i32, %arg1: memref<16x5184xbf16, #tpu.memory_space<vmem>>, %arg2: memref<5184x256xbf16, #tpu.memory_space<vmem>>, %arg3: memref<1x256xf32, #tpu.memory_space<vmem>>, %arg4: memref<256x5xbf16, #tpu.memory_space<vmem>>, %arg5: memref<1x5xf32, #tpu.memory_space<vmem>>, %arg6: memref<16x5xf32, #tpu.memory_space<vmem>>) attributes {dimension_semantics = [#tpu.dimension_semantics<arbitrary>], iteration_bounds = array<i64: 1>, scalar_prefetch = 0 : i64, scratch_operands = 0 : i64, tpu.core_type = #tpu.core_type<tc>, window_params = [{pipeline_mode = #tpu.pipeline_mode<synchronous>, transform_indices = @transform_0, window_bounds = array<i64: 16, 5184>}, {pipeline_mode = #tpu.pipeline_mode<synchronous>, transform_indices = @transform_1, window_bounds = array<i64: 5184, 256>}, {pipeline_mode = #tpu.pipeline_mode<synchronous>, transform_indices = @transform_2, window_bounds = array<i64: 1, 256>}, {pipeline_mode = #tpu.pipeline_mode<synchronous>, transform_indices = @transform_3, window_bounds = array<i64: 256, 5>}, {pipeline_mode = #tpu.pipeline_mode<synchronous>, transform_indices = @transform_4, window_bounds = array<i64: 1, 5>}, {pipeline_mode = #tpu.pipeline_mode<synchronous>, transform_indices = @transform_5, window_bounds = array<i64: 16, 5>}]} {
    %c0 = arith.constant 0 : index
    %c0_0 = arith.constant 0 : index
    %0 = vector.load %arg1[%c0, %c0_0] : memref<16x5184xbf16, #tpu.memory_space<vmem>>, vector<16x5184xbf16>
    %c0_1 = arith.constant 0 : index
    %c0_2 = arith.constant 0 : index
    %1 = vector.load %arg2[%c0_1, %c0_2] : memref<5184x256xbf16, #tpu.memory_space<vmem>>, vector<5184x256xbf16>
    %cst = arith.constant dense<0.000000e+00> : vector<16x256xf32>
    %2 = tpu.matmul %0, %1, %cst {dimension_numbers = #tpu.dot_dimension_numbers<[1], [0], [0], [1], [0, 0, 1, 1], [], []>} : vector<16x5184xbf16>, vector<5184x256xbf16>, vector<16x256xf32> -> vector<16x256xf32>
    %c0_3 = arith.constant 0 : index
    %c0_4 = arith.constant 0 : index
    %3 = vector.load %arg3[%c0_3, %c0_4] : memref<1x256xf32, #tpu.memory_space<vmem>>, vector<1x256xf32>
    %4 = vector.broadcast %3 : vector<1x256xf32> to vector<16x256xf32>
    %5 = arith.addf %2, %4 : vector<16x256xf32>
    %cst_5 = arith.constant 0.000000e+00 : f32
    %6 = vector.broadcast %cst_5 : f32 to vector<16x256xf32>
    %7 = arith.maximumf %5, %6 : vector<16x256xf32>
    %8 = arith.truncf %7 : vector<16x256xf32> to vector<16x256xbf16>
    %c0_6 = arith.constant 0 : index
    %c0_7 = arith.constant 0 : index
    %9 = vector.load %arg4[%c0_6, %c0_7] : memref<256x5xbf16, #tpu.memory_space<vmem>>, vector<256x5xbf16>
    %cst_8 = arith.constant dense<0.000000e+00> : vector<16x5xf32>
    %10 = tpu.matmul %8, %9, %cst_8 {dimension_numbers = #tpu.dot_dimension_numbers<[1], [0], [0], [1], [0, 0, 1, 1], [], []>} : vector<16x256xbf16>, vector<256x5xbf16>, vector<16x5xf32> -> vector<16x5xf32>
    %c0_9 = arith.constant 0 : index
    %c0_10 = arith.constant 0 : index
    %11 = vector.load %arg5[%c0_9, %c0_10] : memref<1x5xf32, #tpu.memory_space<vmem>>, vector<1x5xf32>
    %12 = vector.broadcast %11 : vector<1x5xf32> to vector<16x5xf32>
    %13 = arith.addf %10, %12 : vector<16x5xf32>
    %c0_11 = arith.constant 0 : index
    %c0_12 = arith.constant 0 : index
    %14 = vector.load %arg6[%c0_11, %c0_12] : memref<16x5xf32, #tpu.memory_space<vmem>>, vector<16x5xf32>
    tpu.vector_store %arg6[%c0_11, %c0_12], %13 {strides = array<i32>} : memref<16x5xf32, #tpu.memory_space<vmem>>, vector<16x5xf32>,
    return
  }
  func.func @transform_0(%arg0: i32) -> (i32, i32) {
    %c0_i32 = arith.constant 0 : i32
    %c0_i32_0 = arith.constant 0 : i32
    %c0_i32_1 = arith.constant 0 : i32
    return %c0_i32, %c0_i32_0 : i32, i32
  }
  func.func @transform_1(%arg0: i32) -> (i32, i32) {
    %c0_i32 = arith.constant 0 : i32
    %c0_i32_0 = arith.constant 0 : i32
    %c0_i32_1 = arith.constant 0 : i32
    return %c0_i32, %c0_i32_0 : i32, i32
  }
  func.func @transform_2(%arg0: i32) -> (i32, i32) {
    %c0_i32 = arith.constant 0 : i32
    %c0_i32_0 = arith.constant 0 : i32
    %c0_i32_1 = arith.constant 0 : i32
    return %c0_i32, %c0_i32_0 : i32, i32
  }
  func.func @transform_3(%arg0: i32) -> (i32, i32) {
    %c0_i32 = arith.constant 0 : i32
    %c0_i32_0 = arith.constant 0 : i32
    %c0_i32_1 = arith.constant 0 : i32
    return %c0_i32, %c0_i32_0 : i32, i32
  }
  func.func @transform_4(%arg0: i32) -> (i32, i32) {
    %c0_i32 = arith.constant 0 : i32
    %c0_i32_0 = arith.constant 0 : i32
    %c0_i32_1 = arith.constant 0 : i32
    return %c0_i32, %c0_i32_0 : i32, i32
  }
  func.func @transform_5(%arg0: i32) -> (i32, i32) {
    %c0_i32 = arith.constant 0 : i32
    %c0_i32_0 = arith.constant 0 : i32
    %c0_i32_1 = arith.constant 0 : i32
    return %c0_i32, %c0_i32_0 : i32, i32
  }
}

</mosaic_0001>

<bundles_post_ra>
// kernel: cnn_network4_forward.4
= control target key start
LH: loop header
LB: loop body
LE: loop exit
PB: predicated region body
PF: predicated region fallthrough
CT: control target
= control target key end

     0   :  { %s2157_s12 = smov 0   ;;  %s2587_s0 = inlined_call_operand.vmem [shape: bf16[1280,256], index: 0, kind: input, shape index: {}]   ;;  %s2588_s1 = inlined_call_operand.vmem [shape: bf16[256,16], index: 1, kind: input, shape index: {}]   ;;  %s2589_s2 = inlined_call_operand.vmem [shape: f32[1,16], index: 2, kind: input, shape index: {}]   ;;  %s2590_s3 = inlined_call_operand.vmem [shape: bf16[1280,16], index: 3, kind: output, shape index: {}]  }
   0x1 LB: > { %s1683_s13 = sadd.s32 4294967295, %s2134_s12   ;;  %p1687_p0 = scmp.ge.s32.totalorder %s2134_s12, 1  ;;  %s2134_s12 = sphi %s2157_s12, %s13_s12  }
   0x2   : > { %p139_p1 = scmp.lt.s32.totalorder %s2134_s12, 3 }
   0x4   : > { %p140_p2 = pnand %p1687_p0, %p139_p1 }
   0x5   : > { %v1992_v0 = vld [vmem:[%s2588_s1] sm:$0xff] (!%p140_p2)   ;;  %v2136_v1 = vmov (!%p140_p2), 0   ;;  %s164_s16 = smul.u32 (!%p140_p2), 80, %s1683_s13  ;;  %v1993_v2 = vld [vmem:[%s2588_s1 + $0x8] sm:$0xff] (!%p140_p2)   ;;  %v1994_v3 = vld [vmem:[%s2588_s1 + $0x10] sm:$0xff] (!%p140_p2)   ;;  %vm1546_vm0 = vcmask (!%p140_p2), 125952  }
   0x6   : > { %143 = sbr.rel (%p140_p2) target bundleno = 443 (0x1bb), region = 32  ;;  %793 = vmatprep.subr.bf16.mxu0 (!%p140_p2), %v2136_v1  ;;  %1951 = vmatprep.subr.bf16.mxu1 (!%p140_p2), %v2136_v1  ;;  %v1995_v4 = vld [vmem:[%s2588_s1 + $0x18] sm:$0xff] (!%p140_p2)   ;;  %v1996_v5 = vld [vmem:[%s2588_s1 + $0x20] sm:$0xff] (!%p140_p2)   ;;  %v1997_v7 = vld [vmem:[%s2588_s1 + $0x28] sm:$0xff] (!%p140_p2)  }
   0x7   : > { %794 = vmatpush1.bf16.msra.mxu0 (!%p140_p2), %v1992_v0  ;;  %1967 = vmatpush1.bf16.msra.mxu1 (!%p140_p2), %v1992_v0  ;;  %p165_p3 = scmp.lt.s32.totalorder (!%p140_p2), %s164_s16, 159  ;;  %v1998_v9 = vld [vmem:[%s2588_s1 + $0x30] sm:$0xff] (!%p140_p2)   ;;  %v1999_v10 = vld [vmem:[%s2588_s1 + $0x38] sm:$0xff] (!%p140_p2)   ;;  %v2000_v11 = vld [vmem:[%s2588_s1 + $0x40] sm:$0xff] (!%p140_p2)  }
   0x8   : > { %795 = vmatprep.subr.bf16.mxu0 (!%p140_p2), %v2136_v1  ;;  %1952 = vmatprep.subr.bf16.mxu1 (!%p140_p2), %v2136_v1  ;;  %v2001_v12 = vld [vmem:[%s2588_s1 + $0x48] sm:$0xff] (!%p140_p2)   ;;  %v2002_v13 = vld [vmem:[%s2588_s1 + $0x50] sm:$0xff] (!%p140_p2)   ;;  %v2003_v14 = vld [vmem:[%s2588_s1 + $0x58] sm:$0xff] (!%p140_p2)  }
   0x9   : > { %v2004_v15 = vld [vmem:[%s2588_s1 + $0x60] sm:$0xff] (!%p140_p2)   ;;  %v2005_v16 = vld [vmem:[%s2588_s1 + $0x68] sm:$0xff] (!%p140_p2)   ;;  %v2006_v17 = vld [vmem:[%s2588_s1 + $0x70] sm:$0xff] (!%p140_p2)  }
   0xa   : > { %v2007_v18 = vld [vmem:[%s2588_s1 + $0x78] sm:$0xff] (!%p140_p2)  }
   0xb   : > { %796 = vmatpush1.bf16.msra.mxu0 (!%p140_p2), %v1993_v2  ;;  %1968 = vmatpush1.bf16.msra.mxu1 (!%p140_p2), %v1993_v2 }
   0xc   : > { %797 = vmatprep.subr.bf16.mxu0 (!%p140_p2), %v2136_v1  ;;  %1953 = vmatprep.subr.bf16.mxu1 (!%p140_p2), %v2136_v1 }
   0xd   : > { %s2592_s16 = smov (!%p165_p3, %s164_s16), 159 }
   0xe   : > { %s1870_s23 = sshll.u32 %s2592_s16, 3  ;;  %s1690_s29 = sshll.u32 %s2592_s16, 2 }
   0xf   : > { %798 = vmatpush1.bf16.msra.mxu0 %v1994_v3  ;;  %1969 = vmatpush1.bf16.msra.mxu1 %v1994_v3  ;;  %s2194_s28 = scalar_lea.vmem %s2587_s0, %s1870_s23  ;;  %s2346_s16 = scalar_lea.vmem %s2590_s3, %s1690_s29 }
  0x10   : > { %799 = vmatprep.subr.bf16.mxu0 %v2136_v1  ;;  %1954 = vmatprep.subr.bf16.mxu1 %v2136_v1  ;;  %v2010_v6 = vld [vmem:[%s2194_s28 + $0x4] ss:$8 sps:$4 sm:$0xff]   ;;  %v2008_v19 = vld [vmem:[%s2194_s28] ss:$8 sps:$4 sm:$0xff]   ;;  %v2014_v21 = vld [vmem:[%s2194_s28 + $0x14] ss:$8 sps:$4 sm:$0xff]  }
  0x11   : > { %v2013_v8 = vld [vmem:[%s2194_s28 + $0x144] ss:$8 sps:$4 sm:$0xff]   ;;  %825 = vmatprep.mubr.bf16.mxu0 %v2010_v6  ;;  %v2011_v20 = vld [vmem:[%s2194_s28 + $0x140] ss:$8 sps:$4 sm:$0xff]   ;;  %v2016_v22 = vld [vmem:[%s2194_s28 + $0x154] ss:$8 sps:$4 sm:$0xff]  }
  0x12   : > { %985 = vmatprep.mubr.bf16.mxu1 %v2013_v8  ;;  %v2018_v23 = vld [vmem:[%s2194_s28 + $0x10] ss:$8 sps:$4 sm:$0xff]   ;;  %v2020_v25 = vld [vmem:[%s2194_s28 + $0x24] ss:$8 sps:$4 sm:$0xff]   ;;  %v2024_v27 = vld [vmem:[%s2194_s28 + $0x20] ss:$8 sps:$4 sm:$0xff]  }
  0x13   : > { %800 = vmatpush1.bf16.msra.mxu0 %v1995_v4  ;;  %1970 = vmatpush1.bf16.msra.mxu1 %v1995_v4  ;;  %v2019_v24 = vld [vmem:[%s2194_s28 + $0x150] ss:$8 sps:$4 sm:$0xff]   ;;  %v2022_v26 = vld [vmem:[%s2194_s28 + $0x164] ss:$8 sps:$4 sm:$0xff]   ;;  %v2025_v28 = vld [vmem:[%s2194_s28 + $0x160] ss:$8 sps:$4 sm:$0xff]  }
  0x14   : > { %801 = vmatprep.subr.bf16.mxu0 %v2136_v1  ;;  %1955 = vmatprep.subr.bf16.mxu1 %v2136_v1  ;;  %v2026_v29 = vld [vmem:[%s2194_s28 + $0x34] ss:$8 sps:$4 sm:$0xff]   ;;  %v2030_v31 = vld [vmem:[%s2194_s28 + $0x30] ss:$8 sps:$4 sm:$0xff]   ;;  %v2032_v33 = vld [vmem:[%s2194_s28 + $0x44] ss:$8 sps:$4 sm:$0xff]  }
  0x15   : > { %v2028_v30 = vld [vmem:[%s2194_s28 + $0x174] ss:$8 sps:$4 sm:$0xff]   ;;  %v2031_v32 = vld [vmem:[%s2194_s28 + $0x170] ss:$8 sps:$4 sm:$0xff]   ;;  %v2034_v34 = vld [vmem:[%s2194_s28 + $0x184] ss:$8 sps:$4 sm:$0xff]  }
  0x16   : > { %v2036_v35 = vld [vmem:[%s2194_s28 + $0x40] ss:$8 sps:$4 sm:$0xff]   ;;  %v2038_v37 = vld [vmem:[%s2194_s28 + $0x54] ss:$8 sps:$4 sm:$0xff]   ;;  %v2042_v39 = vld [vmem:[%s2194_s28 + $0x50] ss:$8 sps:$4 sm:$0xff]  }
  0x17   : > { %802 = vmatpush1.bf16.msra.mxu0 %v1996_v5  ;;  %1971 = vmatpush1.bf16.msra.mxu1 %v1996_v5  ;;  %v2037_v36 = vld [vmem:[%s2194_s28 + $0x180] ss:$8 sps:$4 sm:$0xff]   ;;  %v2040_v38 = vld [vmem:[%s2194_s28 + $0x194] ss:$8 sps:$4 sm:$0xff]   ;;  %v2043_v40 = vld [vmem:[%s2194_s28 + $0x190] ss:$8 sps:$4 sm:$0xff]  }
  0x18   : > { %803 = vmatprep.subr.bf16.mxu0 %v2136_v1  ;;  %1956 = vmatprep.subr.bf16.mxu1 %v2136_v1  ;;  %v2044_v41 = vld [vmem:[%s2194_s28 + $0x64] ss:$8 sps:$4 sm:$0xff]   ;;  %v2048_v43 = vld [vmem:[%s2194_s28 + $0x60] ss:$8 sps:$4 sm:$0xff]   ;;  %v2050_v45 = vld [vmem:[%s2194_s28 + $0x74] ss:$8 sps:$4 sm:$0xff]  }
  0x19   : > { %v2046_v42 = vld [vmem:[%s2194_s28 + $0x1a4] ss:$8 sps:$4 sm:$0xff]   ;;  %v2049_v44 = vld [vmem:[%s2194_s28 + $0x1a0] ss:$8 sps:$4 sm:$0xff]   ;;  %v2052_v46 = vld [vmem:[%s2194_s28 + $0x1b4] ss:$8 sps:$4 sm:$0xff]  }
  0x1a   : > { %v2054_v47 = vld [vmem:[%s2194_s28 + $0x70] ss:$8 sps:$4 sm:$0xff]   ;;  %v2056_v49 = vld [vmem:[%s2194_s28 + $0x84] ss:$8 sps:$4 sm:$0xff]   ;;  %v2060_v51 = vld [vmem:[%s2194_s28 + $0x80] ss:$8 sps:$4 sm:$0xff]  }
  0x1b   : > { %804 = vmatpush1.bf16.msra.mxu0 %v1997_v7  ;;  %1972 = vmatpush1.bf16.msra.mxu1 %v1997_v7  ;;  %v2055_v48 = vld [vmem:[%s2194_s28 + $0x1b0] ss:$8 sps:$4 sm:$0xff]   ;;  %v2058_v50 = vld [vmem:[%s2194_s28 + $0x1c4] ss:$8 sps:$4 sm:$0xff]   ;;  %v2061_v52 = vld [vmem:[%s2194_s28 + $0x1c0] ss:$8 sps:$4 sm:$0xff]  }
  0x1c   : > { %805 = vmatprep.subr.bf16.mxu0 %v2136_v1  ;;  %1957 = vmatprep.subr.bf16.mxu1 %v2136_v1  ;;  %v2062_v53 = vld [vmem:[%s2194_s28 + $0x94] ss:$8 sps:$4 sm:$0xff]   ;;  %v2066_v55 = vld [vmem:[%s2194_s28 + $0x90] ss:$8 sps:$4 sm:$0xff]   ;;  %v2068_v57 = vld [vmem:[%s2194_s28 + $0xa4] ss:$8 sps:$4 sm:$0xff]  }
  0x1d   : > { %v2064_v54 = vld [vmem:[%s2194_s28 + $0x1d4] ss:$8 sps:$4 sm:$0xff]   ;;  %v2067_v56 = vld [vmem:[%s2194_s28 + $0x1d0] ss:$8 sps:$4 sm:$0xff]   ;;  %v2070_v58 = vld [vmem:[%s2194_s28 + $0x1e4] ss:$8 sps:$4 sm:$0xff]  }
  0x1e   : > { %v2072_v59 = vld [vmem:[%s2194_s28 + $0xa0] ss:$8 sps:$4 sm:$0xff]   ;;  %v2074_v61 = vld [vmem:[%s2194_s28 + $0xb4] ss:$8 sps:$4 sm:$0xff]   ;;  %v2078_v63 = vld [vmem:[%s2194_s28 + $0xb0] ss:$8 sps:$4 sm:$0xff]  }
  0x1f   : > { %806 = vmatpush1.bf16.msra.mxu0 %v1998_v9  ;;  %1973 = vmatpush1.bf16.msra.mxu1 %v1998_v9  ;;  %v2073_v60 = vld [vmem:[%s2194_s28 + $0x1e0] ss:$8 sps:$4 sm:$0xff]   ;;  %v2076_v62 = vld [vmem:[%s2194_s28 + $0x1f4] ss:$8 sps:$4 sm:$0xff]   ;;  %v2079_v0 = vld [vmem:[%s2194_s28 + $0x1f0] ss:$8 sps:$4 sm:$0xff]  }
  0x20   : > { %807 = vmatprep.subr.bf16.mxu0 %v2136_v1  ;;  %1958 = vmatprep.subr.bf16.mxu1 %v2136_v1  ;;  %v2082_v2 = vld [vmem:[%s2194_s28 + $0x204] ss:$8 sps:$4 sm:$0xff]   ;;  %v2084_v3 = vld [vmem:[%s2194_s28 + $0xc0] ss:$8 sps:$4 sm:$0xff]   ;;  %v2086_v5 = vld [vmem:[%s2194_s28 + $0xd4] ss:$8 sps:$4 sm:$0xff]  }
  0x21   : > { %v2085_v4 = vld [vmem:[%s2194_s28 + $0x200] ss:$8 sps:$4 sm:$0xff]   ;;  %v2088_v6 = vld [vmem:[%s2194_s28 + $0x214] ss:$8 sps:$4 sm:$0xff]   ;;  %v2090_v7 = vld [vmem:[%s2194_s28 + $0xd0] ss:$8 sps:$4 sm:$0xff]  }
  0x22   : > { %v2091_v8 = vld [vmem:[%s2194_s28 + $0x210] ss:$8 sps:$4 sm:$0xff]   ;;  %v2092_v9 = vld [vmem:[%s2194_s28 + $0xe4] ss:$8 sps:$4 sm:$0xff]  }
  0x23   : > { %808 = vmatpush1.bf16.msra.mxu0 %v1999_v10  ;;  %1974 = vmatpush1.bf16.msra.mxu1 %v1999_v10  ;;  %v2094_v10 = vld [vmem:[%s2194_s28 + $0x224] ss:$8 sps:$4 sm:$0xff]  }
  0x24   : > { %809 = vmatprep.subr.bf16.mxu0 %v2136_v1  ;;  %1959 = vmatprep.subr.bf16.mxu1 %v2136_v1 }
  0x27   : > { %810 = vmatpush1.bf16.msra.mxu0 %v2000_v11  ;;  %1975 = vmatpush1.bf16.msra.mxu1 %v2000_v11  ;;  %v2096_v11 = vld [vmem:[%s2194_s28 + $0xe0] ss:$8 sps:$4 sm:$0xff]  }
  0x28   : > { %811 = vmatprep.subr.bf16.mxu0 %v2136_v1  ;;  %1960 = vmatprep.subr.bf16.mxu1 %v2136_v1 }
  0x2b   : > { %812 = vmatpush1.bf16.msra.mxu0 %v2001_v12  ;;  %1976 = vmatpush1.bf16.msra.mxu1 %v2001_v12  ;;  %v2097_v12 = vld [vmem:[%s2194_s28 + $0x220] ss:$8 sps:$4 sm:$0xff]  }
  0x2c   : > { %813 = vmatprep.subr.bf16.mxu0 %v2136_v1  ;;  %1961 = vmatprep.subr.bf16.mxu1 %v2136_v1 }
  0x2f   : > { %814 = vmatpush1.bf16.msra.mxu0 %v2002_v13  ;;  %1977 = vmatpush1.bf16.msra.mxu1 %v2002_v13  ;;  %v2098_v13 = vld [vmem:[%s2194_s28 + $0xf4] ss:$8 sps:$4 sm:$0xff]  }
  0x30   : > { %815 = vmatprep.subr.bf16.mxu0 %v2136_v1  ;;  %1962 = vmatprep.subr.bf16.mxu1 %v2136_v1 }
  0x33   : > { %816 = vmatpush1.bf16.msra.mxu0 %v2003_v14  ;;  %1978 = vmatpush1.bf16.msra.mxu1 %v2003_v14  ;;  %v2100_v14 = vld [vmem:[%s2194_s28 + $0x234] ss:$8 sps:$4 sm:$0xff]  }
  0x34   : > { %817 = vmatprep.subr.bf16.mxu0 %v2136_v1  ;;  %1963 = vmatprep.subr.bf16.mxu1 %v2136_v1 }
  0x37   : > { %818 = vmatpush1.bf16.msra.mxu0 %v2004_v15  ;;  %1979 = vmatpush1.bf16.msra.mxu1 %v2004_v15  ;;  %v2102_v15 = vld [vmem:[%s2194_s28 + $0xf0] ss:$8 sps:$4 sm:$0xff]  }
  0x38   : > { %819 = vmatprep.subr.bf16.mxu0 %v2136_v1  ;;  %1964 = vmatprep.subr.bf16.mxu1 %v2136_v1 }
  0x3b   : > { %820 = vmatpush1.bf16.msra.mxu0 %v2005_v16  ;;  %1980 = vmatpush1.bf16.msra.mxu1 %v2005_v16  ;;  %v2103_v16 = vld [vmem:[%s2194_s28 + $0x230] ss:$8 sps:$4 sm:$0xff]  }
  0x3c   : > { %821 = vmatprep.subr.bf16.mxu0 %v2136_v1  ;;  %1965 = vmatprep.subr.bf16.mxu1 %v2136_v1 }
  0x3f   : > { %822 = vmatpush1.bf16.msra.mxu0 %v2006_v17  ;;  %1981 = vmatpush1.bf16.msra.mxu1 %v2006_v17  ;;  %v2104_v17 = vld [vmem:[%s2194_s28 + $0x104] ss:$8 sps:$4 sm:$0xff]  }
  0x40   : > { %823 = vmatprep.subr.bf16.mxu0 %v2136_v1  ;;  %1966 = vmatprep.subr.bf16.mxu1 %v2136_v1  ;;  %v2080_v1 = vld [vmem:[%s2194_s28 + $0xc4] ss:$8 sps:$4 sm:$0xff]  }
  0x43   : > { %824 = vmatpush1.bf16.msra.mxu0 %v2007_v18  ;;  %1982 = vmatpush1.bf16.msra.mxu1 %v2007_v18  ;;  %v2106_v18 = vld [vmem:[%s2194_s28 + $0x244] ss:$8 sps:$4 sm:$0xff]  }
  0x46   : > { %826 = vmatmul.mubr.bf16.vlgmr.msra.gmra.mrb[0].mxu0 %v2008_v19  ;;  %986 = vmatmul.mubr.bf16.vlgmr.msra.gmra.mrb[0].mxu1 %v2011_v20  ;;  %v2108_v19 = vld [vmem:[%s2194_s28 + $0x100] ss:$8 sps:$4 sm:$0xff]  }
  0x47   : > { %833 = vmatprep.mubr.bf16.mxu0 %v2014_v21  ;;  %993 = vmatprep.mubr.bf16.mxu1 %v2016_v22  ;;  %v2109_v20 = vld [vmem:[%s2194_s28 + $0x240] ss:$8 sps:$4 sm:$0xff]   ;;  %v2110_v21 = vld [vmem:[%s2194_s28 + $0x114] ss:$8 sps:$4 sm:$0xff]  }
  0x48   : > { %v2112_v22 = vld [vmem:[%s2194_s28 + $0x254] ss:$8 sps:$4 sm:$0xff]  }
  0x4e   : > { %834 = vmatmul.mubr.bf16.gmra.mrb[4].mxu0 %v2018_v23  ;;  %994 = vmatmul.mubr.bf16.gmra.mrb[4].mxu1 %v2019_v24  ;;  %v2114_v23 = vld [vmem:[%s2194_s28 + $0x110] ss:$8 sps:$4 sm:$0xff]  }
  0x4f   : > { %841 = vmatprep.mubr.bf16.mxu0 %v2020_v25  ;;  %1001 = vmatprep.mubr.bf16.mxu1 %v2022_v26  ;;  %v2115_v24 = vld [vmem:[%s2194_s28 + $0x250] ss:$8 sps:$4 sm:$0xff]   ;;  %v2116_v25 = vld [vmem:[%s2194_s28 + $0x124] ss:$8 sps:$4 sm:$0xff]  }
  0x50   : > { %v2118_v26 = vld [vmem:[%s2194_s28 + $0x264] ss:$8 sps:$4 sm:$0xff]  }
  0x56   : > { %842 = vmatmul.mubr.bf16.gmra.mrb[8].mxu0 %v2024_v27  ;;  %1002 = vmatmul.mubr.bf16.gmra.mrb[8].mxu1 %v2025_v28  ;;  %v2120_v27 = vld [vmem:[%s2194_s28 + $0x120] ss:$8 sps:$4 sm:$0xff]  }
  0x57   : > { %849 = vmatprep.mubr.bf16.mxu0 %v2026_v29  ;;  %1009 = vmatprep.mubr.bf16.mxu1 %v2028_v30  ;;  %v2121_v28 = vld [vmem:[%s2194_s28 + $0x260] ss:$8 sps:$4 sm:$0xff]   ;;  %v2122_v29 = vld [vmem:[%s2194_s28 + $0x134] ss:$8 sps:$4 sm:$0xff]  }
  0x58   : > { %v2124_v30 = vld [vmem:[%s2194_s28 + $0x274] ss:$8 sps:$4 sm:$0xff]  }
  0x5e   : > { %850 = vmatmul.mubr.bf16.gmra.mrb[12].mxu0 %v2030_v31  ;;  %1010 = vmatmul.mubr.bf16.gmra.mrb[12].mxu1 %v2031_v32  ;;  %v2126_v31 = vld [vmem:[%s2194_s28 + $0x130] ss:$8 sps:$4 sm:$0xff]  }
  0x5f   : > { %857 = vmatprep.mubr.bf16.mxu0 %v2032_v33  ;;  %1017 = vmatprep.mubr.bf16.mxu1 %v2034_v34  ;;  %v2127_v32 = vld [vmem:[%s2194_s28 + $0x270] ss:$8 sps:$4 sm:$0xff]   ;;  %v2336_v33 = vld [vmem:[%s2589_s2] ss:$0 sm:$0xff] }
  0x66   : > { %858 = vmatmul.mubr.bf16.gmra.mrb[16].mxu0 %v2036_v35  ;;  %1018 = vmatmul.mubr.bf16.gmra.mrb[16].mxu1 %v2037_v36 }
  0x67   : > { %865 = vmatprep.mubr.bf16.mxu0 %v2038_v37  ;;  %1025 = vmatprep.mubr.bf16.mxu1 %v2040_v38 }
  0x6e   : > { %866 = vmatmul.mubr.bf16.gmra.mrb[20].mxu0 %v2042_v39  ;;  %1026 = vmatmul.mubr.bf16.gmra.mrb[20].mxu1 %v2043_v40 }
  0x6f   : > { %873 = vmatprep.mubr.bf16.mxu0 %v2044_v41  ;;  %1033 = vmatprep.mubr.bf16.mxu1 %v2046_v42 }
  0x76   : > { %874 = vmatmul.mubr.bf16.gmra.mrb[24].mxu0 %v2048_v43  ;;  %1034 = vmatmul.mubr.bf16.gmra.mrb[24].mxu1 %v2049_v44 }
  0x77   : > { %881 = vmatprep.mubr.bf16.mxu0 %v2050_v45  ;;  %1041 = vmatprep.mubr.bf16.mxu1 %v2052_v46 }
  0x7e   : > { %882 = vmatmul.mubr.bf16.gmra.mrb[28].mxu0 %v2054_v47  ;;  %1042 = vmatmul.mubr.bf16.gmra.mrb[28].mxu1 %v2055_v48 }
  0x7f   : > { %889 = vmatprep.mubr.bf16.mxu0 %v2056_v49  ;;  %1049 = vmatprep.mubr.bf16.mxu1 %v2058_v50 }
  0x86   : > { %890 = vmatmul.mubr.bf16.gmra.mrb[32].mxu0 %v2060_v51  ;;  %1050 = vmatmul.mubr.bf16.gmra.mrb[32].mxu1 %v2061_v52 }
  0x87   : > { %897 = vmatprep.mubr.bf16.mxu0 %v2062_v53  ;;  %1057 = vmatprep.mubr.bf16.mxu1 %v2064_v54 }
  0x8e   : > { %898 = vmatmul.mubr.bf16.gmra.mrb[36].mxu0 %v2066_v55  ;;  %1058 = vmatmul.mubr.bf16.gmra.mrb[36].mxu1 %v2067_v56 }
  0x8f   : > { %905 = vmatprep.mubr.bf16.mxu0 %v2068_v57  ;;  %1065 = vmatprep.mubr.bf16.mxu1 %v2070_v58 }
  0x96   : > { %906 = vmatmul.mubr.bf16.gmra.mrb[40].mxu0 %v2072_v59  ;;  %1066 = vmatmul.mubr.bf16.gmra.mrb[40].mxu1 %v2073_v60 }
  0x97   : > { %913 = vmatprep.mubr.bf16.mxu0 %v2074_v61  ;;  %1073 = vmatprep.mubr.bf16.mxu1 %v2076_v62 }
  0x9e   : > { %914 = vmatmul.mubr.bf16.gmra.mrb[44].mxu0 %v2078_v63  ;;  %1074 = vmatmul.mubr.bf16.gmra.mrb[44].mxu1 %v2079_v0 }
  0x9f   : > { %921 = vmatprep.mubr.bf16.mxu0 %v2080_v1  ;;  %1081 = vmatprep.mubr.bf16.mxu1 %v2082_v2 }
  0xa6   : > { %922 = vmatmul.mubr.bf16.gmra.mrb[48].mxu0 %v2084_v3  ;;  %1082 = vmatmul.mubr.bf16.gmra.mrb[48].mxu1 %v2085_v4 }
  0xa7   : > { %929 = vmatprep.mubr.bf16.mxu0 %v2086_v5  ;;  %1089 = vmatprep.mubr.bf16.mxu1 %v2088_v6 }
  0xae   : > { %930 = vmatmul.mubr.bf16.gmra.mrb[52].mxu0 %v2090_v7  ;;  %1090 = vmatmul.mubr.bf16.gmra.mrb[52].mxu1 %v2091_v8 }
  0xaf   : > { %937 = vmatprep.mubr.bf16.mxu0 %v2092_v9  ;;  %1097 = vmatprep.mubr.bf16.mxu1 %v2094_v10 }
  0xb6   : > { %938 = vmatmul.mubr.bf16.gmra.mrb[56].mxu0 %v2096_v11  ;;  %1098 = vmatmul.mubr.bf16.gmra.mrb[56].mxu1 %v2097_v12 }
  0xb7   : > { %945 = vmatprep.mubr.bf16.mxu0 %v2098_v13  ;;  %1105 = vmatprep.mubr.bf16.mxu1 %v2100_v14 }
  0xbe   : > { %946 = vmatmul.mubr.bf16.gmra.mrb[60].mxu0 %v2102_v15  ;;  %1106 = vmatmul.mubr.bf16.gmra.mrb[60].mxu1 %v2103_v16 }
  0xbf   : > { %953 = vmatprep.mubr.bf16.mxu0 %v2104_v17  ;;  %1113 = vmatprep.mubr.bf16.mxu1 %v2106_v18 }
  0xc6   : > { %954 = vmatmul.mubr.bf16.gmra.mrb[64].mxu0 %v2108_v19  ;;  %1114 = vmatmul.mubr.bf16.gmra.mrb[64].mxu1 %v2109_v20 }
  0xc7   : > { %961 = vmatprep.mubr.bf16.mxu0 %v2110_v21  ;;  %1121 = vmatprep.mubr.bf16.mxu1 %v2112_v22 }
  0xce   : > { %962 = vmatmul.mubr.bf16.gmra.mrb[68].mxu0 %v2114_v23  ;;  %1122 = vmatmul.mubr.bf16.gmra.mrb[68].mxu1 %v2115_v24 }
  0xcf   : > { %969 = vmatprep.mubr.bf16.mxu0 %v2116_v25  ;;  %1129 = vmatprep.mubr.bf16.mxu1 %v2118_v26 }
  0xd6   : > { %970 = vmatmul.mubr.bf16.gmra.mrb[72].mxu0 %v2120_v27  ;;  %1130 = vmatmul.mubr.bf16.gmra.mrb[72].mxu1 %v2121_v28 }
  0xd7   : > { %977 = vmatprep.mubr.bf16.mxu0 %v2122_v29  ;;  %1137 = vmatprep.mubr.bf16.mxu1 %v2124_v30 }
  0xde   : > { %978 = vmatmul.mubr.bf16.gmra.mrb[76].mxu0 %v2126_v31  ;;  %1138 = vmatmul.mubr.bf16.gmra.mrb[76].mxu1 %v2127_v32 }
 0x119   : > { %v827_v34 = vpop.f32.mrb[0].mxu0  ;;  %v987_v35 = vpop.f32.mrb[0].mxu1 }
 0x11a   : > { %v828_v36 = vadd.f32 %v2336_v33, %v827_v34  ;;  %v988_v37 = vadd.f32 %v2336_v33, %v987_v35  ;;  %v829_v38 = vpop.f32.mrb[1].mxu0  ;;  %v989_v39 = vpop.f32.mrb[1].mxu1 }
 0x11b   : > { %v830_v40 = vpop.f32.mrb[2].mxu0  ;;  %v990_v41 = vpop.f32.mrb[2].mxu1 }
 0x11c   : > { %v1146_v42 = vmax.f32 %v828_v36, 0.0  ;;  %v1186_v43 = vmax.f32 %v988_v37, 0.0  ;;  %v831_v44 = vadd.f32 %v2336_v33, %v830_v40  ;;  %v991_v45 = vadd.f32 %v2336_v33, %v990_v41  ;;  %v832_v46 = vpop.f32.mrb[3].mxu0  ;;  %v992_v47 = vpop.f32.mrb[3].mxu1 }
 0x11e   : > { %v1871_v48 = vpack.c.bf16 %v1146_v42, %v1146_v42  ;;  %v1911_v49 = vpack.c.bf16 %v1186_v43, %v1186_v43  ;;  %v1147_v50 = vmax.f32 %v831_v44, 0.0  ;;  %v1187_v51 = vmax.f32 %v991_v45, 0.0 }
 0x120   : > { %1547 = vst.msk [vmem:[%s2346_s16] sm:$0xf] %vm1546_vm0, %v1871_v48  ;;  %1587 = vst.msk [vmem:[%s2346_s16 + $0xa0] sm:$0xf] %vm1546_vm0, %v1911_v49  ;;  %v1872_v52 = vpack.c.bf16 %v1147_v50, %v1147_v50  ;;  %v1912_v53 = vpack.c.bf16 %v1187_v51, %v1187_v51 }
 0x121   : > { %v835_v54 = vpop.f32.mrb[4].mxu0  ;;  %v995_v55 = vpop.f32.mrb[4].mxu1 }
 0x122   : > { %1548 = vst.msk [vmem:[%s2346_s16 + $0x4] sm:$0xf] %vm1546_vm0, %v1872_v52  ;;  %1588 = vst.msk [vmem:[%s2346_s16 + $0xa4] sm:$0xf] %vm1546_vm0, %v1912_v53  ;;  %v836_v56 = vadd.f32 %v2336_v33, %v835_v54  ;;  %v996_v57 = vadd.f32 %v2336_v33, %v995_v55  ;;  %v837_v58 = vpop.f32.mrb[5].mxu0  ;;  %v997_v59 = vpop.f32.mrb[5].mxu1 }
 0x123   : > { %v838_v60 = vpop.f32.mrb[6].mxu0  ;;  %v998_v61 = vpop.f32.mrb[6].mxu1 }
 0x124   : > { %v1148_v62 = vmax.f32 %v836_v56, 0.0  ;;  %v1188_v63 = vmax.f32 %v996_v57, 0.0  ;;  %v839_v0 = vadd.f32 %v2336_v33, %v838_v60  ;;  %v999_v1 = vadd.f32 %v2336_v33, %v998_v61  ;;  %v840_v2 = vpop.f32.mrb[7].mxu0  ;;  %v1000_v3 = vpop.f32.mrb[7].mxu1 }
 0x126   : > { %v1873_v4 = vpack.c.bf16 %v1148_v62, %v1148_v62  ;;  %v1913_v5 = vpack.c.bf16 %v1188_v63, %v1188_v63  ;;  %v1149_v6 = vmax.f32 %v839_v0, 0.0  ;;  %v1189_v7 = vmax.f32 %v999_v1, 0.0 }
 0x128   : > { %1549 = vst.msk [vmem:[%s2346_s16 + $0x8] sm:$0xf] %vm1546_vm0, %v1873_v4  ;;  %1589 = vst.msk [vmem:[%s2346_s16 + $0xa8] sm:$0xf] %vm1546_vm0, %v1913_v5  ;;  %v1874_v8 = vpack.c.bf16 %v1149_v6, %v1149_v6  ;;  %v1914_v9 = vpack.c.bf16 %v1189_v7, %v1189_v7 }
 0x129   : > { %v843_v10 = vpop.f32.mrb[8].mxu0  ;;  %v1003_v11 = vpop.f32.mrb[8].mxu1 }
 0x12a   : > { %1550 = vst.msk [vmem:[%s2346_s16 + $0xc] sm:$0xf] %vm1546_vm0, %v1874_v8  ;;  %1590 = vst.msk [vmem:[%s2346_s16 + $0xac] sm:$0xf] %vm1546_vm0, %v1914_v9  ;;  %v844_v12 = vadd.f32 %v2336_v33, %v843_v10  ;;  %v1004_v13 = vadd.f32 %v2336_v33, %v1003_v11  ;;  %v845_v14 = vpop.f32.mrb[9].mxu0  ;;  %v1005_v15 = vpop.f32.mrb[9].mxu1 }
 0x12b   : > { %v846_v16 = vpop.f32.mrb[10].mxu0  ;;  %v1006_v17 = vpop.f32.mrb[10].mxu1 }
 0x12c   : > { %v1150_v18 = vmax.f32 %v844_v12, 0.0  ;;  %v1190_v19 = vmax.f32 %v1004_v13, 0.0  ;;  %v847_v20 = vadd.f32 %v2336_v33, %v846_v16  ;;  %v1007_v21 = vadd.f32 %v2336_v33, %v1006_v17  ;;  %v848_v22 = vpop.f32.mrb[11].mxu0  ;;  %v1008_v23 = vpop.f32.mrb[11].mxu1 }
 0x12e   : > { %v1875_v24 = vpack.c.bf16 %v1150_v18, %v1150_v18  ;;  %v1915_v25 = vpack.c.bf16 %v1190_v19, %v1190_v19  ;;  %v1151_v26 = vmax.f32 %v847_v20, 0.0  ;;  %v1191_v27 = vmax.f32 %v1007_v21, 0.0 }
 0x130   : > { %1551 = vst.msk [vmem:[%s2346_s16 + $0x10] sm:$0xf] %vm1546_vm0, %v1875_v24  ;;  %1591 = vst.msk [vmem:[%s2346_s16 + $0xb0] sm:$0xf] %vm1546_vm0, %v1915_v25  ;;  %v1876_v28 = vpack.c.bf16 %v1151_v26, %v1151_v26  ;;  %v1916_v29 = vpack.c.bf16 %v1191_v27, %v1191_v27 }
 0x131   : > { %v851_v30 = vpop.f32.mrb[12].mxu0  ;;  %v1011_v31 = vpop.f32.mrb[12].mxu1 }
 0x132   : > { %1552 = vst.msk [vmem:[%s2346_s16 + $0x14] sm:$0xf] %vm1546_vm0, %v1876_v28  ;;  %1592 = vst.msk [vmem:[%s2346_s16 + $0xb4] sm:$0xf] %vm1546_vm0, %v1916_v29  ;;  %v852_v32 = vadd.f32 %v2336_v33, %v851_v30  ;;  %v1012_v34 = vadd.f32 %v2336_v33, %v1011_v31  ;;  %v853_v35 = vpop.f32.mrb[13].mxu0  ;;  %v1013_v36 = vpop.f32.mrb[13].mxu1 }
 0x133   : > { %v854_v37 = vpop.f32.mrb[14].mxu0  ;;  %v1014_v38 = vpop.f32.mrb[14].mxu1 }
 0x134   : > { %v1152_v39 = vmax.f32 %v852_v32, 0.0  ;;  %v1192_v40 = vmax.f32 %v1012_v34, 0.0  ;;  %v855_v41 = vadd.f32 %v2336_v33, %v854_v37  ;;  %v1015_v42 = vadd.f32 %v2336_v33, %v1014_v38  ;;  %v856_v43 = vpop.f32.mrb[15].mxu0  ;;  %v1016_v44 = vpop.f32.mrb[15].mxu1 }
 0x136   : > { %v1877_v45 = vpack.c.bf16 %v1152_v39, %v1152_v39  ;;  %v1917_v46 = vpack.c.bf16 %v1192_v40, %v1192_v40  ;;  %v1153_v47 = vmax.f32 %v855_v41, 0.0  ;;  %v1193_v48 = vmax.f32 %v1015_v42, 0.0 }
 0x138   : > { %1553 = vst.msk [vmem:[%s2346_s16 + $0x18] sm:$0xf] %vm1546_vm0, %v1877_v45  ;;  %1593 = vst.msk [vmem:[%s2346_s16 + $0xb8] sm:$0xf] %vm1546_vm0, %v1917_v46  ;;  %v1878_v49 = vpack.c.bf16 %v1153_v47, %v1153_v47  ;;  %v1918_v50 = vpack.c.bf16 %v1193_v48, %v1193_v48 }
 0x139   : > { %v859_v51 = vpop.f32.mrb[16].mxu0  ;;  %v1019_v52 = vpop.f32.mrb[16].mxu1 }
 0x13a   : > { %1554 = vst.msk [vmem:[%s2346_s16 + $0x1c] sm:$0xf] %vm1546_vm0, %v1878_v49  ;;  %1594 = vst.msk [vmem:[%s2346_s16 + $0xbc] sm:$0xf] %vm1546_vm0, %v1918_v50  ;;  %v860_v53 = vadd.f32 %v2336_v33, %v859_v51  ;;  %v1020_v54 = vadd.f32 %v2336_v33, %v1019_v52  ;;  %v861_v55 = vpop.f32.mrb[17].mxu0  ;;  %v1021_v56 = vpop.f32.mrb[17].mxu1 }
 0x13b   : > { %v862_v57 = vpop.f32.mrb[18].mxu0  ;;  %v1022_v58 = vpop.f32.mrb[18].mxu1 }
 0x13c   : > { %v1154_v59 = vmax.f32 %v860_v53, 0.0  ;;  %v1194_v60 = vmax.f32 %v1020_v54, 0.0  ;;  %v863_v61 = vadd.f32 %v2336_v33, %v862_v57  ;;  %v1023_v62 = vadd.f32 %v2336_v33, %v1022_v58  ;;  %v864_v63 = vpop.f32.mrb[19].mxu0  ;;  %v1024_v0 = vpop.f32.mrb[19].mxu1 }
 0x13e   : > { %v1879_v1 = vpack.c.bf16 %v1154_v59, %v1154_v59  ;;  %v1919_v2 = vpack.c.bf16 %v1194_v60, %v1194_v60  ;;  %v1155_v3 = vmax.f32 %v863_v61, 0.0  ;;  %v1195_v4 = vmax.f32 %v1023_v62, 0.0 }
 0x140   : > { %1555 = vst.msk [vmem:[%s2346_s16 + $0x20] sm:$0xf] %vm1546_vm0, %v1879_v1  ;;  %1595 = vst.msk [vmem:[%s2346_s16 + $0xc0] sm:$0xf] %vm1546_vm0, %v1919_v2  ;;  %v1880_v5 = vpack.c.bf16 %v1155_v3, %v1155_v3  ;;  %v1920_v6 = vpack.c.bf16 %v1195_v4, %v1195_v4 }
 0x141   : > { %v867_v7 = vpop.f32.mrb[20].mxu0  ;;  %v1027_v8 = vpop.f32.mrb[20].mxu1 }
 0x142   : > { %1556 = vst.msk [vmem:[%s2346_s16 + $0x24] sm:$0xf] %vm1546_vm0, %v1880_v5  ;;  %1596 = vst.msk [vmem:[%s2346_s16 + $0xc4] sm:$0xf] %vm1546_vm0, %v1920_v6  ;;  %v868_v9 = vadd.f32 %v2336_v33, %v867_v7  ;;  %v1028_v10 = vadd.f32 %v2336_v33, %v1027_v8  ;;  %v869_v11 = vpop.f32.mrb[21].mxu0  ;;  %v1029_v12 = vpop.f32.mrb[21].mxu1 }
 0x143   : > { %v870_v13 = vpop.f32.mrb[22].mxu0  ;;  %v1030_v14 = vpop.f32.mrb[22].mxu1 }
 0x144   : > { %v1156_v15 = vmax.f32 %v868_v9, 0.0  ;;  %v1196_v16 = vmax.f32 %v1028_v10, 0.0  ;;  %v871_v17 = vadd.f32 %v2336_v33, %v870_v13  ;;  %v1031_v18 = vadd.f32 %v2336_v33, %v1030_v14  ;;  %v872_v19 = vpop.f32.mrb[23].mxu0  ;;  %v1032_v20 = vpop.f32.mrb[23].mxu1 }
 0x146   : > { %v1881_v21 = vpack.c.bf16 %v1156_v15, %v1156_v15  ;;  %v1921_v22 = vpack.c.bf16 %v1196_v16, %v1196_v16  ;;  %v1157_v23 = vmax.f32 %v871_v17, 0.0  ;;  %v1197_v24 = vmax.f32 %v1031_v18, 0.0 }
 0x148   : > { %1557 = vst.msk [vmem:[%s2346_s16 + $0x28] sm:$0xf] %vm1546_vm0, %v1881_v21  ;;  %1597 = vst.msk [vmem:[%s2346_s16 + $0xc8] sm:$0xf] %vm1546_vm0, %v1921_v22  ;;  %v1882_v25 = vpack.c.bf16 %v1157_v23, %v1157_v23  ;;  %v1922_v26 = vpack.c.bf16 %v1197_v24, %v1197_v24 }
 0x149   : > { %v875_v27 = vpop.f32.mrb[24].mxu0  ;;  %v1035_v28 = vpop.f32.mrb[24].mxu1 }
 0x14a   : > { %1558 = vst.msk [vmem:[%s2346_s16 + $0x2c] sm:$0xf] %vm1546_vm0, %v1882_v25  ;;  %1598 = vst.msk [vmem:[%s2346_s16 + $0xcc] sm:$0xf] %vm1546_vm0, %v1922_v26  ;;  %v876_v29 = vadd.f32 %v2336_v33, %v875_v27  ;;  %v1036_v30 = vadd.f32 %v2336_v33, %v1035_v28  ;;  %v877_v31 = vpop.f32.mrb[25].mxu0  ;;  %v1037_v32 = vpop.f32.mrb[25].mxu1 }
 0x14b   : > { %v878_v34 = vpop.f32.mrb[26].mxu0  ;;  %v1038_v35 = vpop.f32.mrb[26].mxu1 }
 0x14c   : > { %v1158_v36 = vmax.f32 %v876_v29, 0.0  ;;  %v1198_v37 = vmax.f32 %v1036_v30, 0.0  ;;  %v879_v38 = vadd.f32 %v2336_v33, %v878_v34  ;;  %v1039_v39 = vadd.f32 %v2336_v33, %v1038_v35  ;;  %v880_v40 = vpop.f32.mrb[27].mxu0  ;;  %v1040_v41 = vpop.f32.mrb[27].mxu1 }
 0x14e   : > { %v1883_v42 = vpack.c.bf16 %v1158_v36, %v1158_v36  ;;  %v1923_v43 = vpack.c.bf16 %v1198_v37, %v1198_v37  ;;  %v1159_v44 = vmax.f32 %v879_v38, 0.0  ;;  %v1199_v45 = vmax.f32 %v1039_v39, 0.0 }
 0x150   : > { %1559 = vst.msk [vmem:[%s2346_s16 + $0x30] sm:$0xf] %vm1546_vm0, %v1883_v42  ;;  %1599 = vst.msk [vmem:[%s2346_s16 + $0xd0] sm:$0xf] %vm1546_vm0, %v1923_v43  ;;  %v1884_v46 = vpack.c.bf16 %v1159_v44, %v1159_v44  ;;  %v1924_v47 = vpack.c.bf16 %v1199_v45, %v1199_v45 }
 0x151   : > { %v883_v48 = vpop.f32.mrb[28].mxu0  ;;  %v1043_v49 = vpop.f32.mrb[28].mxu1 }
 0x152   : > { %1560 = vst.msk [vmem:[%s2346_s16 + $0x34] sm:$0xf] %vm1546_vm0, %v1884_v46  ;;  %1600 = vst.msk [vmem:[%s2346_s16 + $0xd4] sm:$0xf] %vm1546_vm0, %v1924_v47  ;;  %v884_v50 = vadd.f32 %v2336_v33, %v883_v48  ;;  %v1044_v51 = vadd.f32 %v2336_v33, %v1043_v49  ;;  %v885_v52 = vpop.f32.mrb[29].mxu0  ;;  %v1045_v53 = vpop.f32.mrb[29].mxu1 }
 0x153   : > { %v886_v54 = vpop.f32.mrb[30].mxu0  ;;  %v1046_v55 = vpop.f32.mrb[30].mxu1 }
 0x154   : > { %v1160_v56 = vmax.f32 %v884_v50, 0.0  ;;  %v1200_v57 = vmax.f32 %v1044_v51, 0.0  ;;  %v887_v58 = vadd.f32 %v2336_v33, %v886_v54  ;;  %v1047_v59 = vadd.f32 %v2336_v33, %v1046_v55  ;;  %v888_v60 = vpop.f32.mrb[31].mxu0  ;;  %v1048_v61 = vpop.f32.mrb[31].mxu1 }
 0x156   : > { %v1885_v62 = vpack.c.bf16 %v1160_v56, %v1160_v56  ;;  %v1925_v63 = vpack.c.bf16 %v1200_v57, %v1200_v57  ;;  %v1161_v0 = vmax.f32 %v887_v58, 0.0  ;;  %v1201_v1 = vmax.f32 %v1047_v59, 0.0 }
 0x158   : > { %1561 = vst.msk [vmem:[%s2346_s16 + $0x38] sm:$0xf] %vm1546_vm0, %v1885_v62  ;;  %1601 = vst.msk [vmem:[%s2346_s16 + $0xd8] sm:$0xf] %vm1546_vm0, %v1925_v63  ;;  %v1886_v2 = vpack.c.bf16 %v1161_v0, %v1161_v0  ;;  %v1926_v3 = vpack.c.bf16 %v1201_v1, %v1201_v1 }
 0x159   : > { %v891_v4 = vpop.f32.mrb[32].mxu0  ;;  %v1051_v5 = vpop.f32.mrb[32].mxu1 }
 0x15a   : > { %1562 = vst.msk [vmem:[%s2346_s16 + $0x3c] sm:$0xf] %vm1546_vm0, %v1886_v2  ;;  %1602 = vst.msk [vmem:[%s2346_s16 + $0xdc] sm:$0xf] %vm1546_vm0, %v1926_v3  ;;  %v892_v6 = vadd.f32 %v2336_v33, %v891_v4  ;;  %v1052_v7 = vadd.f32 %v2336_v33, %v1051_v5  ;;  %v893_v8 = vpop.f32.mrb[33].mxu0  ;;  %v1053_v9 = vpop.f32.mrb[33].mxu1 }
 0x15b   : > { %v894_v10 = vpop.f32.mrb[34].mxu0  ;;  %v1054_v11 = vpop.f32.mrb[34].mxu1 }
 0x15c   : > { %v1162_v12 = vmax.f32 %v892_v6, 0.0  ;;  %v1202_v13 = vmax.f32 %v1052_v7, 0.0  ;;  %v895_v14 = vadd.f32 %v2336_v33, %v894_v10  ;;  %v1055_v15 = vadd.f32 %v2336_v33, %v1054_v11  ;;  %v896_v16 = vpop.f32.mrb[35].mxu0  ;;  %v1056_v17 = vpop.f32.mrb[35].mxu1 }
 0x15e   : > { %v1887_v18 = vpack.c.bf16 %v1162_v12, %v1162_v12  ;;  %v1927_v19 = vpack.c.bf16 %v1202_v13, %v1202_v13  ;;  %v1163_v20 = vmax.f32 %v895_v14, 0.0  ;;  %v1203_v21 = vmax.f32 %v1055_v15, 0.0 }
 0x160   : > { %1563 = vst.msk [vmem:[%s2346_s16 + $0x40] sm:$0xf] %vm1546_vm0, %v1887_v18  ;;  %1603 = vst.msk [vmem:[%s2346_s16 + $0xe0] sm:$0xf] %vm1546_vm0, %v1927_v19  ;;  %v1888_v22 = vpack.c.bf16 %v1163_v20, %v1163_v20  ;;  %v1928_v23 = vpack.c.bf16 %v1203_v21, %v1203_v21 }
 0x161   : > { %v899_v24 = vpop.f32.mrb[36].mxu0  ;;  %v1059_v25 = vpop.f32.mrb[36].mxu1 }
 0x162   : > { %1564 = vst.msk [vmem:[%s2346_s16 + $0x44] sm:$0xf] %vm1546_vm0, %v1888_v22  ;;  %1604 = vst.msk [vmem:[%s2346_s16 + $0xe4] sm:$0xf] %vm1546_vm0, %v1928_v23  ;;  %v900_v26 = vadd.f32 %v2336_v33, %v899_v24  ;;  %v1060_v27 = vadd.f32 %v2336_v33, %v1059_v25  ;;  %v901_v28 = vpop.f32.mrb[37].mxu0  ;;  %v1061_v29 = vpop.f32.mrb[37].mxu1 }
 0x163   : > { %v902_v30 = vpop.f32.mrb[38].mxu0  ;;  %v1062_v31 = vpop.f32.mrb[38].mxu1 }
 0x164   : > { %v1164_v32 = vmax.f32 %v900_v26, 0.0  ;;  %v1204_v34 = vmax.f32 %v1060_v27, 0.0  ;;  %v903_v35 = vadd.f32 %v2336_v33, %v902_v30  ;;  %v1063_v36 = vadd.f32 %v2336_v33, %v1062_v31  ;;  %v904_v37 = vpop.f32.mrb[39].mxu0  ;;  %v1064_v38 = vpop.f32.mrb[39].mxu1 }
 0x166   : > { %v1889_v39 = vpack.c.bf16 %v1164_v32, %v1164_v32  ;;  %v1929_v40 = vpack.c.bf16 %v1204_v34, %v1204_v34  ;;  %v1165_v41 = vmax.f32 %v903_v35, 0.0  ;;  %v1205_v42 = vmax.f32 %v1063_v36, 0.0 }
 0x168   : > { %1565 = vst.msk [vmem:[%s2346_s16 + $0x48] sm:$0xf] %vm1546_vm0, %v1889_v39  ;;  %1605 = vst.msk [vmem:[%s2346_s16 + $0xe8] sm:$0xf] %vm1546_vm0, %v1929_v40  ;;  %v1890_v43 = vpack.c.bf16 %v1165_v41, %v1165_v41  ;;  %v1930_v44 = vpack.c.bf16 %v1205_v42, %v1205_v42 }
 0x169   : > { %v907_v45 = vpop.f32.mrb[40].mxu0  ;;  %v1067_v46 = vpop.f32.mrb[40].mxu1 }
 0x16a   : > { %1566 = vst.msk [vmem:[%s2346_s16 + $0x4c] sm:$0xf] %vm1546_vm0, %v1890_v43  ;;  %1606 = vst.msk [vmem:[%s2346_s16 + $0xec] sm:$0xf] %vm1546_vm0, %v1930_v44  ;;  %v908_v47 = vadd.f32 %v2336_v33, %v907_v45  ;;  %v1068_v48 = vadd.f32 %v2336_v33, %v1067_v46  ;;  %v909_v49 = vpop.f32.mrb[41].mxu0  ;;  %v1069_v50 = vpop.f32.mrb[41].mxu1 }
 0x16b   : > { %v910_v51 = vpop.f32.mrb[42].mxu0  ;;  %v1070_v52 = vpop.f32.mrb[42].mxu1 }
 0x16c   : > { %v1166_v53 = vmax.f32 %v908_v47, 0.0  ;;  %v1206_v54 = vmax.f32 %v1068_v48, 0.0  ;;  %v911_v55 = vadd.f32 %v2336_v33, %v910_v51  ;;  %v1071_v56 = vadd.f32 %v2336_v33, %v1070_v52  ;;  %v912_v57 = vpop.f32.mrb[43].mxu0  ;;  %v1072_v58 = vpop.f32.mrb[43].mxu1 }
 0x16e   : > { %v1891_v59 = vpack.c.bf16 %v1166_v53, %v1166_v53  ;;  %v1931_v60 = vpack.c.bf16 %v1206_v54, %v1206_v54  ;;  %v1167_v61 = vmax.f32 %v911_v55, 0.0  ;;  %v1207_v62 = vmax.f32 %v1071_v56, 0.0 }
 0x170   : > { %1567 = vst.msk [vmem:[%s2346_s16 + $0x50] sm:$0xf] %vm1546_vm0, %v1891_v59  ;;  %1607 = vst.msk [vmem:[%s2346_s16 + $0xf0] sm:$0xf] %vm1546_vm0, %v1931_v60  ;;  %v1892_v63 = vpack.c.bf16 %v1167_v61, %v1167_v61  ;;  %v1932_v0 = vpack.c.bf16 %v1207_v62, %v1207_v62 }
 0x171   : > { %v915_v1 = vpop.f32.mrb[44].mxu0  ;;  %v1075_v2 = vpop.f32.mrb[44].mxu1 }
 0x172   : > { %1568 = vst.msk [vmem:[%s2346_s16 + $0x54] sm:$0xf] %vm1546_vm0, %v1892_v63  ;;  %1608 = vst.msk [vmem:[%s2346_s16 + $0xf4] sm:$0xf] %vm1546_vm0, %v1932_v0  ;;  %v916_v3 = vadd.f32 %v2336_v33, %v915_v1  ;;  %v1076_v4 = vadd.f32 %v2336_v33, %v1075_v2  ;;  %v917_v5 = vpop.f32.mrb[45].mxu0  ;;  %v1077_v6 = vpop.f32.mrb[45].mxu1 }
 0x173   : > { %v918_v7 = vpop.f32.mrb[46].mxu0  ;;  %v1078_v8 = vpop.f32.mrb[46].mxu1 }
 0x174   : > { %v1168_v9 = vmax.f32 %v916_v3, 0.0  ;;  %v1208_v10 = vmax.f32 %v1076_v4, 0.0  ;;  %v919_v11 = vadd.f32 %v2336_v33, %v918_v7  ;;  %v1079_v12 = vadd.f32 %v2336_v33, %v1078_v8  ;;  %v920_v13 = vpop.f32.mrb[47].mxu0  ;;  %v1080_v14 = vpop.f32.mrb[47].mxu1 }
 0x176   : > { %v1893_v15 = vpack.c.bf16 %v1168_v9, %v1168_v9  ;;  %v1933_v16 = vpack.c.bf16 %v1208_v10, %v1208_v10  ;;  %v1169_v17 = vmax.f32 %v919_v11, 0.0  ;;  %v1209_v18 = vmax.f32 %v1079_v12, 0.0 }
 0x178   : > { %1569 = vst.msk [vmem:[%s2346_s16 + $0x58] sm:$0xf] %vm1546_vm0, %v1893_v15  ;;  %1609 = vst.msk [vmem:[%s2346_s16 + $0xf8] sm:$0xf] %vm1546_vm0, %v1933_v16  ;;  %v1894_v19 = vpack.c.bf16 %v1169_v17, %v1169_v17  ;;  %v1934_v20 = vpack.c.bf16 %v1209_v18, %v1209_v18 }
 0x179   : > { %v923_v21 = vpop.f32.mrb[48].mxu0  ;;  %v1083_v22 = vpop.f32.mrb[48].mxu1 }
 0x17a   : > { %1570 = vst.msk [vmem:[%s2346_s16 + $0x5c] sm:$0xf] %vm1546_vm0, %v1894_v19  ;;  %1610 = vst.msk [vmem:[%s2346_s16 + $0xfc] sm:$0xf] %vm1546_vm0, %v1934_v20  ;;  %v924_v23 = vadd.f32 %v2336_v33, %v923_v21  ;;  %v1084_v24 = vadd.f32 %v2336_v33, %v1083_v22  ;;  %v925_v25 = vpop.f32.mrb[49].mxu0  ;;  %v1085_v26 = vpop.f32.mrb[49].mxu1 }
 0x17b   : > { %v926_v27 = vpop.f32.mrb[50].mxu0  ;;  %v1086_v28 = vpop.f32.mrb[50].mxu1 }
 0x17c   : > { %v1170_v29 = vmax.f32 %v924_v23, 0.0  ;;  %v1210_v30 = vmax.f32 %v1084_v24, 0.0  ;;  %v927_v31 = vadd.f32 %v2336_v33, %v926_v27  ;;  %v1087_v32 = vadd.f32 %v2336_v33, %v1086_v28  ;;  %v928_v34 = vpop.f32.mrb[51].mxu0  ;;  %v1088_v35 = vpop.f32.mrb[51].mxu1 }
 0x17e   : > { %v1895_v36 = vpack.c.bf16 %v1170_v29, %v1170_v29  ;;  %v1935_v37 = vpack.c.bf16 %v1210_v30, %v1210_v30  ;;  %v1171_v38 = vmax.f32 %v927_v31, 0.0  ;;  %v1211_v39 = vmax.f32 %v1087_v32, 0.0 }
 0x180   : > { %1571 = vst.msk [vmem:[%s2346_s16 + $0x60] sm:$0xf] %vm1546_vm0, %v1895_v36  ;;  %1611 = vst.msk [vmem:[%s2346_s16 + $0x100] sm:$0xf] %vm1546_vm0, %v1935_v37  ;;  %v1896_v40 = vpack.c.bf16 %v1171_v38, %v1171_v38  ;;  %v1936_v41 = vpack.c.bf16 %v1211_v39, %v1211_v39 }
 0x181   : > { %v931_v42 = vpop.f32.mrb[52].mxu0  ;;  %v1091_v43 = vpop.f32.mrb[52].mxu1 }
 0x182   : > { %1572 = vst.msk [vmem:[%s2346_s16 + $0x64] sm:$0xf] %vm1546_vm0, %v1896_v40  ;;  %1612 = vst.msk [vmem:[%s2346_s16 + $0x104] sm:$0xf] %vm1546_vm0, %v1936_v41  ;;  %v932_v44 = vadd.f32 %v2336_v33, %v931_v42  ;;  %v1092_v45 = vadd.f32 %v2336_v33, %v1091_v43  ;;  %v933_v46 = vpop.f32.mrb[53].mxu0  ;;  %v1093_v47 = vpop.f32.mrb[53].mxu1 }
 0x183   : > { %v934_v48 = vpop.f32.mrb[54].mxu0  ;;  %v1094_v49 = vpop.f32.mrb[54].mxu1 }
 0x184   : > { %v1172_v50 = vmax.f32 %v932_v44, 0.0  ;;  %v1212_v51 = vmax.f32 %v1092_v45, 0.0  ;;  %v935_v52 = vadd.f32 %v2336_v33, %v934_v48  ;;  %v1095_v53 = vadd.f32 %v2336_v33, %v1094_v49  ;;  %v936_v54 = vpop.f32.mrb[55].mxu0  ;;  %v1096_v55 = vpop.f32.mrb[55].mxu1 }
 0x186   : > { %v1897_v56 = vpack.c.bf16 %v1172_v50, %v1172_v50  ;;  %v1937_v57 = vpack.c.bf16 %v1212_v51, %v1212_v51  ;;  %v1173_v58 = vmax.f32 %v935_v52, 0.0  ;;  %v1213_v59 = vmax.f32 %v1095_v53, 0.0 }
 0x188   : > { %1573 = vst.msk [vmem:[%s2346_s16 + $0x68] sm:$0xf] %vm1546_vm0, %v1897_v56  ;;  %1613 = vst.msk [vmem:[%s2346_s16 + $0x108] sm:$0xf] %vm1546_vm0, %v1937_v57  ;;  %v1898_v60 = vpack.c.bf16 %v1173_v58, %v1173_v58  ;;  %v1938_v61 = vpack.c.bf16 %v1213_v59, %v1213_v59 }
 0x189   : > { %v939_v62 = vpop.f32.mrb[56].mxu0  ;;  %v1099_v63 = vpop.f32.mrb[56].mxu1 }
 0x18a   : > { %1574 = vst.msk [vmem:[%s2346_s16 + $0x6c] sm:$0xf] %vm1546_vm0, %v1898_v60  ;;  %1614 = vst.msk [vmem:[%s2346_s16 + $0x10c] sm:$0xf] %vm1546_vm0, %v1938_v61  ;;  %v940_v0 = vadd.f32 %v2336_v33, %v939_v62  ;;  %v1100_v1 = vadd.f32 %v2336_v33, %v1099_v63  ;;  %v941_v2 = vpop.f32.mrb[57].mxu0  ;;  %v1101_v3 = vpop.f32.mrb[57].mxu1 }
 0x18b   : > { %v942_v4 = vpop.f32.mrb[58].mxu0  ;;  %v1102_v5 = vpop.f32.mrb[58].mxu1 }
 0x18c   : > { %v1174_v6 = vmax.f32 %v940_v0, 0.0  ;;  %v1214_v7 = vmax.f32 %v1100_v1, 0.0  ;;  %v943_v8 = vadd.f32 %v2336_v33, %v942_v4  ;;  %v1103_v9 = vadd.f32 %v2336_v33, %v1102_v5  ;;  %v944_v10 = vpop.f32.mrb[59].mxu0  ;;  %v1104_v11 = vpop.f32.mrb[59].mxu1 }
 0x18e   : > { %v1899_v12 = vpack.c.bf16 %v1174_v6, %v1174_v6  ;;  %v1939_v13 = vpack.c.bf16 %v1214_v7, %v1214_v7  ;;  %v1175_v14 = vmax.f32 %v943_v8, 0.0  ;;  %v1215_v15 = vmax.f32 %v1103_v9, 0.0 }
 0x190   : > { %1575 = vst.msk [vmem:[%s2346_s16 + $0x70] sm:$0xf] %vm1546_vm0, %v1899_v12  ;;  %1615 = vst.msk [vmem:[%s2346_s16 + $0x110] sm:$0xf] %vm1546_vm0, %v1939_v13  ;;  %v1900_v16 = vpack.c.bf16 %v1175_v14, %v1175_v14  ;;  %v1940_v17 = vpack.c.bf16 %v1215_v15, %v1215_v15 }
 0x191   : > { %v947_v18 = vpop.f32.mrb[60].mxu0  ;;  %v1107_v19 = vpop.f32.mrb[60].mxu1 }
 0x192   : > { %1576 = vst.msk [vmem:[%s2346_s16 + $0x74] sm:$0xf] %vm1546_vm0, %v1900_v16  ;;  %1616 = vst.msk [vmem:[%s2346_s16 + $0x114] sm:$0xf] %vm1546_vm0, %v1940_v17  ;;  %v948_v20 = vadd.f32 %v2336_v33, %v947_v18  ;;  %v1108_v21 = vadd.f32 %v2336_v33, %v1107_v19  ;;  %v949_v22 = vpop.f32.mrb[61].mxu0  ;;  %v1109_v23 = vpop.f32.mrb[61].mxu1 }
 0x193   : > { %v950_v24 = vpop.f32.mrb[62].mxu0  ;;  %v1110_v25 = vpop.f32.mrb[62].mxu1 }
 0x194   : > { %v1176_v26 = vmax.f32 %v948_v20, 0.0  ;;  %v1216_v27 = vmax.f32 %v1108_v21, 0.0  ;;  %v951_v28 = vadd.f32 %v2336_v33, %v950_v24  ;;  %v1111_v29 = vadd.f32 %v2336_v33, %v1110_v25  ;;  %v952_v30 = vpop.f32.mrb[63].mxu0  ;;  %v1112_v31 = vpop.f32.mrb[63].mxu1 }
 0x196   : > { %v1901_v32 = vpack.c.bf16 %v1176_v26, %v1176_v26  ;;  %v1941_v34 = vpack.c.bf16 %v1216_v27, %v1216_v27  ;;  %v1177_v35 = vmax.f32 %v951_v28, 0.0  ;;  %v1217_v36 = vmax.f32 %v1111_v29, 0.0 }
 0x198   : > { %1577 = vst.msk [vmem:[%s2346_s16 + $0x78] sm:$0xf] %vm1546_vm0, %v1901_v32  ;;  %1617 = vst.msk [vmem:[%s2346_s16 + $0x118] sm:$0xf] %vm1546_vm0, %v1941_v34  ;;  %v1902_v37 = vpack.c.bf16 %v1177_v35, %v1177_v35  ;;  %v1942_v38 = vpack.c.bf16 %v1217_v36, %v1217_v36 }
 0x199   : > { %v955_v39 = vpop.f32.mrb[64].mxu0  ;;  %v1115_v40 = vpop.f32.mrb[64].mxu1 }
 0x19a   : > { %1578 = vst.msk [vmem:[%s2346_s16 + $0x7c] sm:$0xf] %vm1546_vm0, %v1902_v37  ;;  %1618 = vst.msk [vmem:[%s2346_s16 + $0x11c] sm:$0xf] %vm1546_vm0, %v1942_v38  ;;  %v956_v41 = vadd.f32 %v2336_v33, %v955_v39  ;;  %v1116_v42 = vadd.f32 %v2336_v33, %v1115_v40  ;;  %v957_v43 = vpop.f32.mrb[65].mxu0  ;;  %v1117_v44 = vpop.f32.mrb[65].mxu1 }
 0x19b   : > { %v958_v45 = vpop.f32.mrb[66].mxu0  ;;  %v1118_v46 = vpop.f32.mrb[66].mxu1 }
 0x19c   : > { %v1178_v47 = vmax.f32 %v956_v41, 0.0  ;;  %v1218_v48 = vmax.f32 %v1116_v42, 0.0  ;;  %v959_v49 = vadd.f32 %v2336_v33, %v958_v45  ;;  %v1119_v50 = vadd.f32 %v2336_v33, %v1118_v46  ;;  %v960_v51 = vpop.f32.mrb[67].mxu0  ;;  %v1120_v52 = vpop.f32.mrb[67].mxu1 }
 0x19e   : > { %v1903_v53 = vpack.c.bf16 %v1178_v47, %v1178_v47  ;;  %v1943_v54 = vpack.c.bf16 %v1218_v48, %v1218_v48  ;;  %v1179_v55 = vmax.f32 %v959_v49, 0.0  ;;  %v1219_v56 = vmax.f32 %v1119_v50, 0.0 }
 0x1a0   : > { %1579 = vst.msk [vmem:[%s2346_s16 + $0x80] sm:$0xf] %vm1546_vm0, %v1903_v53  ;;  %1619 = vst.msk [vmem:[%s2346_s16 + $0x120] sm:$0xf] %vm1546_vm0, %v1943_v54  ;;  %v1904_v57 = vpack.c.bf16 %v1179_v55, %v1179_v55  ;;  %v1944_v58 = vpack.c.bf16 %v1219_v56, %v1219_v56 }
 0x1a1   : > { %v963_v59 = vpop.f32.mrb[68].mxu0  ;;  %v1123_v60 = vpop.f32.mrb[68].mxu1 }
 0x1a2   : > { %1580 = vst.msk [vmem:[%s2346_s16 + $0x84] sm:$0xf] %vm1546_vm0, %v1904_v57  ;;  %1620 = vst.msk [vmem:[%s2346_s16 + $0x124] sm:$0xf] %vm1546_vm0, %v1944_v58  ;;  %v964_v61 = vadd.f32 %v2336_v33, %v963_v59  ;;  %v1124_v62 = vadd.f32 %v2336_v33, %v1123_v60  ;;  %v965_v63 = vpop.f32.mrb[69].mxu0  ;;  %v1125_v0 = vpop.f32.mrb[69].mxu1 }
 0x1a3   : > { %v966_v1 = vpop.f32.mrb[70].mxu0  ;;  %v1126_v2 = vpop.f32.mrb[70].mxu1 }
 0x1a4   : > { %v1180_v3 = vmax.f32 %v964_v61, 0.0  ;;  %v1220_v4 = vmax.f32 %v1124_v62, 0.0  ;;  %v967_v5 = vadd.f32 %v2336_v33, %v966_v1  ;;  %v1127_v6 = vadd.f32 %v2336_v33, %v1126_v2  ;;  %v968_v7 = vpop.f32.mrb[71].mxu0  ;;  %v1128_v8 = vpop.f32.mrb[71].mxu1 }
 0x1a6   : > { %v1905_v9 = vpack.c.bf16 %v1180_v3, %v1180_v3  ;;  %v1945_v10 = vpack.c.bf16 %v1220_v4, %v1220_v4  ;;  %v1181_v11 = vmax.f32 %v967_v5, 0.0  ;;  %v1221_v12 = vmax.f32 %v1127_v6, 0.0 }
 0x1a8   : > { %1581 = vst.msk [vmem:[%s2346_s16 + $0x88] sm:$0xf] %vm1546_vm0, %v1905_v9  ;;  %1621 = vst.msk [vmem:[%s2346_s16 + $0x128] sm:$0xf] %vm1546_vm0, %v1945_v10  ;;  %v1906_v13 = vpack.c.bf16 %v1181_v11, %v1181_v11  ;;  %v1946_v14 = vpack.c.bf16 %v1221_v12, %v1221_v12 }
 0x1a9   : > { %v971_v15 = vpop.f32.mrb[72].mxu0  ;;  %v1131_v16 = vpop.f32.mrb[72].mxu1 }
 0x1aa   : > { %1582 = vst.msk [vmem:[%s2346_s16 + $0x8c] sm:$0xf] %vm1546_vm0, %v1906_v13  ;;  %1622 = vst.msk [vmem:[%s2346_s16 + $0x12c] sm:$0xf] %vm1546_vm0, %v1946_v14  ;;  %v972_v17 = vadd.f32 %v2336_v33, %v971_v15  ;;  %v1132_v18 = vadd.f32 %v2336_v33, %v1131_v16  ;;  %v973_v19 = vpop.f32.mrb[73].mxu0  ;;  %v1133_v20 = vpop.f32.mrb[73].mxu1 }
 0x1ab   : > { %v974_v21 = vpop.f32.mrb[74].mxu0  ;;  %v1134_v22 = vpop.f32.mrb[74].mxu1 }
 0x1ac   : > { %v1182_v23 = vmax.f32 %v972_v17, 0.0  ;;  %v1222_v24 = vmax.f32 %v1132_v18, 0.0  ;;  %v975_v25 = vadd.f32 %v2336_v33, %v974_v21  ;;  %v1135_v26 = vadd.f32 %v2336_v33, %v1134_v22  ;;  %v976_v27 = vpop.f32.mrb[75].mxu0  ;;  %v1136_v28 = vpop.f32.mrb[75].mxu1 }
 0x1ae   : > { %v1907_v29 = vpack.c.bf16 %v1182_v23, %v1182_v23  ;;  %v1947_v30 = vpack.c.bf16 %v1222_v24, %v1222_v24  ;;  %v1183_v31 = vmax.f32 %v975_v25, 0.0  ;;  %v1223_v32 = vmax.f32 %v1135_v26, 0.0 }
 0x1b0   : > { %1583 = vst.msk [vmem:[%s2346_s16 + $0x90] sm:$0xf] %vm1546_vm0, %v1907_v29  ;;  %1623 = vst.msk [vmem:[%s2346_s16 + $0x130] sm:$0xf] %vm1546_vm0, %v1947_v30  ;;  %v1908_v34 = vpack.c.bf16 %v1183_v31, %v1183_v31  ;;  %v1948_v35 = vpack.c.bf16 %v1223_v32, %v1223_v32 }
 0x1b1   : > { %v979_v36 = vpop.f32.mrb[76].mxu0  ;;  %v1139_v37 = vpop.f32.mrb[76].mxu1 }
 0x1b2   : > { %1584 = vst.msk [vmem:[%s2346_s16 + $0x94] sm:$0xf] %vm1546_vm0, %v1908_v34  ;;  %1624 = vst.msk [vmem:[%s2346_s16 + $0x134] sm:$0xf] %vm1546_vm0, %v1948_v35  ;;  %v980_v38 = vadd.f32 %v2336_v33, %v979_v36  ;;  %v1140_v39 = vadd.f32 %v2336_v33, %v1139_v37  ;;  %v981_v40 = vpop.f32.mrb[77].mxu0  ;;  %v1141_v41 = vpop.f32.mrb[77].mxu1 }
 0x1b3   : > { %v982_v42 = vpop.f32.mrb[78].mxu0  ;;  %v1142_v43 = vpop.f32.mrb[78].mxu1 }
 0x1b4   : > { %v1184_v44 = vmax.f32 %v980_v38, 0.0  ;;  %v1224_v45 = vmax.f32 %v1140_v39, 0.0  ;;  %v983_v46 = vadd.f32 %v2336_v33, %v982_v42  ;;  %v1143_v47 = vadd.f32 %v2336_v33, %v1142_v43  ;;  %v984_v48 = vpop.f32.mrb[79].mxu0  ;;  %v1144_v49 = vpop.f32.mrb[79].mxu1 }
 0x1b6   : > { %v1909_v50 = vpack.c.bf16 %v1184_v44, %v1184_v44  ;;  %v1949_v51 = vpack.c.bf16 %v1224_v45, %v1224_v45  ;;  %v1185_v52 = vmax.f32 %v983_v46, 0.0  ;;  %v1225_v53 = vmax.f32 %v1143_v47, 0.0 }
 0x1b8   : > { %1585 = vst.msk [vmem:[%s2346_s16 + $0x98] sm:$0xf] %vm1546_vm0, %v1909_v50  ;;  %1625 = vst.msk [vmem:[%s2346_s16 + $0x138] sm:$0xf] %vm1546_vm0, %v1949_v51  ;;  %v1910_v54 = vpack.c.bf16 %v1185_v52, %v1185_v52  ;;  %v1950_v55 = vpack.c.bf16 %v1225_v53, %v1225_v53 }
 0x1ba   : > { %1586 = vst.msk [vmem:[%s2346_s16 + $0x9c] sm:$0xf] %vm1546_vm0, %v1910_v54  ;;  %1626 = vst.msk [vmem:[%s2346_s16 + $0x13c] sm:$0xf] %vm1546_vm0, %v1950_v55 }
 0x1bb PF: > { %s13_s12 = sadd.s32 1, %s2134_s12  }
 0x1bc   : > { %p10_p4 = scmp.ge.s32.totalorder %s13_s12, 4  }
 0x1be   :  { %12 = sbr.rel (!%p10_p4) target bundleno = 1 (0x1), region = 62 }

// kernel: cnn_network4_forward.5
= control target key start
LH: loop header
LB: loop body
LE: loop exit
PB: predicated region body
PF: predicated region fallthrough
CT: control target
= control target key end

     0   :  { %v1187_v0 = vmov 0   ;;  %vm475_vm0 = vcmask 130048   ;;  %vm861_vm1 = vcmask 257024   ;;  %s1550_s1 = inlined_call_operand.vmem [shape: bf16[400,32], index: 1, kind: input, shape index: {}]   ;;  %s1551_s0 = inlined_call_operand.vmem [shape: bf16[176,400], index: 0, kind: input, shape index: {}]   ;;  %s1552_s2 = inlined_call_operand.vmem [shape: f32[1,32], index: 2, kind: input, shape index: {}]   ;;  %s1553_s3 = inlined_call_operand.vmem [shape: bf16[176,32], index: 3, kind: output, shape index: {}]  }
   0x1   :  { %630 = vmatprep.subr.bf16.mxu1 %v1187_v0  ;;  %v1096_v1 = vld [vmem:[%s1550_s1 + $0x40] sm:$0xff]   ;;  %v1099_v4 = vld [vmem:[%s1550_s1 + $0x48] sm:$0xff]   ;;  %v1102_v7 = vld [vmem:[%s1550_s1 + $0x50] sm:$0xff]  }
   0x2   :  { %v1097_v2 = vld [vmem:[%s1550_s1 + $0x80] sm:$0xff]   ;;  %1013 = vmatprep.subr.bf16.mxu0 %v1096_v1  ;;  %v1100_v5 = vld [vmem:[%s1550_s1 + $0x88] sm:$0xff]   ;;  %v1103_v8 = vld [vmem:[%s1550_s1 + $0x90] sm:$0xff]  }
   0x3   :  { %v1098_v3 = vld [vmem:[%s1550_s1] sm:$0xff]   ;;  %631 = vmatpush1.bf16.msra.mxu1 %v1097_v2  ;;  %v1101_v6 = vld [vmem:[%s1550_s1 + $0x8] sm:$0xff]   ;;  %v1104_v9 = vld [vmem:[%s1550_s1 + $0x10] sm:$0xff]  }
   0x4   :  { %1014 = vmatpush3.bf16.msra.mxu0 %v1098_v3  ;;  %632 = vmatprep.subr.bf16.mxu1 %v1187_v0  ;;  %v1105_v10 = vld [vmem:[%s1550_s1 + $0x58] sm:$0xff]   ;;  %v1108_v13 = vld [vmem:[%s1550_s1 + $0x60] sm:$0xff]   ;;  %v1111_v16 = vld [vmem:[%s1550_s1 + $0x68] sm:$0xff]  }
   0x5   :  { %1015 = vmatprep.subr.bf16.mxu0 %v1099_v4  ;;  %v1106_v11 = vld [vmem:[%s1550_s1 + $0x98] sm:$0xff]   ;;  %v1109_v14 = vld [vmem:[%s1550_s1 + $0xa0] sm:$0xff]   ;;  %v1112_v17 = vld [vmem:[%s1550_s1 + $0xa8] sm:$0xff]  }
   0x6   :  { %v1107_v12 = vld [vmem:[%s1550_s1 + $0x18] sm:$0xff]   ;;  %v1110_v15 = vld [vmem:[%s1550_s1 + $0x20] sm:$0xff]   ;;  %v1113_v18 = vld [vmem:[%s1550_s1 + $0x28] sm:$0xff]  }
   0x7   :  { %633 = vmatpush1.bf16.msra.mxu1 %v1100_v5  ;;  %v1114_v19 = vld [vmem:[%s1550_s1 + $0x70] sm:$0xff]   ;;  %v1117_v22 = vld [vmem:[%s1550_s1 + $0x78] sm:$0xff]   ;;  %v1123_v28 = vld [vmem:[%s1550_s1 + $0xc0] sm:$0xff]  }
   0x8   :  { %1016 = vmatpush3.bf16.msra.mxu0 %v1101_v6  ;;  %634 = vmatprep.subr.bf16.mxu1 %v1187_v0  ;;  %v1115_v20 = vld [vmem:[%s1550_s1 + $0xb0] sm:$0xff]   ;;  %v1118_v24 = vld [vmem:[%s1550_s1 + $0xb8] sm:$0xff]  }
   0x9   :  { %1017 = vmatprep.subr.bf16.mxu0 %v1102_v7  ;;  %v1116_v21 = vld [vmem:[%s1550_s1 + $0x30] sm:$0xff]   ;;  %v1126_v25 = vld [vmem:[%s1551_s0 + $0xc] ss:$16 sps:$4 sm:$0xff]   ;;  %v1124_v30 = vld [vmem:[%s1551_s0 + $0x8] ss:$16 sps:$4 sm:$0xff]  }
   0xa   :  { %v1122_v23 = vld [vmem:[%s1551_s0 + $0x4] ss:$16 sps:$4 sm:$0xff]   ;;  %v1119_v26 = vld [vmem:[%s1550_s1 + $0x38] sm:$0xff]   ;;  %958 = vmatprep.mubr.msk.bf16.mxu1 %vm475_vm0, %v1126_v25  ;;  %v1120_v27 = vld [vmem:[%s1551_s0] ss:$16 sps:$4 sm:$0xff]  }
   0xb   :  { %635 = vmatpush1.bf16.msra.mxu1 %v1103_v8  ;;  %541 = vmatprep.mubr.bf16.mxu0 %v1122_v23  ;;  %v1127_v29 = vld [vmem:[%s1551_s0 + $0x24] ss:$16 sps:$4 sm:$0xff]   ;;  %v1130_v31 = vld [vmem:[%s1551_s0 + $0x2c] ss:$16 sps:$4 sm:$0xff]   ;;  %v1129_v32 = vld [vmem:[%s1551_s0 + $0x20] ss:$16 sps:$4 sm:$0xff]  }
   0xc   :  { %1018 = vmatpush3.bf16.msra.mxu0 %v1104_v9  ;;  %636 = vmatprep.subr.bf16.mxu1 %v1187_v0  ;;  %v1133_v33 = vld [vmem:[%s1551_s0 + $0x44] ss:$16 sps:$4 sm:$0xff]   ;;  %v1132_v34 = vld [vmem:[%s1551_s0 + $0x28] ss:$16 sps:$4 sm:$0xff]   ;;  %v1136_v35 = vld [vmem:[%s1551_s0 + $0x4c] ss:$16 sps:$4 sm:$0xff]  }
   0xd   :  { %1019 = vmatprep.subr.bf16.mxu0 %v1105_v10  ;;  %v1135_v36 = vld [vmem:[%s1551_s0 + $0x40] ss:$16 sps:$4 sm:$0xff]   ;;  %v1139_v37 = vld [vmem:[%s1551_s0 + $0x64] ss:$16 sps:$4 sm:$0xff]   ;;  %v1138_v38 = vld [vmem:[%s1551_s0 + $0x48] ss:$16 sps:$4 sm:$0xff]  }
   0xe   :  { %v1142_v39 = vld [vmem:[%s1551_s0 + $0x6c] ss:$16 sps:$4 sm:$0xff]   ;;  %v1141_v40 = vld [vmem:[%s1551_s0 + $0x60] ss:$16 sps:$4 sm:$0xff]   ;;  %v1145_v41 = vld [vmem:[%s1551_s0 + $0x84] ss:$16 sps:$4 sm:$0xff]  }
   0xf   :  { %637 = vmatpush1.bf16.msra.mxu1 %v1106_v11  ;;  %v1144_v42 = vld [vmem:[%s1551_s0 + $0x68] ss:$16 sps:$4 sm:$0xff]   ;;  %v1148_v43 = vld [vmem:[%s1551_s0 + $0x8c] ss:$16 sps:$4 sm:$0xff]   ;;  %v1147_v44 = vld [vmem:[%s1551_s0 + $0x80] ss:$16 sps:$4 sm:$0xff]  }
  0x10   :  { %1020 = vmatpush3.bf16.msra.mxu0 %v1107_v12  ;;  %638 = vmatprep.subr.bf16.mxu1 %v1187_v0  ;;  %v1151_v45 = vld [vmem:[%s1551_s0 + $0xa4] ss:$16 sps:$4 sm:$0xff]   ;;  %v1150_v46 = vld [vmem:[%s1551_s0 + $0x88] ss:$16 sps:$4 sm:$0xff]   ;;  %v1154_v47 = vld [vmem:[%s1551_s0 + $0xac] ss:$16 sps:$4 sm:$0xff]  }
  0x11   :  { %1021 = vmatprep.subr.bf16.mxu0 %v1108_v13  ;;  %v1153_v48 = vld [vmem:[%s1551_s0 + $0xa0] ss:$16 sps:$4 sm:$0xff]   ;;  %v1157_v49 = vld [vmem:[%s1551_s0 + $0xc4] ss:$16 sps:$4 sm:$0xff]   ;;  %v1156_v50 = vld [vmem:[%s1551_s0 + $0xa8] ss:$16 sps:$4 sm:$0xff]  }
  0x12   :  { %v1160_v51 = vld [vmem:[%s1551_s0 + $0xcc] ss:$16 sps:$4 sm:$0xff]   ;;  %v1159_v52 = vld [vmem:[%s1551_s0 + $0xc0] ss:$16 sps:$4 sm:$0xff]   ;;  %v1163_v53 = vld [vmem:[%s1551_s0 + $0xe4] ss:$16 sps:$4 sm:$0xff]  }
  0x13   :  { %639 = vmatpush1.bf16.msra.mxu1 %v1109_v14  ;;  %v1162_v54 = vld [vmem:[%s1551_s0 + $0xc8] ss:$16 sps:$4 sm:$0xff]   ;;  %v1166_v55 = vld [vmem:[%s1551_s0 + $0xec] ss:$16 sps:$4 sm:$0xff]   ;;  %v1165_v56 = vld [vmem:[%s1551_s0 + $0xe0] ss:$16 sps:$4 sm:$0xff]  }
  0x14   :  { %1022 = vmatpush3.bf16.msra.mxu0 %v1110_v15  ;;  %640 = vmatprep.subr.bf16.mxu1 %v1187_v0  ;;  %v1169_v57 = vld [vmem:[%s1551_s0 + $0x104] ss:$16 sps:$4 sm:$0xff]   ;;  %v1168_v58 = vld [vmem:[%s1551_s0 + $0xe8] ss:$16 sps:$4 sm:$0xff]   ;;  %v1172_v59 = vld [vmem:[%s1551_s0 + $0x10c] ss:$16 sps:$4 sm:$0xff]  }
  0x15   :  { %1023 = vmatprep.subr.bf16.mxu0 %v1111_v16  ;;  %v1171_v60 = vld [vmem:[%s1551_s0 + $0x100] ss:$16 sps:$4 sm:$0xff]   ;;  %v1175_v61 = vld [vmem:[%s1551_s0 + $0x124] ss:$16 sps:$4 sm:$0xff]   ;;  %v1174_v62 = vld [vmem:[%s1551_s0 + $0x108] ss:$16 sps:$4 sm:$0xff]  }
  0x16   :  { %v1178_v63 = vld [vmem:[%s1551_s0 + $0x12c] ss:$16 sps:$4 sm:$0xff]   ;;  %v1181_v1 = vld [vmem:[%s1551_s0 + $0x144] ss:$16 sps:$4 sm:$0xff]   ;;  %v1180_v2 = vld [vmem:[%s1551_s0 + $0x128] ss:$16 sps:$4 sm:$0xff]  }
  0x17   :  { %641 = vmatpush1.bf16.msra.mxu1 %v1112_v17  ;;  %v1184_v3 = vld [vmem:[%s1551_s0 + $0x14c] ss:$16 sps:$4 sm:$0xff]   ;;  %v1183_v4 = vld [vmem:[%s1551_s0 + $0x140] ss:$16 sps:$4 sm:$0xff]   ;;  %v1186_v5 = vld [vmem:[%s1551_s0 + $0x148] ss:$16 sps:$4 sm:$0xff]  }
  0x18   :  { %1024 = vmatpush3.bf16.msra.mxu0 %v1113_v18  ;;  %642 = vmatprep.subr.bf16.mxu1 %v1187_v0  ;;  %v1438_v8 = vld [vmem:[%s1552_s2] ss:$0 sm:$0xff] }
  0x19   :  { %1025 = vmatprep.subr.bf16.mxu0 %v1114_v19 }
  0x1b   :  { %643 = vmatpush1.bf16.msra.mxu1 %v1115_v20 }
  0x1c   :  { %1026 = vmatpush3.bf16.msra.mxu0 %v1116_v21  ;;  %644 = vmatprep.subr.bf16.mxu1 %v1187_v0 }
  0x1d   :  { %1027 = vmatprep.subr.bf16.mxu0 %v1117_v22 }
  0x1f   :  { %645 = vmatpush1.bf16.msra.mxu1 %v1118_v24 }
  0x20   :  { %1028 = vmatpush3.bf16.msra.mxu0 %v1119_v26  ;;  %646 = vmatprep.subr.bf16.mxu1 %v1187_v0  ;;  %v1177_v0 = vld [vmem:[%s1551_s0 + $0x120] ss:$16 sps:$4 sm:$0xff]  }
  0x23   :  { %542 = vmatmul.mubr.bf16.vlgmr.msra.gmra.mrb[0].mxu0 %v1120_v27  ;;  %647 = vmatpush1.bf16.msra.mxu1 %v1123_v28 }
  0x24   :  { %549 = vmatprep.mubr.bf16.mxu0 %v1127_v29 }
  0x26   :  { %663 = vmatmul.mubr.bf16.vlgmr.msra.gmra.mrb[0].mxu1 %v1124_v30 }
  0x27   :  { %959 = vmatprep.mubr.msk.bf16.mxu1 %vm475_vm0, %v1130_v31 }
  0x2b   :  { %550 = vmatmul.mubr.bf16.gmra.mrb[4].mxu0 %v1129_v32 }
  0x2c   :  { %557 = vmatprep.mubr.bf16.mxu0 %v1133_v33 }
  0x2e   :  { %671 = vmatmul.mubr.bf16.gmra.mrb[4].mxu1 %v1132_v34 }
  0x2f   :  { %960 = vmatprep.mubr.msk.bf16.mxu1 %vm475_vm0, %v1136_v35 }
  0x33   :  { %558 = vmatmul.mubr.bf16.gmra.mrb[8].mxu0 %v1135_v36 }
  0x34   :  { %565 = vmatprep.mubr.bf16.mxu0 %v1139_v37 }
  0x36   :  { %679 = vmatmul.mubr.bf16.gmra.mrb[8].mxu1 %v1138_v38 }
  0x37   :  { %961 = vmatprep.mubr.msk.bf16.mxu1 %vm475_vm0, %v1142_v39 }
  0x3b   :  { %566 = vmatmul.mubr.bf16.gmra.mrb[12].mxu0 %v1141_v40 }
  0x3c   :  { %573 = vmatprep.mubr.bf16.mxu0 %v1145_v41 }
  0x3e   :  { %687 = vmatmul.mubr.bf16.gmra.mrb[12].mxu1 %v1144_v42 }
  0x3f   :  { %962 = vmatprep.mubr.msk.bf16.mxu1 %vm475_vm0, %v1148_v43 }
  0x43   :  { %574 = vmatmul.mubr.bf16.gmra.mrb[16].mxu0 %v1147_v44 }
  0x44   :  { %581 = vmatprep.mubr.bf16.mxu0 %v1151_v45 }
  0x46   :  { %695 = vmatmul.mubr.bf16.gmra.mrb[16].mxu1 %v1150_v46 }
  0x47   :  { %963 = vmatprep.mubr.msk.bf16.mxu1 %vm475_vm0, %v1154_v47 }
  0x4b   :  { %582 = vmatmul.mubr.bf16.gmra.mrb[20].mxu0 %v1153_v48 }
  0x4c   :  { %589 = vmatprep.mubr.bf16.mxu0 %v1157_v49 }
  0x4e   :  { %703 = vmatmul.mubr.bf16.gmra.mrb[20].mxu1 %v1156_v50 }
  0x4f   :  { %964 = vmatprep.mubr.msk.bf16.mxu1 %vm475_vm0, %v1160_v51 }
  0x53   :  { %590 = vmatmul.mubr.bf16.gmra.mrb[24].mxu0 %v1159_v52 }
  0x54   :  { %597 = vmatprep.mubr.bf16.mxu0 %v1163_v53 }
  0x56   :  { %711 = vmatmul.mubr.bf16.gmra.mrb[24].mxu1 %v1162_v54 }
  0x57   :  { %965 = vmatprep.mubr.msk.bf16.mxu1 %vm475_vm0, %v1166_v55 }
  0x5b   :  { %598 = vmatmul.mubr.bf16.gmra.mrb[28].mxu0 %v1165_v56 }
  0x5c   :  { %605 = vmatprep.mubr.bf16.mxu0 %v1169_v57 }
  0x5e   :  { %719 = vmatmul.mubr.bf16.gmra.mrb[28].mxu1 %v1168_v58 }
  0x5f   :  { %966 = vmatprep.mubr.msk.bf16.mxu1 %vm475_vm0, %v1172_v59 }
  0x63   :  { %606 = vmatmul.mubr.bf16.gmra.mrb[32].mxu0 %v1171_v60 }
  0x64   :  { %613 = vmatprep.mubr.bf16.mxu0 %v1175_v61 }
  0x66   :  { %727 = vmatmul.mubr.bf16.gmra.mrb[32].mxu1 %v1174_v62 }
  0x67   :  { %967 = vmatprep.mubr.msk.bf16.mxu1 %vm475_vm0, %v1178_v63 }
  0x6b   :  { %614 = vmatmul.mubr.bf16.gmra.mrb[36].mxu0 %v1177_v0 }
  0x6c   :  { %621 = vmatprep.mubr.bf16.mxu0 %v1181_v1 }
  0x6e   :  { %735 = vmatmul.mubr.bf16.gmra.mrb[36].mxu1 %v1180_v2 }
  0x6f   :  { %968 = vmatprep.mubr.msk.bf16.mxu1 %vm475_vm0, %v1184_v3 }
  0x73   :  { %622 = vmatmul.mubr.bf16.gmra.mrb[40].mxu0 %v1183_v4 }
  0x76   :  { %743 = vmatmul.mubr.bf16.gmra.mrb[40].mxu1 %v1186_v5 }
  0xf6   :  { %v1029_v6 = vpop.f32.mrb[0].mxu0 }
  0xf7   :  { %v1030_v7 = vpop.f32.mrb[1].mxu0 }
  0xf8   :  { %v1031_v9 = vadd.f32 %v1030_v7, %v1029_v6  ;;  %v1032_v10 = vpop.f32.mrb[2].mxu0 }
  0xf9   :  { %v1033_v11 = vpop.f32.mrb[3].mxu0  ;;  %v664_v12 = vpop.f32.mrb[0].mxu1 }
  0xfa   :  { %v1034_v13 = vadd.f32 %v1033_v11, %v1032_v10  ;;  %v544_v14 = vadd.f32 %v1031_v9, %v1438_v8  ;;  %v666_v15 = vpop.f32.mrb[1].mxu1 }
  0xfb   :  { %v667_v16 = vpop.f32.mrb[2].mxu1 }
  0xfc   :  { %v665_v17 = vadd.f32 %v664_v12, %v544_v14  ;;  %v547_v18 = vadd.f32 %v1034_v13, %v1438_v8  ;;  %v669_v19 = vpop.f32.mrb[3].mxu1 }
  0xfe   :  { %v751_v20 = vmax.f32 %v665_v17, 0.0  ;;  %v668_v21 = vadd.f32 %v667_v16, %v547_v18  ;;  %v1035_v22 = vpop.f32.mrb[4].mxu0 }
  0xff   :  { %v1036_v23 = vpop.f32.mrb[5].mxu0 }
 0x100   :  { %v991_v24 = vpack.c.bf16 %v751_v20, %v751_v20  ;;  %v752_v25 = vmax.f32 %v668_v21, 0.0  ;;  %v1037_v26 = vadd.f32 %v1036_v23, %v1035_v22  ;;  %v1038_v27 = vpop.f32.mrb[6].mxu0 }
 0x101   :  { %v1039_v28 = vpop.f32.mrb[7].mxu0  ;;  %v672_v29 = vpop.f32.mrb[4].mxu1 }
 0x102   :  { %862 = vst.msk [vmem:[%s1553_s3] sm:$0xf] %vm861_vm1, %v991_v24  ;;  %v992_v30 = vpack.c.bf16 %v752_v25, %v752_v25  ;;  %v1040_v31 = vadd.f32 %v1039_v28, %v1038_v27  ;;  %v552_v32 = vadd.f32 %v1037_v26, %v1438_v8  ;;  %v674_v33 = vpop.f32.mrb[5].mxu1 }
 0x103   :  { %v675_v34 = vpop.f32.mrb[6].mxu1 }
 0x104   :  { %863 = vst.msk [vmem:[%s1553_s3 + $0x4] sm:$0xf] %vm861_vm1, %v992_v30  ;;  %v673_v35 = vadd.f32 %v672_v29, %v552_v32  ;;  %v555_v36 = vadd.f32 %v1040_v31, %v1438_v8  ;;  %v677_v37 = vpop.f32.mrb[7].mxu1 }
 0x106   :  { %v753_v38 = vmax.f32 %v673_v35, 0.0  ;;  %v676_v39 = vadd.f32 %v675_v34, %v555_v36  ;;  %v1041_v40 = vpop.f32.mrb[8].mxu0 }
 0x107   :  { %v1042_v41 = vpop.f32.mrb[9].mxu0 }
 0x108   :  { %v993_v42 = vpack.c.bf16 %v753_v38, %v753_v38  ;;  %v754_v43 = vmax.f32 %v676_v39, 0.0  ;;  %v1043_v44 = vadd.f32 %v1042_v41, %v1041_v40  ;;  %v1044_v45 = vpop.f32.mrb[10].mxu0 }
 0x109   :  { %v1045_v46 = vpop.f32.mrb[11].mxu0  ;;  %v680_v47 = vpop.f32.mrb[8].mxu1 }
 0x10a   :  { %864 = vst.msk [vmem:[%s1553_s3 + $0x8] sm:$0xf] %vm861_vm1, %v993_v42  ;;  %v994_v48 = vpack.c.bf16 %v754_v43, %v754_v43  ;;  %v1046_v49 = vadd.f32 %v1045_v46, %v1044_v45  ;;  %v560_v50 = vadd.f32 %v1043_v44, %v1438_v8  ;;  %v682_v51 = vpop.f32.mrb[9].mxu1 }
 0x10b   :  { %v683_v52 = vpop.f32.mrb[10].mxu1 }
 0x10c   :  { %865 = vst.msk [vmem:[%s1553_s3 + $0xc] sm:$0xf] %vm861_vm1, %v994_v48  ;;  %v681_v53 = vadd.f32 %v680_v47, %v560_v50  ;;  %v563_v54 = vadd.f32 %v1046_v49, %v1438_v8  ;;  %v685_v55 = vpop.f32.mrb[11].mxu1 }
 0x10e   :  { %v755_v56 = vmax.f32 %v681_v53, 0.0  ;;  %v684_v57 = vadd.f32 %v683_v52, %v563_v54  ;;  %v1047_v58 = vpop.f32.mrb[12].mxu0 }
 0x10f   :  { %v1048_v59 = vpop.f32.mrb[13].mxu0 }
 0x110   :  { %v995_v60 = vpack.c.bf16 %v755_v56, %v755_v56  ;;  %v756_v61 = vmax.f32 %v684_v57, 0.0  ;;  %v1049_v62 = vadd.f32 %v1048_v59, %v1047_v58  ;;  %v1050_v63 = vpop.f32.mrb[14].mxu0 }
 0x111   :  { %v1051_v0 = vpop.f32.mrb[15].mxu0  ;;  %v688_v1 = vpop.f32.mrb[12].mxu1 }
 0x112   :  { %866 = vst.msk [vmem:[%s1553_s3 + $0x10] sm:$0xf] %vm861_vm1, %v995_v60  ;;  %v996_v2 = vpack.c.bf16 %v756_v61, %v756_v61  ;;  %v1052_v3 = vadd.f32 %v1051_v0, %v1050_v63  ;;  %v568_v4 = vadd.f32 %v1049_v62, %v1438_v8  ;;  %v690_v5 = vpop.f32.mrb[13].mxu1 }
 0x113   :  { %v691_v6 = vpop.f32.mrb[14].mxu1 }
 0x114   :  { %867 = vst.msk [vmem:[%s1553_s3 + $0x14] sm:$0xf] %vm861_vm1, %v996_v2  ;;  %v689_v7 = vadd.f32 %v688_v1, %v568_v4  ;;  %v571_v9 = vadd.f32 %v1052_v3, %v1438_v8  ;;  %v693_v10 = vpop.f32.mrb[15].mxu1 }
 0x116   :  { %v757_v11 = vmax.f32 %v689_v7, 0.0  ;;  %v692_v12 = vadd.f32 %v691_v6, %v571_v9  ;;  %v1053_v13 = vpop.f32.mrb[16].mxu0 }
 0x117   :  { %v1054_v14 = vpop.f32.mrb[17].mxu0 }
 0x118   :  { %v997_v15 = vpack.c.bf16 %v757_v11, %v757_v11  ;;  %v758_v16 = vmax.f32 %v692_v12, 0.0  ;;  %v1055_v17 = vadd.f32 %v1054_v14, %v1053_v13  ;;  %v1056_v18 = vpop.f32.mrb[18].mxu0 }
 0x119   :  { %v1057_v19 = vpop.f32.mrb[19].mxu0  ;;  %v696_v20 = vpop.f32.mrb[16].mxu1 }
 0x11a   :  { %868 = vst.msk [vmem:[%s1553_s3 + $0x18] sm:$0xf] %vm861_vm1, %v997_v15  ;;  %v998_v21 = vpack.c.bf16 %v758_v16, %v758_v16  ;;  %v1058_v22 = vadd.f32 %v1057_v19, %v1056_v18  ;;  %v576_v23 = vadd.f32 %v1055_v17, %v1438_v8  ;;  %v698_v24 = vpop.f32.mrb[17].mxu1 }
 0x11b   :  { %v699_v25 = vpop.f32.mrb[18].mxu1 }
 0x11c   :  { %869 = vst.msk [vmem:[%s1553_s3 + $0x1c] sm:$0xf] %vm861_vm1, %v998_v21  ;;  %v697_v26 = vadd.f32 %v696_v20, %v576_v23  ;;  %v579_v27 = vadd.f32 %v1058_v22, %v1438_v8  ;;  %v701_v28 = vpop.f32.mrb[19].mxu1 }
 0x11e   :  { %v759_v29 = vmax.f32 %v697_v26, 0.0  ;;  %v700_v30 = vadd.f32 %v699_v25, %v579_v27  ;;  %v1059_v31 = vpop.f32.mrb[20].mxu0 }
 0x11f   :  { %v1060_v32 = vpop.f32.mrb[21].mxu0 }
 0x120   :  { %v999_v33 = vpack.c.bf16 %v759_v29, %v759_v29  ;;  %v760_v34 = vmax.f32 %v700_v30, 0.0  ;;  %v1061_v35 = vadd.f32 %v1060_v32, %v1059_v31  ;;  %v1062_v36 = vpop.f32.mrb[22].mxu0 }
 0x121   :  { %v1063_v37 = vpop.f32.mrb[23].mxu0  ;;  %v704_v38 = vpop.f32.mrb[20].mxu1 }
 0x122   :  { %870 = vst.msk [vmem:[%s1553_s3 + $0x20] sm:$0xf] %vm861_vm1, %v999_v33  ;;  %v1000_v39 = vpack.c.bf16 %v760_v34, %v760_v34  ;;  %v1064_v40 = vadd.f32 %v1063_v37, %v1062_v36  ;;  %v584_v41 = vadd.f32 %v1061_v35, %v1438_v8  ;;  %v706_v42 = vpop.f32.mrb[21].mxu1 }
 0x123   :  { %v707_v43 = vpop.f32.mrb[22].mxu1 }
 0x124   :  { %871 = vst.msk [vmem:[%s1553_s3 + $0x24] sm:$0xf] %vm861_vm1, %v1000_v39  ;;  %v705_v44 = vadd.f32 %v704_v38, %v584_v41  ;;  %v587_v45 = vadd.f32 %v1064_v40, %v1438_v8  ;;  %v709_v46 = vpop.f32.mrb[23].mxu1 }
 0x126   :  { %v761_v47 = vmax.f32 %v705_v44, 0.0  ;;  %v708_v48 = vadd.f32 %v707_v43, %v587_v45  ;;  %v1065_v49 = vpop.f32.mrb[24].mxu0 }
 0x127   :  { %v1066_v50 = vpop.f32.mrb[25].mxu0 }
 0x128   :  { %v1001_v51 = vpack.c.bf16 %v761_v47, %v761_v47  ;;  %v762_v52 = vmax.f32 %v708_v48, 0.0  ;;  %v1067_v53 = vadd.f32 %v1066_v50, %v1065_v49  ;;  %v1068_v54 = vpop.f32.mrb[26].mxu0 }
 0x129   :  { %v1069_v55 = vpop.f32.mrb[27].mxu0  ;;  %v712_v56 = vpop.f32.mrb[24].mxu1 }
 0x12a   :  { %872 = vst.msk [vmem:[%s1553_s3 + $0x28] sm:$0xf] %vm861_vm1, %v1001_v51  ;;  %v1002_v57 = vpack.c.bf16 %v762_v52, %v762_v52  ;;  %v1070_v58 = vadd.f32 %v1069_v55, %v1068_v54  ;;  %v592_v59 = vadd.f32 %v1067_v53, %v1438_v8  ;;  %v714_v60 = vpop.f32.mrb[25].mxu1 }
 0x12b   :  { %v715_v61 = vpop.f32.mrb[26].mxu1 }
 0x12c   :  { %873 = vst.msk [vmem:[%s1553_s3 + $0x2c] sm:$0xf] %vm861_vm1, %v1002_v57  ;;  %v713_v62 = vadd.f32 %v712_v56, %v592_v59  ;;  %v595_v63 = vadd.f32 %v1070_v58, %v1438_v8  ;;  %v717_v0 = vpop.f32.mrb[27].mxu1 }
 0x12e   :  { %v763_v1 = vmax.f32 %v713_v62, 0.0  ;;  %v716_v2 = vadd.f32 %v715_v61, %v595_v63  ;;  %v1071_v3 = vpop.f32.mrb[28].mxu0 }
 0x12f   :  { %v1072_v4 = vpop.f32.mrb[29].mxu0 }
 0x130   :  { %v1003_v5 = vpack.c.bf16 %v763_v1, %v763_v1  ;;  %v764_v6 = vmax.f32 %v716_v2, 0.0  ;;  %v1073_v7 = vadd.f32 %v1072_v4, %v1071_v3  ;;  %v1074_v9 = vpop.f32.mrb[30].mxu0 }
 0x131   :  { %v1075_v10 = vpop.f32.mrb[31].mxu0  ;;  %v720_v11 = vpop.f32.mrb[28].mxu1 }
 0x132   :  { %874 = vst.msk [vmem:[%s1553_s3 + $0x30] sm:$0xf] %vm861_vm1, %v1003_v5  ;;  %v1004_v12 = vpack.c.bf16 %v764_v6, %v764_v6  ;;  %v1076_v13 = vadd.f32 %v1075_v10, %v1074_v9  ;;  %v600_v14 = vadd.f32 %v1073_v7, %v1438_v8  ;;  %v722_v15 = vpop.f32.mrb[29].mxu1 }
 0x133   :  { %v723_v16 = vpop.f32.mrb[30].mxu1 }
 0x134   :  { %875 = vst.msk [vmem:[%s1553_s3 + $0x34] sm:$0xf] %vm861_vm1, %v1004_v12  ;;  %v721_v17 = vadd.f32 %v720_v11, %v600_v14  ;;  %v603_v18 = vadd.f32 %v1076_v13, %v1438_v8  ;;  %v725_v19 = vpop.f32.mrb[31].mxu1 }
 0x136   :  { %v765_v20 = vmax.f32 %v721_v17, 0.0  ;;  %v724_v21 = vadd.f32 %v723_v16, %v603_v18  ;;  %v1077_v22 = vpop.f32.mrb[32].mxu0 }
 0x137   :  { %v1078_v23 = vpop.f32.mrb[33].mxu0 }
 0x138   :  { %v1005_v24 = vpack.c.bf16 %v765_v20, %v765_v20  ;;  %v766_v25 = vmax.f32 %v724_v21, 0.0  ;;  %v1079_v26 = vadd.f32 %v1078_v23, %v1077_v22  ;;  %v1080_v27 = vpop.f32.mrb[34].mxu0 }
 0x139   :  { %v1081_v28 = vpop.f32.mrb[35].mxu0  ;;  %v728_v29 = vpop.f32.mrb[32].mxu1 }
 0x13a   :  { %876 = vst.msk [vmem:[%s1553_s3 + $0x38] sm:$0xf] %vm861_vm1, %v1005_v24  ;;  %v1006_v30 = vpack.c.bf16 %v766_v25, %v766_v25  ;;  %v1082_v31 = vadd.f32 %v1081_v28, %v1080_v27  ;;  %v608_v32 = vadd.f32 %v1079_v26, %v1438_v8  ;;  %v730_v33 = vpop.f32.mrb[33].mxu1 }
 0x13b   :  { %v731_v34 = vpop.f32.mrb[34].mxu1 }
 0x13c   :  { %877 = vst.msk [vmem:[%s1553_s3 + $0x3c] sm:$0xf] %vm861_vm1, %v1006_v30  ;;  %v729_v35 = vadd.f32 %v728_v29, %v608_v32  ;;  %v611_v36 = vadd.f32 %v1082_v31, %v1438_v8  ;;  %v733_v37 = vpop.f32.mrb[35].mxu1 }
 0x13e   :  { %v767_v38 = vmax.f32 %v729_v35, 0.0  ;;  %v732_v39 = vadd.f32 %v731_v34, %v611_v36  ;;  %v1083_v40 = vpop.f32.mrb[36].mxu0 }
 0x13f   :  { %v1084_v41 = vpop.f32.mrb[37].mxu0 }
 0x140   :  { %v1007_v42 = vpack.c.bf16 %v767_v38, %v767_v38  ;;  %v768_v43 = vmax.f32 %v732_v39, 0.0  ;;  %v1085_v44 = vadd.f32 %v1084_v41, %v1083_v40  ;;  %v1086_v45 = vpop.f32.mrb[38].mxu0 }
 0x141   :  { %v1087_v46 = vpop.f32.mrb[39].mxu0  ;;  %v736_v47 = vpop.f32.mrb[36].mxu1 }
 0x142   :  { %878 = vst.msk [vmem:[%s1553_s3 + $0x40] sm:$0xf] %vm861_vm1, %v1007_v42  ;;  %v1008_v48 = vpack.c.bf16 %v768_v43, %v768_v43  ;;  %v1088_v49 = vadd.f32 %v1087_v46, %v1086_v45  ;;  %v616_v50 = vadd.f32 %v1085_v44, %v1438_v8  ;;  %v738_v51 = vpop.f32.mrb[37].mxu1 }
 0x143   :  { %v739_v52 = vpop.f32.mrb[38].mxu1 }
 0x144   :  { %879 = vst.msk [vmem:[%s1553_s3 + $0x44] sm:$0xf] %vm861_vm1, %v1008_v48  ;;  %v737_v53 = vadd.f32 %v736_v47, %v616_v50  ;;  %v619_v54 = vadd.f32 %v1088_v49, %v1438_v8  ;;  %v741_v55 = vpop.f32.mrb[39].mxu1 }
 0x146   :  { %v769_v56 = vmax.f32 %v737_v53, 0.0  ;;  %v740_v57 = vadd.f32 %v739_v52, %v619_v54  ;;  %v1089_v58 = vpop.f32.mrb[40].mxu0 }
 0x147   :  { %v1090_v59 = vpop.f32.mrb[41].mxu0 }
 0x148   :  { %v1009_v60 = vpack.c.bf16 %v769_v56, %v769_v56  ;;  %v770_v61 = vmax.f32 %v740_v57, 0.0  ;;  %v1091_v62 = vadd.f32 %v1090_v59, %v1089_v58  ;;  %v1092_v63 = vpop.f32.mrb[42].mxu0 }
 0x149   :  { %v1093_v0 = vpop.f32.mrb[43].mxu0  ;;  %v744_v1 = vpop.f32.mrb[40].mxu1 }
 0x14a   :  { %880 = vst.msk [vmem:[%s1553_s3 + $0x48] sm:$0xf] %vm861_vm1, %v1009_v60  ;;  %v1010_v2 = vpack.c.bf16 %v770_v61, %v770_v61  ;;  %v1094_v3 = vadd.f32 %v1093_v0, %v1092_v63  ;;  %v624_v4 = vadd.f32 %v1091_v62, %v1438_v8  ;;  %v746_v5 = vpop.f32.mrb[41].mxu1 }
 0x14b   :  { %v747_v6 = vpop.f32.mrb[42].mxu1 }
 0x14c   :  { %881 = vst.msk [vmem:[%s1553_s3 + $0x4c] sm:$0xf] %vm861_vm1, %v1010_v2  ;;  %v745_v7 = vadd.f32 %v744_v1, %v624_v4  ;;  %v627_v9 = vadd.f32 %v1094_v3, %v1438_v8  ;;  %v749_v10 = vpop.f32.mrb[43].mxu1 }
 0x14e   :  { %v771_v11 = vmax.f32 %v745_v7, 0.0  ;;  %v748_v12 = vadd.f32 %v747_v6, %v627_v9 }
 0x150   :  { %v1011_v13 = vpack.c.bf16 %v771_v11, %v771_v11  ;;  %v772_v14 = vmax.f32 %v748_v12, 0.0 }
 0x152   :  { %882 = vst.msk [vmem:[%s1553_s3 + $0x50] sm:$0xf] %vm861_vm1, %v1011_v13  ;;  %v1012_v15 = vpack.c.bf16 %v772_v14, %v772_v14 }
 0x154   :  { %883 = vst.msk [vmem:[%s1553_s3 + $0x54] sm:$0xf] %vm861_vm1, %v1012_v15 }

// kernel: cnn_network4_forward.6
= control target key start
LH: loop header
LB: loop body
LE: loop exit
PB: predicated region body
PF: predicated region fallthrough
CT: control target
= control target key end

     0   :  { %v1102_v1 = vmov 0.0   ;;  %vm1103_vm0 = vmmov 0   ;;  %vm375_vm1 = vcmask 261120   ;;  %vm761_vm2 = vcmask 519168   ;;  %s1427_s1 = inlined_call_operand.vmem [shape: bf16[288,64], index: 1, kind: input, shape index: {}]   ;;  %s1428_s0 = inlined_call_operand.vmem [shape: bf16[176,288], index: 0, kind: input, shape index: {}]   ;;  %s1429_s2 = inlined_call_operand.vmem [shape: f32[1,64], index: 2, kind: input, shape index: {}]   ;;  %s1430_s3 = inlined_call_operand.vmem [shape: bf16[176,64], index: 3, kind: output, shape index: {}]  }
   0x1   :  { %v1040_v0 = vld [vmem:[%s1427_s1 + $0x40] sm:$0xff]   ;;  %990 = vmatprep.subr.bf16.mxu1 %v1102_v1  ;;  %994 = vmatprep.mubr.msk.bf16.mxu1 %vm1103_vm0, %v1102_v1  ;;  %v1042_v3 = vld [vmem:[%s1427_s1 + $0x48] sm:$0xff]   ;;  %v1044_v5 = vld [vmem:[%s1427_s1 + $0x50] sm:$0xff]  }
   0x2   :  { %v1041_v2 = vld [vmem:[%s1427_s1] sm:$0xff]   ;;  %895 = vmatprep.subr.bf16.mxu0 %v1040_v0  ;;  %v1043_v4 = vld [vmem:[%s1427_s1 + $0x8] sm:$0xff]   ;;  %v1045_v6 = vld [vmem:[%s1427_s1 + $0x10] sm:$0xff]  }
   0x3   :  { %896 = vmatpush3.bf16.msra.mxu0 %v1041_v2  ;;  %v1046_v7 = vld [vmem:[%s1427_s1 + $0x58] sm:$0xff]   ;;  %v1048_v9 = vld [vmem:[%s1427_s1 + $0x60] sm:$0xff]   ;;  %v1050_v12 = vld [vmem:[%s1427_s1 + $0x68] sm:$0xff]  }
   0x4   :  { %897 = vmatprep.subr.bf16.mxu0 %v1042_v3  ;;  %v1047_v8 = vld [vmem:[%s1427_s1 + $0x18] sm:$0xff]   ;;  %v1054_v10 = vld [vmem:[%s1427_s1 + $0x80] sm:$0xff]   ;;  %v1051_v13 = vld [vmem:[%s1427_s1 + $0x28] sm:$0xff]  }
   0x5   :  { %v1049_v11 = vld [vmem:[%s1427_s1 + $0x20] sm:$0xff]   ;;  %991 = vmatpush3.bf16.msra.mxu1 %v1054_v10  ;;  %v1052_v14 = vld [vmem:[%s1427_s1 + $0x70] sm:$0xff]   ;;  %v1060_v16 = vld [vmem:[%s1427_s1 + $0x88] sm:$0xff]  }
   0x6   :  { %992 = vmatprep.subr.bf16.mxu1 %v1102_v1  ;;  %v1059_v15 = vld [vmem:[%s1428_s0 + $0x4] ss:$12 sps:$4 sm:$0xff]   ;;  %v1061_v17 = vld [vmem:[%s1428_s0 + $0x8] ss:$12 sps:$4 sm:$0xff]   ;;  %v1055_v19 = vld [vmem:[%s1427_s1 + $0x78] sm:$0xff]  }
   0x7   :  { %898 = vmatpush3.bf16.msra.mxu0 %v1043_v4  ;;  %441 = vmatprep.mubr.bf16.mxu0 %v1059_v15  ;;  %v1053_v18 = vld [vmem:[%s1427_s1 + $0x30] sm:$0xff]   ;;  %v1056_v20 = vld [vmem:[%s1427_s1 + $0x38] sm:$0xff]   ;;  %v1065_v21 = vld [vmem:[%s1428_s0 + $0x20] ss:$12 sps:$4 sm:$0xff]  }
   0x8   :  { %899 = vmatprep.subr.bf16.mxu0 %v1044_v5  ;;  %v1057_v22 = vld [vmem:[%s1428_s0] ss:$12 sps:$4 sm:$0xff]   ;;  %v1062_v23 = vld [vmem:[%s1428_s0 + $0x1c] ss:$12 sps:$4 sm:$0xff]   ;;  %v1069_v24 = vld [vmem:[%s1428_s0 + $0x38] ss:$12 sps:$4 sm:$0xff]  }
   0x9   :  { %993 = vmatpush3.bf16.msra.mxu1 %v1060_v16  ;;  %v1064_v25 = vld [vmem:[%s1428_s0 + $0x18] ss:$12 sps:$4 sm:$0xff]   ;;  %v1066_v26 = vld [vmem:[%s1428_s0 + $0x34] ss:$12 sps:$4 sm:$0xff]   ;;  %v1073_v27 = vld [vmem:[%s1428_s0 + $0x50] ss:$12 sps:$4 sm:$0xff]  }
   0xa   :  { %v1068_v28 = vld [vmem:[%s1428_s0 + $0x30] ss:$12 sps:$4 sm:$0xff]   ;;  %v1070_v29 = vld [vmem:[%s1428_s0 + $0x4c] ss:$12 sps:$4 sm:$0xff]   ;;  %v1077_v30 = vld [vmem:[%s1428_s0 + $0x68] ss:$12 sps:$4 sm:$0xff]  }
   0xb   :  { %900 = vmatpush3.bf16.msra.mxu0 %v1045_v6  ;;  %v1072_v31 = vld [vmem:[%s1428_s0 + $0x48] ss:$12 sps:$4 sm:$0xff]   ;;  %v1074_v32 = vld [vmem:[%s1428_s0 + $0x64] ss:$12 sps:$4 sm:$0xff]   ;;  %v1081_v33 = vld [vmem:[%s1428_s0 + $0x80] ss:$12 sps:$4 sm:$0xff]  }
   0xc   :  { %901 = vmatprep.subr.bf16.mxu0 %v1046_v7  ;;  %995 = vmatmul.mubr.msk.bf16.vlgmr.msra.gmra.mrb[0].mxu1 %vm375_vm1, %v1061_v17  ;;  %v1076_v34 = vld [vmem:[%s1428_s0 + $0x60] ss:$12 sps:$4 sm:$0xff]   ;;  %v1078_v35 = vld [vmem:[%s1428_s0 + $0x7c] ss:$12 sps:$4 sm:$0xff]   ;;  %v1085_v36 = vld [vmem:[%s1428_s0 + $0x98] ss:$12 sps:$4 sm:$0xff]  }
   0xd   :  { %998 = vmatprep.mubr.msk.bf16.mxu1 %vm1103_vm0, %v1102_v1  ;;  %v1080_v37 = vld [vmem:[%s1428_s0 + $0x78] ss:$12 sps:$4 sm:$0xff]   ;;  %v1082_v38 = vld [vmem:[%s1428_s0 + $0x94] ss:$12 sps:$4 sm:$0xff]   ;;  %v1089_v39 = vld [vmem:[%s1428_s0 + $0xb0] ss:$12 sps:$4 sm:$0xff]  }
   0xe   :  { %v1084_v40 = vld [vmem:[%s1428_s0 + $0x90] ss:$12 sps:$4 sm:$0xff]   ;;  %v1086_v41 = vld [vmem:[%s1428_s0 + $0xac] ss:$12 sps:$4 sm:$0xff]   ;;  %v1093_v42 = vld [vmem:[%s1428_s0 + $0xc8] ss:$12 sps:$4 sm:$0xff]  }
   0xf   :  { %902 = vmatpush3.bf16.msra.mxu0 %v1047_v8  ;;  %v1088_v43 = vld [vmem:[%s1428_s0 + $0xa8] ss:$12 sps:$4 sm:$0xff]   ;;  %v1090_v44 = vld [vmem:[%s1428_s0 + $0xc4] ss:$12 sps:$4 sm:$0xff]   ;;  %v1097_v45 = vld [vmem:[%s1428_s0 + $0xe0] ss:$12 sps:$4 sm:$0xff]  }
  0x10   :  { %903 = vmatprep.subr.bf16.mxu0 %v1048_v9  ;;  %v1092_v46 = vld [vmem:[%s1428_s0 + $0xc0] ss:$12 sps:$4 sm:$0xff]   ;;  %v1094_v47 = vld [vmem:[%s1428_s0 + $0xdc] ss:$12 sps:$4 sm:$0xff]   ;;  %v1101_v48 = vld [vmem:[%s1428_s0 + $0xf8] ss:$12 sps:$4 sm:$0xff]  }
  0x11   :  { %v1096_v49 = vld [vmem:[%s1428_s0 + $0xd8] ss:$12 sps:$4 sm:$0xff]   ;;  %v1098_v50 = vld [vmem:[%s1428_s0 + $0xf4] ss:$12 sps:$4 sm:$0xff]   ;;  %v1100_v51 = vld [vmem:[%s1428_s0 + $0xf0] ss:$12 sps:$4 sm:$0xff]  }
  0x12   :  { %v1315_v61 = vld [vmem:[%s1429_s2] ss:$0 sm:$0xff] }
  0x13   :  { %904 = vmatpush3.bf16.msra.mxu0 %v1049_v11 }
  0x14   :  { %905 = vmatprep.subr.bf16.mxu0 %v1050_v12  ;;  %999 = vmatmul.mubr.msk.bf16.gmra.mrb[4].mxu1 %vm375_vm1, %v1065_v21 }
  0x15   :  { %1002 = vmatprep.mubr.msk.bf16.mxu1 %vm1103_vm0, %v1102_v1 }
  0x17   :  { %906 = vmatpush3.bf16.msra.mxu0 %v1051_v13 }
  0x18   :  { %907 = vmatprep.subr.bf16.mxu0 %v1052_v14 }
  0x1b   :  { %908 = vmatpush3.bf16.msra.mxu0 %v1053_v18 }
  0x1c   :  { %909 = vmatprep.subr.bf16.mxu0 %v1055_v19  ;;  %1003 = vmatmul.mubr.msk.bf16.gmra.mrb[8].mxu1 %vm375_vm1, %v1069_v24 }
  0x1d   :  { %1006 = vmatprep.mubr.msk.bf16.mxu1 %vm1103_vm0, %v1102_v1 }
  0x1f   :  { %910 = vmatpush3.bf16.msra.mxu0 %v1056_v20 }
  0x22   :  { %442 = vmatmul.mubr.bf16.vlgmr.msra.gmra.mrb[0].mxu0 %v1057_v22 }
  0x23   :  { %449 = vmatprep.mubr.bf16.mxu0 %v1062_v23 }
  0x24   :  { %1007 = vmatmul.mubr.msk.bf16.gmra.mrb[12].mxu1 %vm375_vm1, %v1073_v27 }
  0x25   :  { %1010 = vmatprep.mubr.msk.bf16.mxu1 %vm1103_vm0, %v1102_v1 }
  0x2a   :  { %450 = vmatmul.mubr.bf16.gmra.mrb[4].mxu0 %v1064_v25 }
  0x2b   :  { %457 = vmatprep.mubr.bf16.mxu0 %v1066_v26 }
  0x2c   :  { %1011 = vmatmul.mubr.msk.bf16.gmra.mrb[16].mxu1 %vm375_vm1, %v1077_v30 }
  0x2d   :  { %1014 = vmatprep.mubr.msk.bf16.mxu1 %vm1103_vm0, %v1102_v1 }
  0x32   :  { %458 = vmatmul.mubr.bf16.gmra.mrb[8].mxu0 %v1068_v28 }
  0x33   :  { %465 = vmatprep.mubr.bf16.mxu0 %v1070_v29 }
  0x34   :  { %1015 = vmatmul.mubr.msk.bf16.gmra.mrb[20].mxu1 %vm375_vm1, %v1081_v33 }
  0x35   :  { %1018 = vmatprep.mubr.msk.bf16.mxu1 %vm1103_vm0, %v1102_v1 }
  0x3a   :  { %466 = vmatmul.mubr.bf16.gmra.mrb[12].mxu0 %v1072_v31 }
  0x3b   :  { %473 = vmatprep.mubr.bf16.mxu0 %v1074_v32 }
  0x3c   :  { %1019 = vmatmul.mubr.msk.bf16.gmra.mrb[24].mxu1 %vm375_vm1, %v1085_v36 }
  0x3d   :  { %1022 = vmatprep.mubr.msk.bf16.mxu1 %vm1103_vm0, %v1102_v1 }
  0x42   :  { %474 = vmatmul.mubr.bf16.gmra.mrb[16].mxu0 %v1076_v34 }
  0x43   :  { %481 = vmatprep.mubr.bf16.mxu0 %v1078_v35 }
  0x44   :  { %1023 = vmatmul.mubr.msk.bf16.gmra.mrb[28].mxu1 %vm375_vm1, %v1089_v39 }
  0x45   :  { %1026 = vmatprep.mubr.msk.bf16.mxu1 %vm1103_vm0, %v1102_v1 }
  0x4a   :  { %482 = vmatmul.mubr.bf16.gmra.mrb[20].mxu0 %v1080_v37 }
  0x4b   :  { %489 = vmatprep.mubr.bf16.mxu0 %v1082_v38 }
  0x4c   :  { %1027 = vmatmul.mubr.msk.bf16.gmra.mrb[32].mxu1 %vm375_vm1, %v1093_v42 }
  0x4d   :  { %1030 = vmatprep.mubr.msk.bf16.mxu1 %vm1103_vm0, %v1102_v1 }
  0x52   :  { %490 = vmatmul.mubr.bf16.gmra.mrb[24].mxu0 %v1084_v40 }
  0x53   :  { %497 = vmatprep.mubr.bf16.mxu0 %v1086_v41 }
  0x54   :  { %1031 = vmatmul.mubr.msk.bf16.gmra.mrb[36].mxu1 %vm375_vm1, %v1097_v45 }
  0x55   :  { %1034 = vmatprep.mubr.msk.bf16.mxu1 %vm1103_vm0, %v1102_v1 }
  0x5a   :  { %498 = vmatmul.mubr.bf16.gmra.mrb[28].mxu0 %v1088_v43 }
  0x5b   :  { %505 = vmatprep.mubr.bf16.mxu0 %v1090_v44 }
  0x5c   :  { %1035 = vmatmul.mubr.msk.bf16.gmra.mrb[40].mxu1 %vm375_vm1, %v1101_v48 }
  0x62   :  { %506 = vmatmul.mubr.bf16.gmra.mrb[32].mxu0 %v1092_v46 }
  0x63   :  { %513 = vmatprep.mubr.bf16.mxu0 %v1094_v47 }
  0x6a   :  { %514 = vmatmul.mubr.bf16.gmra.mrb[36].mxu0 %v1096_v49 }
  0x6b   :  { %521 = vmatprep.mubr.bf16.mxu0 %v1098_v50 }
  0x72   :  { %522 = vmatmul.mubr.bf16.gmra.mrb[40].mxu0 %v1100_v51 }
  0xdf   :  { %v564_v52 = vpop.f32.mrb[0].mxu1 }
  0xe0   :  { %v996_v53 = vpop.f32.mrb[1].mxu1 }
  0xe1   :  { %v567_v54 = vpop.f32.mrb[2].mxu1 }
  0xe2   :  { %v997_v55 = vpop.f32.mrb[3].mxu1 }
  0xe7   :  { %v572_v56 = vpop.f32.mrb[4].mxu1 }
  0xe8   :  { %v1000_v57 = vpop.f32.mrb[5].mxu1 }
  0xe9   :  { %v575_v59 = vpop.f32.mrb[6].mxu1 }
  0xea   :  { %v1001_v62 = vpop.f32.mrb[7].mxu1 }
  0xef   :  { %v580_v6 = vpop.f32.mrb[8].mxu1 }
  0xf0   :  { %v1004_v7 = vpop.f32.mrb[9].mxu1 }
  0xf1   :  { %v583_v11 = vpop.f32.mrb[10].mxu1 }
  0xf2   :  { %v1005_v13 = vpop.f32.mrb[11].mxu1 }
  0xf5   :  { %v911_v58 = vpop.f32.mrb[0].mxu0 }
  0xf6   :  { %v912_v60 = vpop.f32.mrb[1].mxu0 }
  0xf7   :  { %v913_v63 = vadd.f32 %v912_v60, %v911_v58  ;;  %v914_v0 = vpop.f32.mrb[2].mxu0  ;;  %v588_v24 = vpop.f32.mrb[12].mxu1 }
  0xf8   :  { %v915_v1 = vpop.f32.mrb[3].mxu0  ;;  %v1008_v25 = vpop.f32.mrb[13].mxu1 }
  0xf9   :  { %v444_v2 = vadd.f32 %v913_v63, %v1315_v61  ;;  %v916_v3 = vadd.f32 %v915_v1, %v914_v0  ;;  %v591_v29 = vpop.f32.mrb[14].mxu1 }
  0xfa   :  { %v1009_v31 = vpop.f32.mrb[15].mxu1 }
  0xfb   :  { %v565_v4 = vadd.f32 %v564_v52, %v444_v2  ;;  %v447_v5 = vadd.f32 %v916_v3, %v1315_v61 }
  0xfd   :  { %v651_v8 = vmax.f32 %v565_v4, 0.0  ;;  %v568_v9 = vadd.f32 %v567_v54, %v447_v5  ;;  %v917_v10 = vpop.f32.mrb[4].mxu0 }
  0xfe   :  { %v918_v12 = vpop.f32.mrb[5].mxu0 }
  0xff   :  { %v873_v14 = vpack.c.bf16 %v651_v8, %v651_v8  ;;  %v652_v15 = vmax.f32 %v568_v9, 0.0  ;;  %v919_v16 = vadd.f32 %v918_v12, %v917_v10  ;;  %v920_v17 = vpop.f32.mrb[6].mxu0  ;;  %v596_v42 = vpop.f32.mrb[16].mxu1 }
 0x100   :  { %v921_v18 = vpop.f32.mrb[7].mxu0  ;;  %v1012_v43 = vpop.f32.mrb[17].mxu1 }
 0x101   :  { %762 = vst.msk [vmem:[%s1430_s3] sm:$0xf] %vm761_vm2, %v873_v14  ;;  %v874_v19 = vpack.c.bf16 %v652_v15, %v652_v15  ;;  %v452_v20 = vadd.f32 %v919_v16, %v1315_v61  ;;  %v922_v21 = vadd.f32 %v921_v18, %v920_v17  ;;  %v599_v47 = vpop.f32.mrb[18].mxu1 }
 0x102   :  { %v1013_v49 = vpop.f32.mrb[19].mxu1 }
 0x103   :  { %763 = vst.msk [vmem:[%s1430_s3 + $0x4] sm:$0xf] %vm761_vm2, %v874_v19  ;;  %v573_v22 = vadd.f32 %v572_v56, %v452_v20  ;;  %v455_v23 = vadd.f32 %v922_v21, %v1315_v61 }
 0x105   :  { %v653_v26 = vmax.f32 %v573_v22, 0.0  ;;  %v576_v27 = vadd.f32 %v575_v59, %v455_v23  ;;  %v923_v28 = vpop.f32.mrb[8].mxu0 }
 0x106   :  { %v924_v30 = vpop.f32.mrb[9].mxu0 }
 0x107   :  { %v875_v32 = vpack.c.bf16 %v653_v26, %v653_v26  ;;  %v654_v33 = vmax.f32 %v576_v27, 0.0  ;;  %v925_v34 = vadd.f32 %v924_v30, %v923_v28  ;;  %v926_v35 = vpop.f32.mrb[10].mxu0  ;;  %v604_v60 = vpop.f32.mrb[20].mxu1 }
 0x108   :  { %v927_v36 = vpop.f32.mrb[11].mxu0  ;;  %v1016_v62 = vpop.f32.mrb[21].mxu1 }
 0x109   :  { %764 = vst.msk [vmem:[%s1430_s3 + $0x8] sm:$0xf] %vm761_vm2, %v875_v32  ;;  %v876_v37 = vpack.c.bf16 %v654_v33, %v654_v33  ;;  %v460_v38 = vadd.f32 %v925_v34, %v1315_v61  ;;  %v928_v39 = vadd.f32 %v927_v36, %v926_v35  ;;  %v607_v2 = vpop.f32.mrb[22].mxu1 }
 0x10a   :  { %v1017_v4 = vpop.f32.mrb[23].mxu1 }
 0x10b   :  { %765 = vst.msk [vmem:[%s1430_s3 + $0xc] sm:$0xf] %vm761_vm2, %v876_v37  ;;  %v581_v40 = vadd.f32 %v580_v6, %v460_v38  ;;  %v463_v41 = vadd.f32 %v928_v39, %v1315_v61 }
 0x10d   :  { %v655_v44 = vmax.f32 %v581_v40, 0.0  ;;  %v584_v45 = vadd.f32 %v583_v11, %v463_v41  ;;  %v929_v46 = vpop.f32.mrb[12].mxu0 }
 0x10e   :  { %v930_v48 = vpop.f32.mrb[13].mxu0 }
 0x10f   :  { %v877_v50 = vpack.c.bf16 %v655_v44, %v655_v44  ;;  %v656_v51 = vmax.f32 %v584_v45, 0.0  ;;  %v931_v52 = vadd.f32 %v930_v48, %v929_v46  ;;  %v932_v53 = vpop.f32.mrb[14].mxu0  ;;  %v612_v15 = vpop.f32.mrb[24].mxu1 }
 0x110   :  { %v933_v54 = vpop.f32.mrb[15].mxu0  ;;  %v1020_v16 = vpop.f32.mrb[25].mxu1 }
 0x111   :  { %766 = vst.msk [vmem:[%s1430_s3 + $0x10] sm:$0xf] %vm761_vm2, %v877_v50  ;;  %v878_v55 = vpack.c.bf16 %v656_v51, %v656_v51  ;;  %v468_v56 = vadd.f32 %v931_v52, %v1315_v61  ;;  %v934_v57 = vadd.f32 %v933_v54, %v932_v53  ;;  %v615_v20 = vpop.f32.mrb[26].mxu1 }
 0x112   :  { %v1021_v22 = vpop.f32.mrb[27].mxu1 }
 0x113   :  { %767 = vst.msk [vmem:[%s1430_s3 + $0x14] sm:$0xf] %vm761_vm2, %v878_v55  ;;  %v589_v58 = vadd.f32 %v588_v24, %v468_v56  ;;  %v471_v59 = vadd.f32 %v934_v57, %v1315_v61 }
 0x115   :  { %v657_v63 = vmax.f32 %v589_v58, 0.0  ;;  %v592_v0 = vadd.f32 %v591_v29, %v471_v59  ;;  %v935_v1 = vpop.f32.mrb[16].mxu0 }
 0x116   :  { %v936_v3 = vpop.f32.mrb[17].mxu0 }
 0x117   :  { %v879_v5 = vpack.c.bf16 %v657_v63, %v657_v63  ;;  %v658_v6 = vmax.f32 %v592_v0, 0.0  ;;  %v937_v7 = vadd.f32 %v936_v3, %v935_v1  ;;  %v938_v8 = vpop.f32.mrb[18].mxu0  ;;  %v620_v33 = vpop.f32.mrb[28].mxu1 }
 0x118   :  { %v939_v9 = vpop.f32.mrb[19].mxu0  ;;  %v1024_v34 = vpop.f32.mrb[29].mxu1 }
 0x119   :  { %768 = vst.msk [vmem:[%s1430_s3 + $0x18] sm:$0xf] %vm761_vm2, %v879_v5  ;;  %v880_v10 = vpack.c.bf16 %v658_v6, %v658_v6  ;;  %v476_v11 = vadd.f32 %v937_v7, %v1315_v61  ;;  %v940_v12 = vadd.f32 %v939_v9, %v938_v8  ;;  %v623_v38 = vpop.f32.mrb[30].mxu1 }
 0x11a   :  { %v1025_v40 = vpop.f32.mrb[31].mxu1 }
 0x11b   :  { %769 = vst.msk [vmem:[%s1430_s3 + $0x1c] sm:$0xf] %vm761_vm2, %v880_v10  ;;  %v597_v13 = vadd.f32 %v596_v42, %v476_v11  ;;  %v479_v14 = vadd.f32 %v940_v12, %v1315_v61 }
 0x11d   :  { %v659_v17 = vmax.f32 %v597_v13, 0.0  ;;  %v600_v18 = vadd.f32 %v599_v47, %v479_v14  ;;  %v941_v19 = vpop.f32.mrb[20].mxu0 }
 0x11e   :  { %v942_v21 = vpop.f32.mrb[21].mxu0 }
 0x11f   :  { %v881_v23 = vpack.c.bf16 %v659_v17, %v659_v17  ;;  %v660_v24 = vmax.f32 %v600_v18, 0.0  ;;  %v943_v25 = vadd.f32 %v942_v21, %v941_v19  ;;  %v944_v26 = vpop.f32.mrb[22].mxu0  ;;  %v628_v51 = vpop.f32.mrb[32].mxu1 }
 0x120   :  { %v945_v27 = vpop.f32.mrb[23].mxu0  ;;  %v1028_v52 = vpop.f32.mrb[33].mxu1 }
 0x121   :  { %770 = vst.msk [vmem:[%s1430_s3 + $0x20] sm:$0xf] %vm761_vm2, %v881_v23  ;;  %v882_v28 = vpack.c.bf16 %v660_v24, %v660_v24  ;;  %v484_v29 = vadd.f32 %v943_v25, %v1315_v61  ;;  %v946_v30 = vadd.f32 %v945_v27, %v944_v26  ;;  %v631_v56 = vpop.f32.mrb[34].mxu1 }
 0x122   :  { %v1029_v58 = vpop.f32.mrb[35].mxu1 }
 0x123   :  { %771 = vst.msk [vmem:[%s1430_s3 + $0x24] sm:$0xf] %vm761_vm2, %v882_v28  ;;  %v605_v31 = vadd.f32 %v604_v60, %v484_v29  ;;  %v487_v32 = vadd.f32 %v946_v30, %v1315_v61 }
 0x125   :  { %v661_v35 = vmax.f32 %v605_v31, 0.0  ;;  %v608_v36 = vadd.f32 %v607_v2, %v487_v32  ;;  %v947_v37 = vpop.f32.mrb[24].mxu0 }
 0x126   :  { %v948_v39 = vpop.f32.mrb[25].mxu0 }
 0x127   :  { %v883_v41 = vpack.c.bf16 %v661_v35, %v661_v35  ;;  %v662_v42 = vmax.f32 %v608_v36, 0.0  ;;  %v949_v43 = vadd.f32 %v948_v39, %v947_v37  ;;  %v950_v44 = vpop.f32.mrb[26].mxu0  ;;  %v636_v6 = vpop.f32.mrb[36].mxu1 }
 0x128   :  { %v951_v45 = vpop.f32.mrb[27].mxu0  ;;  %v1032_v7 = vpop.f32.mrb[37].mxu1 }
 0x129   :  { %772 = vst.msk [vmem:[%s1430_s3 + $0x28] sm:$0xf] %vm761_vm2, %v883_v41  ;;  %v884_v46 = vpack.c.bf16 %v662_v42, %v662_v42  ;;  %v492_v47 = vadd.f32 %v949_v43, %v1315_v61  ;;  %v952_v48 = vadd.f32 %v951_v45, %v950_v44  ;;  %v639_v11 = vpop.f32.mrb[38].mxu1 }
 0x12a   :  { %v1033_v13 = vpop.f32.mrb[39].mxu1 }
 0x12b   :  { %773 = vst.msk [vmem:[%s1430_s3 + $0x2c] sm:$0xf] %vm761_vm2, %v884_v46  ;;  %v613_v49 = vadd.f32 %v612_v15, %v492_v47  ;;  %v495_v50 = vadd.f32 %v952_v48, %v1315_v61 }
 0x12d   :  { %v663_v53 = vmax.f32 %v613_v49, 0.0  ;;  %v616_v54 = vadd.f32 %v615_v20, %v495_v50  ;;  %v953_v55 = vpop.f32.mrb[28].mxu0 }
 0x12e   :  { %v954_v57 = vpop.f32.mrb[29].mxu0 }
 0x12f   :  { %v885_v59 = vpack.c.bf16 %v663_v53, %v663_v53  ;;  %v664_v60 = vmax.f32 %v616_v54, 0.0  ;;  %v955_v62 = vadd.f32 %v954_v57, %v953_v55  ;;  %v956_v63 = vpop.f32.mrb[30].mxu0  ;;  %v644_v24 = vpop.f32.mrb[40].mxu1 }
 0x130   :  { %v957_v0 = vpop.f32.mrb[31].mxu0  ;;  %v1036_v25 = vpop.f32.mrb[41].mxu1 }
 0x131   :  { %774 = vst.msk [vmem:[%s1430_s3 + $0x30] sm:$0xf] %vm761_vm2, %v885_v59  ;;  %v886_v1 = vpack.c.bf16 %v664_v60, %v664_v60  ;;  %v500_v2 = vadd.f32 %v955_v62, %v1315_v61  ;;  %v958_v3 = vadd.f32 %v957_v0, %v956_v63  ;;  %v647_v29 = vpop.f32.mrb[42].mxu1 }
 0x132   :  { %v1037_v31 = vpop.f32.mrb[43].mxu1 }
 0x133   :  { %775 = vst.msk [vmem:[%s1430_s3 + $0x34] sm:$0xf] %vm761_vm2, %v886_v1  ;;  %v621_v4 = vadd.f32 %v620_v33, %v500_v2  ;;  %v503_v5 = vadd.f32 %v958_v3, %v1315_v61 }
 0x135   :  { %v665_v8 = vmax.f32 %v621_v4, 0.0  ;;  %v624_v9 = vadd.f32 %v623_v38, %v503_v5  ;;  %v959_v10 = vpop.f32.mrb[32].mxu0 }
 0x136   :  { %v960_v12 = vpop.f32.mrb[33].mxu0 }
 0x137   :  { %v887_v14 = vpack.c.bf16 %v665_v8, %v665_v8  ;;  %v666_v15 = vmax.f32 %v624_v9, 0.0  ;;  %v961_v16 = vadd.f32 %v960_v12, %v959_v10  ;;  %v962_v17 = vpop.f32.mrb[34].mxu0 }
 0x138   :  { %v963_v18 = vpop.f32.mrb[35].mxu0 }
 0x139   :  { %776 = vst.msk [vmem:[%s1430_s3 + $0x38] sm:$0xf] %vm761_vm2, %v887_v14  ;;  %v888_v19 = vpack.c.bf16 %v666_v15, %v666_v15  ;;  %v508_v20 = vadd.f32 %v961_v16, %v1315_v61  ;;  %v964_v21 = vadd.f32 %v963_v18, %v962_v17 }
 0x13b   :  { %777 = vst.msk [vmem:[%s1430_s3 + $0x3c] sm:$0xf] %vm761_vm2, %v888_v19  ;;  %v629_v22 = vadd.f32 %v628_v51, %v508_v20  ;;  %v511_v23 = vadd.f32 %v964_v21, %v1315_v61 }
 0x13d   :  { %v667_v26 = vmax.f32 %v629_v22, 0.0  ;;  %v632_v27 = vadd.f32 %v631_v56, %v511_v23  ;;  %v965_v28 = vpop.f32.mrb[36].mxu0 }
 0x13e   :  { %v966_v30 = vpop.f32.mrb[37].mxu0 }
 0x13f   :  { %v889_v32 = vpack.c.bf16 %v667_v26, %v667_v26  ;;  %v668_v33 = vmax.f32 %v632_v27, 0.0  ;;  %v967_v34 = vadd.f32 %v966_v30, %v965_v28  ;;  %v968_v35 = vpop.f32.mrb[38].mxu0 }
 0x140   :  { %v969_v36 = vpop.f32.mrb[39].mxu0 }
 0x141   :  { %778 = vst.msk [vmem:[%s1430_s3 + $0x40] sm:$0xf] %vm761_vm2, %v889_v32  ;;  %v890_v37 = vpack.c.bf16 %v668_v33, %v668_v33  ;;  %v516_v38 = vadd.f32 %v967_v34, %v1315_v61  ;;  %v970_v39 = vadd.f32 %v969_v36, %v968_v35 }
 0x143   :  { %779 = vst.msk [vmem:[%s1430_s3 + $0x44] sm:$0xf] %vm761_vm2, %v890_v37  ;;  %v637_v40 = vadd.f32 %v636_v6, %v516_v38  ;;  %v519_v41 = vadd.f32 %v970_v39, %v1315_v61 }
 0x145   :  { %v669_v42 = vmax.f32 %v637_v40, 0.0  ;;  %v640_v43 = vadd.f32 %v639_v11, %v519_v41  ;;  %v971_v44 = vpop.f32.mrb[40].mxu0 }
 0x146   :  { %v972_v45 = vpop.f32.mrb[41].mxu0 }
 0x147   :  { %v891_v46 = vpack.c.bf16 %v669_v42, %v669_v42  ;;  %v670_v47 = vmax.f32 %v640_v43, 0.0  ;;  %v973_v48 = vadd.f32 %v972_v45, %v971_v44  ;;  %v974_v49 = vpop.f32.mrb[42].mxu0 }
 0x148   :  { %v975_v50 = vpop.f32.mrb[43].mxu0 }
 0x149   :  { %780 = vst.msk [vmem:[%s1430_s3 + $0x48] sm:$0xf] %vm761_vm2, %v891_v46  ;;  %v892_v51 = vpack.c.bf16 %v670_v47, %v670_v47  ;;  %v524_v52 = vadd.f32 %v973_v48, %v1315_v61  ;;  %v976_v53 = vadd.f32 %v975_v50, %v974_v49 }
 0x14b   :  { %781 = vst.msk [vmem:[%s1430_s3 + $0x4c] sm:$0xf] %vm761_vm2, %v892_v51  ;;  %v645_v54 = vadd.f32 %v644_v24, %v524_v52  ;;  %v527_v55 = vadd.f32 %v976_v53, %v1315_v61 }
 0x14d   :  { %v671_v56 = vmax.f32 %v645_v54, 0.0  ;;  %v648_v57 = vadd.f32 %v647_v29, %v527_v55 }
 0x14f   :  { %v893_v58 = vpack.c.bf16 %v671_v56, %v671_v56  ;;  %v672_v59 = vmax.f32 %v648_v57, 0.0 }
 0x151   :  { %782 = vst.msk [vmem:[%s1430_s3 + $0x50] sm:$0xf] %vm761_vm2, %v893_v58  ;;  %v894_v60 = vpack.c.bf16 %v672_v59, %v672_v59 }
 0x153   :  { %783 = vst.msk [vmem:[%s1430_s3 + $0x54] sm:$0xf] %vm761_vm2, %v894_v60 }

// kernel: cnn_network4_forward.7
= control target key start
LH: loop header
LB: loop body
LE: loop exit
PB: predicated region body
PF: predicated region fallthrough
CT: control target
= control target key end

     0   :  { %vm4168_vm0 = vcmask 523264   ;;  %vm5257_vm1 = vcmask 39936   ;;  %s9285_s1 = inlined_call_operand.vmem [shape: bf16[5184,256], index: 1, kind: input, shape index: {}]   ;;  %s9286_s0 = inlined_call_operand.vmem [shape: bf16[16,5184], index: 0, kind: input, shape index: {}]   ;;  %s9287_s3 = inlined_call_operand.vmem [shape: bf16[256,5], index: 3, kind: input, shape index: {}]   ;;  %s9288_s2 = inlined_call_operand.vmem [shape: f32[1,256], index: 2, kind: input, shape index: {}]   ;;  %s9289_s4 = inlined_call_operand.vmem [shape: f32[1,5], index: 4, kind: input, shape index: {}]   ;;  %s9290_s5 = inlined_call_operand.vmem [shape: f32[16,5], index: 5, kind: output, shape index: {}]  }
   0x1   :  { %v6078_v0 = vld [vmem:[%s9285_s1 + $0x4] ss:$8 sps:$4 sm:$0xff]   ;;  %v6082_v2 = vld [vmem:[%s9285_s1] ss:$8 sps:$4 sm:$0xff]   ;;  %v6084_v4 = vld [vmem:[%s9285_s1 + $0x14] ss:$8 sps:$4 sm:$0xff]  }
   0x2   :  { %v6080_v1 = vld [vmem:[%s9285_s1 + $0xa04] ss:$8 sps:$4 sm:$0xff]   ;;  %4172 = vmatprep.subr.bf16.mxu1 %v6078_v0  ;;  %v6083_v3 = vld [vmem:[%s9285_s1 + $0xa00] ss:$8 sps:$4 sm:$0xff]   ;;  %v6086_v5 = vld [vmem:[%s9285_s1 + $0xa14] ss:$8 sps:$4 sm:$0xff]  }
   0x3   :  { %4602 = vmatprep.subr.bf16.mxu0 %v6080_v1  ;;  %4173 = vmatpush1.bf16.msra.mxu1 %v6082_v2  ;;  %v6088_v6 = vld [vmem:[%s9285_s1 + $0x10] ss:$8 sps:$4 sm:$0xff]   ;;  %v6090_v8 = vld [vmem:[%s9285_s1 + $0x24] ss:$8 sps:$4 sm:$0xff]   ;;  %v6094_v10 = vld [vmem:[%s9285_s1 + $0x20] ss:$8 sps:$4 sm:$0xff]  }
   0x4   :  { %4603 = vmatpush1.bf16.msra.mxu0 %v6083_v3  ;;  %4174 = vmatprep.subr.bf16.mxu1 %v6084_v4  ;;  %v6089_v7 = vld [vmem:[%s9285_s1 + $0xa10] ss:$8 sps:$4 sm:$0xff]   ;;  %v6092_v9 = vld [vmem:[%s9285_s1 + $0xa24] ss:$8 sps:$4 sm:$0xff]   ;;  %v6095_v11 = vld [vmem:[%s9285_s1 + $0xa20] ss:$8 sps:$4 sm:$0xff]  }
   0x5   :  { %4604 = vmatprep.subr.bf16.mxu0 %v6086_v5  ;;  %v6096_v12 = vld [vmem:[%s9285_s1 + $0x34] ss:$8 sps:$4 sm:$0xff]   ;;  %v6100_v14 = vld [vmem:[%s9285_s1 + $0x30] ss:$8 sps:$4 sm:$0xff]   ;;  %v6102_v16 = vld [vmem:[%s9285_s1 + $0x44] ss:$8 sps:$4 sm:$0xff]  }
   0x6   :  { %v6098_v13 = vld [vmem:[%s9285_s1 + $0xa34] ss:$8 sps:$4 sm:$0xff]   ;;  %v6101_v15 = vld [vmem:[%s9285_s1 + $0xa30] ss:$8 sps:$4 sm:$0xff]   ;;  %v6104_v17 = vld [vmem:[%s9285_s1 + $0xa44] ss:$8 sps:$4 sm:$0xff]  }
   0x7   :  { %4175 = vmatpush1.bf16.msra.mxu1 %v6088_v6  ;;  %v6106_v18 = vld [vmem:[%s9285_s1 + $0x40] ss:$8 sps:$4 sm:$0xff]   ;;  %v6108_v20 = vld [vmem:[%s9285_s1 + $0x54] ss:$8 sps:$4 sm:$0xff]   ;;  %v6112_v22 = vld [vmem:[%s9285_s1 + $0x50] ss:$8 sps:$4 sm:$0xff]  }
   0x8   :  { %4605 = vmatpush1.bf16.msra.mxu0 %v6089_v7  ;;  %4176 = vmatprep.subr.bf16.mxu1 %v6090_v8  ;;  %v6107_v19 = vld [vmem:[%s9285_s1 + $0xa40] ss:$8 sps:$4 sm:$0xff]   ;;  %v6110_v21 = vld [vmem:[%s9285_s1 + $0xa54] ss:$8 sps:$4 sm:$0xff]   ;;  %v6113_v23 = vld [vmem:[%s9285_s1 + $0xa50] ss:$8 sps:$4 sm:$0xff]  }
   0x9   :  { %4606 = vmatprep.subr.bf16.mxu0 %v6092_v9  ;;  %v6114_v24 = vld [vmem:[%s9285_s1 + $0x64] ss:$8 sps:$4 sm:$0xff]   ;;  %v6118_v26 = vld [vmem:[%s9285_s1 + $0x60] ss:$8 sps:$4 sm:$0xff]   ;;  %v6120_v28 = vld [vmem:[%s9285_s1 + $0x74] ss:$8 sps:$4 sm:$0xff]  }
   0xa   :  { %v6116_v25 = vld [vmem:[%s9285_s1 + $0xa64] ss:$8 sps:$4 sm:$0xff]   ;;  %v6119_v27 = vld [vmem:[%s9285_s1 + $0xa60] ss:$8 sps:$4 sm:$0xff]   ;;  %v6122_v29 = vld [vmem:[%s9285_s1 + $0xa74] ss:$8 sps:$4 sm:$0xff]  }
   0xb   :  { %4177 = vmatpush1.bf16.msra.mxu1 %v6094_v10  ;;  %v6124_v30 = vld [vmem:[%s9285_s1 + $0x70] ss:$8 sps:$4 sm:$0xff]   ;;  %v6126_v32 = vld [vmem:[%s9285_s1 + $0x84] ss:$8 sps:$4 sm:$0xff]   ;;  %v6130_v34 = vld [vmem:[%s9285_s1 + $0x80] ss:$8 sps:$4 sm:$0xff]  }
   0xc   :  { %4607 = vmatpush1.bf16.msra.mxu0 %v6095_v11  ;;  %4178 = vmatprep.subr.bf16.mxu1 %v6096_v12  ;;  %v6125_v31 = vld [vmem:[%s9285_s1 + $0xa70] ss:$8 sps:$4 sm:$0xff]   ;;  %v6128_v33 = vld [vmem:[%s9285_s1 + $0xa84] ss:$8 sps:$4 sm:$0xff]   ;;  %v6131_v35 = vld [vmem:[%s9285_s1 + $0xa80] ss:$8 sps:$4 sm:$0xff]  }
   0xd   :  { %4608 = vmatprep.subr.bf16.mxu0 %v6098_v13  ;;  %v6132_v36 = vld [vmem:[%s9285_s1 + $0x94] ss:$8 sps:$4 sm:$0xff]   ;;  %v6136_v38 = vld [vmem:[%s9285_s1 + $0x90] ss:$8 sps:$4 sm:$0xff]   ;;  %v6138_v40 = vld [vmem:[%s9285_s1 + $0xa4] ss:$8 sps:$4 sm:$0xff]  }
   0xe   :  { %v6134_v37 = vld [vmem:[%s9285_s1 + $0xa94] ss:$8 sps:$4 sm:$0xff]   ;;  %v6137_v39 = vld [vmem:[%s9285_s1 + $0xa90] ss:$8 sps:$4 sm:$0xff]   ;;  %v6140_v41 = vld [vmem:[%s9285_s1 + $0xaa4] ss:$8 sps:$4 sm:$0xff]  }
   0xf   :  { %4179 = vmatpush1.bf16.msra.mxu1 %v6100_v14  ;;  %v6142_v42 = vld [vmem:[%s9285_s1 + $0xa0] ss:$8 sps:$4 sm:$0xff]   ;;  %v6144_v44 = vld [vmem:[%s9285_s1 + $0xb4] ss:$8 sps:$4 sm:$0xff]   ;;  %v6148_v46 = vld [vmem:[%s9285_s1 + $0xb0] ss:$8 sps:$4 sm:$0xff]  }
  0x10   :  { %4609 = vmatpush1.bf16.msra.mxu0 %v6101_v15  ;;  %4180 = vmatprep.subr.bf16.mxu1 %v6102_v16  ;;  %v6143_v43 = vld [vmem:[%s9285_s1 + $0xaa0] ss:$8 sps:$4 sm:$0xff]   ;;  %v6146_v45 = vld [vmem:[%s9285_s1 + $0xab4] ss:$8 sps:$4 sm:$0xff]   ;;  %v6149_v47 = vld [vmem:[%s9285_s1 + $0xab0] ss:$8 sps:$4 sm:$0xff]  }
  0x11   :  { %4610 = vmatprep.subr.bf16.mxu0 %v6104_v17  ;;  %v6176_v48 = vld [vmem:[%s9286_s0 + $0x4] ss:$164 sps:$4 sm:$0xff]   ;;  %v6182_v51 = vld [vmem:[%s9286_s0 + $0x54] ss:$164 sps:$4 sm:$0xff]  }
  0x12   :  { %v6150_v49 = vld [vmem:[%s9285_s1 + $0xc4] ss:$8 sps:$4 sm:$0xff]   ;;  %4204 = vmatprep.mubr.bf16.mxu1 %v6176_v48  ;;  %v6154_v52 = vld [vmem:[%s9285_s1 + $0xc0] ss:$8 sps:$4 sm:$0xff]   ;;  %v6156_v54 = vld [vmem:[%s9285_s1 + $0xd4] ss:$8 sps:$4 sm:$0xff]   ;;  %4634 = vmatprep.mubr.bf16.mxu0 %v6182_v51 }
  0x13   :  { %4181 = vmatpush1.bf16.msra.mxu1 %v6106_v18  ;;  %v6152_v50 = vld [vmem:[%s9285_s1 + $0xac4] ss:$8 sps:$4 sm:$0xff]   ;;  %v6155_v53 = vld [vmem:[%s9285_s1 + $0xac0] ss:$8 sps:$4 sm:$0xff]   ;;  %v6158_v55 = vld [vmem:[%s9285_s1 + $0xad4] ss:$8 sps:$4 sm:$0xff]  }
  0x14   :  { %4611 = vmatpush1.bf16.msra.mxu0 %v6107_v19  ;;  %4182 = vmatprep.subr.bf16.mxu1 %v6108_v20  ;;  %v6160_v56 = vld [vmem:[%s9285_s1 + $0xd0] ss:$8 sps:$4 sm:$0xff]   ;;  %v6162_v58 = vld [vmem:[%s9285_s1 + $0xe4] ss:$8 sps:$4 sm:$0xff]   ;;  %v6166_v60 = vld [vmem:[%s9285_s1 + $0xe0] ss:$8 sps:$4 sm:$0xff]  }
  0x15   :  { %4612 = vmatprep.subr.bf16.mxu0 %v6110_v21  ;;  %v6161_v57 = vld [vmem:[%s9285_s1 + $0xad0] ss:$8 sps:$4 sm:$0xff]   ;;  %v6164_v59 = vld [vmem:[%s9285_s1 + $0xae4] ss:$8 sps:$4 sm:$0xff]   ;;  %v6167_v61 = vld [vmem:[%s9285_s1 + $0xae0] ss:$8 sps:$4 sm:$0xff]  }
  0x16   :  { %v6168_v62 = vld [vmem:[%s9285_s1 + $0xf4] ss:$8 sps:$4 sm:$0xff]   ;;  %v6172_v0 = vld [vmem:[%s9285_s1 + $0xf0] ss:$8 sps:$4 sm:$0xff]   ;;  %v6179_v2 = vld [vmem:[%s9285_s1 + $0x104] ss:$8 sps:$4 sm:$0xff]  }
  0x17   :  { %4183 = vmatpush1.bf16.msra.mxu1 %v6112_v22  ;;  %v6170_v63 = vld [vmem:[%s9285_s1 + $0xaf4] ss:$8 sps:$4 sm:$0xff]   ;;  %v6173_v1 = vld [vmem:[%s9285_s1 + $0xaf0] ss:$8 sps:$4 sm:$0xff]   ;;  %v6185_v3 = vld [vmem:[%s9285_s1 + $0xb04] ss:$8 sps:$4 sm:$0xff]  }
  0x18   :  { %4613 = vmatpush1.bf16.msra.mxu0 %v6113_v23  ;;  %4184 = vmatprep.subr.bf16.mxu1 %v6114_v24  ;;  %v6174_v4 = vld [vmem:[%s9286_s0] ss:$164 sps:$4 sm:$0xff]   ;;  %v6180_v6 = vld [vmem:[%s9286_s0 + $0x50] ss:$164 sps:$4 sm:$0xff]  }
  0x19   :  { %4614 = vmatprep.subr.bf16.mxu0 %v6116_v25  ;;  %v6177_v5 = vld [vmem:[%s9285_s1 + $0x100] ss:$8 sps:$4 sm:$0xff]   ;;  %v6188_v8 = vld [vmem:[%s9285_s1 + $0x114] ss:$8 sps:$4 sm:$0xff]   ;;  %v6186_v10 = vld [vmem:[%s9285_s1 + $0x110] ss:$8 sps:$4 sm:$0xff]  }
  0x1a   :  { %v6183_v7 = vld [vmem:[%s9285_s1 + $0xb00] ss:$8 sps:$4 sm:$0xff]   ;;  %v6191_v9 = vld [vmem:[%s9285_s1 + $0xb14] ss:$8 sps:$4 sm:$0xff]   ;;  %v6189_v11 = vld [vmem:[%s9285_s1 + $0xb10] ss:$8 sps:$4 sm:$0xff]  }
  0x1b   :  { %4185 = vmatpush1.bf16.msra.mxu1 %v6118_v26  ;;  %v6194_v12 = vld [vmem:[%s9285_s1 + $0x124] ss:$8 sps:$4 sm:$0xff]   ;;  %v6192_v14 = vld [vmem:[%s9285_s1 + $0x120] ss:$8 sps:$4 sm:$0xff]   ;;  %v6200_v16 = vld [vmem:[%s9285_s1 + $0x134] ss:$8 sps:$4 sm:$0xff]  }
  0x1c   :  { %4615 = vmatpush1.bf16.msra.mxu0 %v6119_v27  ;;  %4186 = vmatprep.subr.bf16.mxu1 %v6120_v28  ;;  %v6197_v13 = vld [vmem:[%s9285_s1 + $0xb24] ss:$8 sps:$4 sm:$0xff]   ;;  %v6195_v15 = vld [vmem:[%s9285_s1 + $0xb20] ss:$8 sps:$4 sm:$0xff]   ;;  %v6203_v17 = vld [vmem:[%s9285_s1 + $0xb34] ss:$8 sps:$4 sm:$0xff]  }
  0x1d   :  { %4616 = vmatprep.subr.bf16.mxu0 %v6122_v29  ;;  %v6198_v18 = vld [vmem:[%s9285_s1 + $0x130] ss:$8 sps:$4 sm:$0xff]   ;;  %v6206_v20 = vld [vmem:[%s9285_s1 + $0x144] ss:$8 sps:$4 sm:$0xff]   ;;  %v6204_v22 = vld [vmem:[%s9285_s1 + $0x140] ss:$8 sps:$4 sm:$0xff]  }
  0x1e   :  { %v6201_v19 = vld [vmem:[%s9285_s1 + $0xb30] ss:$8 sps:$4 sm:$0xff]   ;;  %v6209_v21 = vld [vmem:[%s9285_s1 + $0xb44] ss:$8 sps:$4 sm:$0xff]   ;;  %v6207_v23 = vld [vmem:[%s9285_s1 + $0xb40] ss:$8 sps:$4 sm:$0xff]  }
  0x1f   :  { %4187 = vmatpush1.bf16.msra.mxu1 %v6124_v30  ;;  %v6212_v24 = vld [vmem:[%s9285_s1 + $0x154] ss:$8 sps:$4 sm:$0xff]   ;;  %v6210_v26 = vld [vmem:[%s9285_s1 + $0x150] ss:$8 sps:$4 sm:$0xff]   ;;  %v6218_v28 = vld [vmem:[%s9285_s1 + $0x164] ss:$8 sps:$4 sm:$0xff]  }
  0x20   :  { %4617 = vmatpush1.bf16.msra.mxu0 %v6125_v31  ;;  %4188 = vmatprep.subr.bf16.mxu1 %v6126_v32  ;;  %v6215_v25 = vld [vmem:[%s9285_s1 + $0xb54] ss:$8 sps:$4 sm:$0xff]   ;;  %v6213_v27 = vld [vmem:[%s9285_s1 + $0xb50] ss:$8 sps:$4 sm:$0xff]   ;;  %v6221_v29 = vld [vmem:[%s9285_s1 + $0xb64] ss:$8 sps:$4 sm:$0xff]  }
  0x21   :  { %4618 = vmatprep.subr.bf16.mxu0 %v6128_v33  ;;  %v6216_v30 = vld [vmem:[%s9285_s1 + $0x160] ss:$8 sps:$4 sm:$0xff]   ;;  %v6224_v32 = vld [vmem:[%s9285_s1 + $0x174] ss:$8 sps:$4 sm:$0xff]  }
  0x22   :  { %v6219_v31 = vld [vmem:[%s9285_s1 + $0xb60] ss:$8 sps:$4 sm:$0xff]   ;;  %v6227_v33 = vld [vmem:[%s9285_s1 + $0xb74] ss:$8 sps:$4 sm:$0xff]  }
  0x23   :  { %4189 = vmatpush1.bf16.msra.mxu1 %v6130_v34  ;;  %v6278_v34 = vld [vmem:[%s9286_s0 + $0xc] ss:$164 sps:$4 sm:$0xff]   ;;  %v6240_v48 = vld [vmem:[%s9285_s1 + $0x1a0] ss:$8 sps:$4 sm:$0xff]   ;;  %v6251_v51 = vld [vmem:[%s9285_s1 + $0xbb4] ss:$8 sps:$4 sm:$0xff]  }
  0x24   :  { %4619 = vmatpush1.bf16.msra.mxu0 %v6131_v35  ;;  %4190 = vmatprep.subr.bf16.mxu1 %v6132_v36  ;;  %v6222_v35 = vld [vmem:[%s9285_s1 + $0x170] ss:$8 sps:$4 sm:$0xff]  }
  0x25   :  { %4620 = vmatprep.subr.bf16.mxu0 %v6134_v37  ;;  %v6225_v36 = vld [vmem:[%s9285_s1 + $0xb70] ss:$8 sps:$4 sm:$0xff]   ;;  %v6284_v37 = vld [vmem:[%s9286_s0 + $0x5c] ss:$164 sps:$4 sm:$0xff]  }
  0x27   :  { %4191 = vmatpush1.bf16.msra.mxu1 %v6136_v38  ;;  %v6230_v38 = vld [vmem:[%s9285_s1 + $0x184] ss:$8 sps:$4 sm:$0xff]  }
  0x28   :  { %4621 = vmatpush1.bf16.msra.mxu0 %v6137_v39  ;;  %4192 = vmatprep.subr.bf16.mxu1 %v6138_v40  ;;  %v6233_v39 = vld [vmem:[%s9285_s1 + $0xb84] ss:$8 sps:$4 sm:$0xff]   ;;  %v6228_v40 = vld [vmem:[%s9285_s1 + $0x180] ss:$8 sps:$4 sm:$0xff]  }
  0x29   :  { %4622 = vmatprep.subr.bf16.mxu0 %v6140_v41  ;;  %v6231_v41 = vld [vmem:[%s9285_s1 + $0xb80] ss:$8 sps:$4 sm:$0xff]  }
  0x2b   :  { %4193 = vmatpush1.bf16.msra.mxu1 %v6142_v42  ;;  %v6236_v42 = vld [vmem:[%s9285_s1 + $0x194] ss:$8 sps:$4 sm:$0xff]  }
  0x2c   :  { %4623 = vmatpush1.bf16.msra.mxu0 %v6143_v43  ;;  %4194 = vmatprep.subr.bf16.mxu1 %v6144_v44  ;;  %v6239_v43 = vld [vmem:[%s9285_s1 + $0xb94] ss:$8 sps:$4 sm:$0xff]   ;;  %v6234_v44 = vld [vmem:[%s9285_s1 + $0x190] ss:$8 sps:$4 sm:$0xff]  }
  0x2d   :  { %4624 = vmatprep.subr.bf16.mxu0 %v6146_v45  ;;  %v6237_v45 = vld [vmem:[%s9285_s1 + $0xb90] ss:$8 sps:$4 sm:$0xff]  }
  0x2f   :  { %4195 = vmatpush1.bf16.msra.mxu1 %v6148_v46  ;;  %v6242_v46 = vld [vmem:[%s9285_s1 + $0x1a4] ss:$8 sps:$4 sm:$0xff]  }
  0x30   :  { %4625 = vmatpush1.bf16.msra.mxu0 %v6149_v47  ;;  %4196 = vmatprep.subr.bf16.mxu1 %v6150_v49  ;;  %v6245_v47 = vld [vmem:[%s9285_s1 + $0xba4] ss:$8 sps:$4 sm:$0xff]   ;;  %v6243_v49 = vld [vmem:[%s9285_s1 + $0xba0] ss:$8 sps:$4 sm:$0xff]  }
  0x31   :  { %4626 = vmatprep.subr.bf16.mxu0 %v6152_v50  ;;  %v6248_v50 = vld [vmem:[%s9285_s1 + $0x1b4] ss:$8 sps:$4 sm:$0xff]  }
  0x33   :  { %4197 = vmatpush1.bf16.msra.mxu1 %v6154_v52  ;;  %v6246_v52 = vld [vmem:[%s9285_s1 + $0x1b0] ss:$8 sps:$4 sm:$0xff]  }
  0x34   :  { %4627 = vmatpush1.bf16.msra.mxu0 %v6155_v53  ;;  %4198 = vmatprep.subr.bf16.mxu1 %v6156_v54  ;;  %v6249_v53 = vld [vmem:[%s9285_s1 + $0xbb0] ss:$8 sps:$4 sm:$0xff]   ;;  %v6254_v54 = vld [vmem:[%s9285_s1 + $0x1c4] ss:$8 sps:$4 sm:$0xff]  }
  0x35   :  { %4628 = vmatprep.subr.bf16.mxu0 %v6158_v55  ;;  %v6257_v55 = vld [vmem:[%s9285_s1 + $0xbc4] ss:$8 sps:$4 sm:$0xff]  }
  0x37   :  { %4199 = vmatpush1.bf16.msra.mxu1 %v6160_v56  ;;  %v6252_v56 = vld [vmem:[%s9285_s1 + $0x1c0] ss:$8 sps:$4 sm:$0xff]  }
  0x38   :  { %4629 = vmatpush1.bf16.msra.mxu0 %v6161_v57  ;;  %4200 = vmatprep.subr.bf16.mxu1 %v6162_v58  ;;  %v6255_v57 = vld [vmem:[%s9285_s1 + $0xbc0] ss:$8 sps:$4 sm:$0xff]   ;;  %v6260_v58 = vld [vmem:[%s9285_s1 + $0x1d4] ss:$8 sps:$4 sm:$0xff]  }
  0x39   :  { %4630 = vmatprep.subr.bf16.mxu0 %v6164_v59  ;;  %v6263_v59 = vld [vmem:[%s9285_s1 + $0xbd4] ss:$8 sps:$4 sm:$0xff]  }
  0x3b   :  { %4201 = vmatpush1.bf16.msra.mxu1 %v6166_v60  ;;  %v6258_v60 = vld [vmem:[%s9285_s1 + $0x1d0] ss:$8 sps:$4 sm:$0xff]  }
  0x3c   :  { %4631 = vmatpush1.bf16.msra.mxu0 %v6167_v61  ;;  %4202 = vmatprep.subr.bf16.mxu1 %v6168_v62  ;;  %v6261_v61 = vld [vmem:[%s9285_s1 + $0xbd0] ss:$8 sps:$4 sm:$0xff]   ;;  %v6266_v62 = vld [vmem:[%s9285_s1 + $0x1e4] ss:$8 sps:$4 sm:$0xff]  }
  0x3d   :  { %4632 = vmatprep.subr.bf16.mxu0 %v6170_v63  ;;  %v6269_v63 = vld [vmem:[%s9285_s1 + $0xbe4] ss:$8 sps:$4 sm:$0xff]  }
  0x3f   :  { %4203 = vmatpush1.bf16.msra.mxu1 %v6172_v0  ;;  %v6264_v0 = vld [vmem:[%s9285_s1 + $0x1e0] ss:$8 sps:$4 sm:$0xff]  }
  0x40   :  { %4633 = vmatpush1.bf16.msra.mxu0 %v6173_v1  ;;  %4215 = vmatprep.subr.bf16.mxu1 %v6179_v2  ;;  %v6267_v1 = vld [vmem:[%s9285_s1 + $0xbe0] ss:$8 sps:$4 sm:$0xff]   ;;  %v6272_v2 = vld [vmem:[%s9285_s1 + $0x1f4] ss:$8 sps:$4 sm:$0xff]  }
  0x41   :  { %4645 = vmatprep.subr.bf16.mxu0 %v6185_v3  ;;  %v6275_v3 = vld [vmem:[%s9285_s1 + $0xbf4] ss:$8 sps:$4 sm:$0xff]  }
  0x42   :  { %4205 = vmatmul.mubr.bf16.vlgmr.msra.gmra.mrb[0].mxu1 %v6174_v4  ;;  %v6270_v4 = vld [vmem:[%s9285_s1 + $0x1f0] ss:$8 sps:$4 sm:$0xff]  }
  0x43   :  { %4635 = vmatmul.mubr.bf16.vlgmr.msra.gmra.mrb[0].mxu0 %v6180_v6  ;;  %4216 = vmatpush1.bf16.msra.mxu1 %v6177_v5  ;;  %v6273_v5 = vld [vmem:[%s9285_s1 + $0xbf0] ss:$8 sps:$4 sm:$0xff]   ;;  %v6281_v6 = vld [vmem:[%s9285_s1 + $0x204] ss:$8 sps:$4 sm:$0xff]  }
  0x44   :  { %4646 = vmatpush1.bf16.msra.mxu0 %v6183_v7  ;;  %4217 = vmatprep.subr.bf16.mxu1 %v6188_v8  ;;  %v6287_v7 = vld [vmem:[%s9285_s1 + $0xc04] ss:$8 sps:$4 sm:$0xff]  }
  0x45   :  { %4647 = vmatprep.subr.bf16.mxu0 %v6191_v9  ;;  %4247 = vmatprep.mubr.bf16.mxu1 %v6278_v34  ;;  %v6276_v8 = vld [vmem:[%s9286_s0 + $0x8] ss:$164 sps:$4 sm:$0xff]  }
  0x46   :  { %4677 = vmatprep.mubr.bf16.mxu0 %v6284_v37  ;;  %v6279_v9 = vld [vmem:[%s9285_s1 + $0x200] ss:$8 sps:$4 sm:$0xff]   ;;  %v6320_v34 = vld [vmem:[%s9285_s1 + $0x264] ss:$8 sps:$4 sm:$0xff]  }
  0x47   :  { %4218 = vmatpush1.bf16.msra.mxu1 %v6186_v10  ;;  %v6282_v10 = vld [vmem:[%s9286_s0 + $0x58] ss:$164 sps:$4 sm:$0xff]   ;;  %v6321_v37 = vld [vmem:[%s9285_s1 + $0xc60] ss:$8 sps:$4 sm:$0xff]  }
  0x48   :  { %4648 = vmatpush1.bf16.msra.mxu0 %v6189_v11  ;;  %4219 = vmatprep.subr.bf16.mxu1 %v6194_v12  ;;  %v6285_v11 = vld [vmem:[%s9285_s1 + $0xc00] ss:$8 sps:$4 sm:$0xff]   ;;  %v6290_v12 = vld [vmem:[%s9285_s1 + $0x214] ss:$8 sps:$4 sm:$0xff]  }
  0x49   :  { %4649 = vmatprep.subr.bf16.mxu0 %v6197_v13  ;;  %v6293_v13 = vld [vmem:[%s9285_s1 + $0xc14] ss:$8 sps:$4 sm:$0xff]  }
  0x4b   :  { %4220 = vmatpush1.bf16.msra.mxu1 %v6192_v14  ;;  %v6288_v14 = vld [vmem:[%s9285_s1 + $0x210] ss:$8 sps:$4 sm:$0xff]  }
  0x4c   :  { %4650 = vmatpush1.bf16.msra.mxu0 %v6195_v15  ;;  %4221 = vmatprep.subr.bf16.mxu1 %v6200_v16  ;;  %v6291_v15 = vld [vmem:[%s9285_s1 + $0xc10] ss:$8 sps:$4 sm:$0xff]   ;;  %v6296_v16 = vld [vmem:[%s9285_s1 + $0x224] ss:$8 sps:$4 sm:$0xff]  }
  0x4d   :  { %4651 = vmatprep.subr.bf16.mxu0 %v6203_v17  ;;  %v6299_v17 = vld [vmem:[%s9285_s1 + $0xc24] ss:$8 sps:$4 sm:$0xff]  }
  0x4f   :  { %4222 = vmatpush1.bf16.msra.mxu1 %v6198_v18  ;;  %v6294_v18 = vld [vmem:[%s9285_s1 + $0x220] ss:$8 sps:$4 sm:$0xff]  }
  0x50   :  { %4652 = vmatpush1.bf16.msra.mxu0 %v6201_v19  ;;  %4223 = vmatprep.subr.bf16.mxu1 %v6206_v20  ;;  %v6380_v19 = vld [vmem:[%s9286_s0 + $0x14] ss:$164 sps:$4 sm:$0xff]   ;;  %v6297_v20 = vld [vmem:[%s9285_s1 + $0xc20] ss:$8 sps:$4 sm:$0xff]  }
  0x51   :  { %4653 = vmatprep.subr.bf16.mxu0 %v6209_v21  ;;  %v6302_v21 = vld [vmem:[%s9285_s1 + $0x234] ss:$8 sps:$4 sm:$0xff]  }
  0x53   :  { %4224 = vmatpush1.bf16.msra.mxu1 %v6204_v22  ;;  %v6305_v22 = vld [vmem:[%s9285_s1 + $0xc34] ss:$8 sps:$4 sm:$0xff]  }
  0x54   :  { %4654 = vmatpush1.bf16.msra.mxu0 %v6207_v23  ;;  %4225 = vmatprep.subr.bf16.mxu1 %v6212_v24  ;;  %v6386_v23 = vld [vmem:[%s9286_s0 + $0x64] ss:$164 sps:$4 sm:$0xff]   ;;  %v6300_v24 = vld [vmem:[%s9285_s1 + $0x230] ss:$8 sps:$4 sm:$0xff]  }
  0x55   :  { %4655 = vmatprep.subr.bf16.mxu0 %v6215_v25  ;;  %v6303_v25 = vld [vmem:[%s9285_s1 + $0xc30] ss:$8 sps:$4 sm:$0xff]  }
  0x57   :  { %4226 = vmatpush1.bf16.msra.mxu1 %v6210_v26  ;;  %v6308_v26 = vld [vmem:[%s9285_s1 + $0x244] ss:$8 sps:$4 sm:$0xff]  }
  0x58   :  { %4656 = vmatpush1.bf16.msra.mxu0 %v6213_v27  ;;  %4227 = vmatprep.subr.bf16.mxu1 %v6218_v28  ;;  %v6311_v27 = vld [vmem:[%s9285_s1 + $0xc44] ss:$8 sps:$4 sm:$0xff]   ;;  %v6306_v28 = vld [vmem:[%s9285_s1 + $0x240] ss:$8 sps:$4 sm:$0xff]  }
  0x59   :  { %4657 = vmatprep.subr.bf16.mxu0 %v6221_v29  ;;  %v6309_v29 = vld [vmem:[%s9285_s1 + $0xc40] ss:$8 sps:$4 sm:$0xff]  }
  0x5b   :  { %4228 = vmatpush1.bf16.msra.mxu1 %v6216_v30  ;;  %v6314_v30 = vld [vmem:[%s9285_s1 + $0x254] ss:$8 sps:$4 sm:$0xff]  }
  0x5c   :  { %4658 = vmatpush1.bf16.msra.mxu0 %v6219_v31  ;;  %4229 = vmatprep.subr.bf16.mxu1 %v6224_v32  ;;  %v6317_v31 = vld [vmem:[%s9285_s1 + $0xc54] ss:$8 sps:$4 sm:$0xff]   ;;  %v6312_v32 = vld [vmem:[%s9285_s1 + $0x250] ss:$8 sps:$4 sm:$0xff]  }
  0x5d   :  { %4659 = vmatprep.subr.bf16.mxu0 %v6227_v33  ;;  %v6315_v33 = vld [vmem:[%s9285_s1 + $0xc50] ss:$8 sps:$4 sm:$0xff]  }
  0x5f   :  { %4230 = vmatpush1.bf16.msra.mxu1 %v6222_v35  ;;  %v6323_v35 = vld [vmem:[%s9285_s1 + $0xc64] ss:$8 sps:$4 sm:$0xff]  }
  0x60   :  { %4660 = vmatpush1.bf16.msra.mxu0 %v6225_v36  ;;  %4231 = vmatprep.subr.bf16.mxu1 %v6230_v38  ;;  %v6318_v36 = vld [vmem:[%s9285_s1 + $0x260] ss:$8 sps:$4 sm:$0xff]   ;;  %v6326_v38 = vld [vmem:[%s9285_s1 + $0x274] ss:$8 sps:$4 sm:$0xff]  }
  0x61   :  { %4661 = vmatprep.subr.bf16.mxu0 %v6233_v39  ;;  %v6329_v39 = vld [vmem:[%s9285_s1 + $0xc74] ss:$8 sps:$4 sm:$0xff]  }
  0x63   :  { %4232 = vmatpush1.bf16.msra.mxu1 %v6228_v40  ;;  %v6324_v40 = vld [vmem:[%s9285_s1 + $0x270] ss:$8 sps:$4 sm:$0xff]  }
  0x64   :  { %4662 = vmatpush1.bf16.msra.mxu0 %v6231_v41  ;;  %4233 = vmatprep.subr.bf16.mxu1 %v6236_v42  ;;  %v6327_v41 = vld [vmem:[%s9285_s1 + $0xc70] ss:$8 sps:$4 sm:$0xff]   ;;  %v6332_v42 = vld [vmem:[%s9285_s1 + $0x284] ss:$8 sps:$4 sm:$0xff]  }
  0x65   :  { %4663 = vmatprep.subr.bf16.mxu0 %v6239_v43  ;;  %v6335_v43 = vld [vmem:[%s9285_s1 + $0xc84] ss:$8 sps:$4 sm:$0xff]  }
  0x67   :  { %4234 = vmatpush1.bf16.msra.mxu1 %v6234_v44  ;;  %v6330_v44 = vld [vmem:[%s9285_s1 + $0x280] ss:$8 sps:$4 sm:$0xff]  }
  0x68   :  { %4664 = vmatpush1.bf16.msra.mxu0 %v6237_v45  ;;  %4235 = vmatprep.subr.bf16.mxu1 %v6242_v46  ;;  %v6333_v45 = vld [vmem:[%s9285_s1 + $0xc80] ss:$8 sps:$4 sm:$0xff]   ;;  %v6338_v46 = vld [vmem:[%s9285_s1 + $0x294] ss:$8 sps:$4 sm:$0xff]  }
  0x69   :  { %4665 = vmatprep.subr.bf16.mxu0 %v6245_v47  ;;  %v6341_v47 = vld [vmem:[%s9285_s1 + $0xc94] ss:$8 sps:$4 sm:$0xff]  }
  0x6b   :  { %4236 = vmatpush1.bf16.msra.mxu1 %v6240_v48  ;;  %v6336_v48 = vld [vmem:[%s9285_s1 + $0x290] ss:$8 sps:$4 sm:$0xff]  }
  0x6c   :  { %4666 = vmatpush1.bf16.msra.mxu0 %v6243_v49  ;;  %4237 = vmatprep.subr.bf16.mxu1 %v6248_v50  ;;  %v6339_v49 = vld [vmem:[%s9285_s1 + $0xc90] ss:$8 sps:$4 sm:$0xff]   ;;  %v6344_v50 = vld [vmem:[%s9285_s1 + $0x2a4] ss:$8 sps:$4 sm:$0xff]  }
  0x6d   :  { %4667 = vmatprep.subr.bf16.mxu0 %v6251_v51  ;;  %v6347_v51 = vld [vmem:[%s9285_s1 + $0xca4] ss:$8 sps:$4 sm:$0xff]  }
  0x6f   :  { %4238 = vmatpush1.bf16.msra.mxu1 %v6246_v52  ;;  %v6342_v52 = vld [vmem:[%s9285_s1 + $0x2a0] ss:$8 sps:$4 sm:$0xff]  }
  0x70   :  { %4668 = vmatpush1.bf16.msra.mxu0 %v6249_v53  ;;  %4239 = vmatprep.subr.bf16.mxu1 %v6254_v54  ;;  %v6345_v53 = vld [vmem:[%s9285_s1 + $0xca0] ss:$8 sps:$4 sm:$0xff]   ;;  %v6350_v54 = vld [vmem:[%s9285_s1 + $0x2b4] ss:$8 sps:$4 sm:$0xff]  }
  0x71   :  { %4669 = vmatprep.subr.bf16.mxu0 %v6257_v55  ;;  %v6353_v55 = vld [vmem:[%s9285_s1 + $0xcb4] ss:$8 sps:$4 sm:$0xff]  }
  0x73   :  { %4240 = vmatpush1.bf16.msra.mxu1 %v6252_v56  ;;  %v6348_v56 = vld [vmem:[%s9285_s1 + $0x2b0] ss:$8 sps:$4 sm:$0xff]  }
  0x74   :  { %4670 = vmatpush1.bf16.msra.mxu0 %v6255_v57  ;;  %4241 = vmatprep.subr.bf16.mxu1 %v6260_v58  ;;  %v6351_v57 = vld [vmem:[%s9285_s1 + $0xcb0] ss:$8 sps:$4 sm:$0xff]   ;;  %v6356_v58 = vld [vmem:[%s9285_s1 + $0x2c4] ss:$8 sps:$4 sm:$0xff]  }
  0x75   :  { %4671 = vmatprep.subr.bf16.mxu0 %v6263_v59  ;;  %v6359_v59 = vld [vmem:[%s9285_s1 + $0xcc4] ss:$8 sps:$4 sm:$0xff]  }
  0x77   :  { %4242 = vmatpush1.bf16.msra.mxu1 %v6258_v60  ;;  %v6354_v60 = vld [vmem:[%s9285_s1 + $0x2c0] ss:$8 sps:$4 sm:$0xff]  }
  0x78   :  { %4672 = vmatpush1.bf16.msra.mxu0 %v6261_v61  ;;  %4243 = vmatprep.subr.bf16.mxu1 %v6266_v62  ;;  %v6357_v61 = vld [vmem:[%s9285_s1 + $0xcc0] ss:$8 sps:$4 sm:$0xff]   ;;  %v6362_v62 = vld [vmem:[%s9285_s1 + $0x2d4] ss:$8 sps:$4 sm:$0xff]  }
  0x79   :  { %4673 = vmatprep.subr.bf16.mxu0 %v6269_v63  ;;  %v6365_v63 = vld [vmem:[%s9285_s1 + $0xcd4] ss:$8 sps:$4 sm:$0xff]  }
  0x7b   :  { %4244 = vmatpush1.bf16.msra.mxu1 %v6264_v0  ;;  %v6360_v0 = vld [vmem:[%s9285_s1 + $0x2d0] ss:$8 sps:$4 sm:$0xff]  }
  0x7c   :  { %4674 = vmatpush1.bf16.msra.mxu0 %v6267_v1  ;;  %4245 = vmatprep.subr.bf16.mxu1 %v6272_v2  ;;  %v6363_v1 = vld [vmem:[%s9285_s1 + $0xcd0] ss:$8 sps:$4 sm:$0xff]   ;;  %v6368_v2 = vld [vmem:[%s9285_s1 + $0x2e4] ss:$8 sps:$4 sm:$0xff]  }
  0x7d   :  { %4675 = vmatprep.subr.bf16.mxu0 %v6275_v3  ;;  %v6371_v3 = vld [vmem:[%s9285_s1 + $0xce4] ss:$8 sps:$4 sm:$0xff]  }
  0x7f   :  { %4246 = vmatpush1.bf16.msra.mxu1 %v6270_v4  ;;  %v6366_v4 = vld [vmem:[%s9285_s1 + $0x2e0] ss:$8 sps:$4 sm:$0xff]  }
  0x80   :  { %4676 = vmatpush1.bf16.msra.mxu0 %v6273_v5  ;;  %4258 = vmatprep.subr.bf16.mxu1 %v6281_v6  ;;  %v6369_v5 = vld [vmem:[%s9285_s1 + $0xce0] ss:$8 sps:$4 sm:$0xff]   ;;  %v6374_v6 = vld [vmem:[%s9285_s1 + $0x2f4] ss:$8 sps:$4 sm:$0xff]  }
  0x81   :  { %4688 = vmatprep.subr.bf16.mxu0 %v6287_v7  ;;  %v6377_v7 = vld [vmem:[%s9285_s1 + $0xcf4] ss:$8 sps:$4 sm:$0xff]  }
  0x82   :  { %4248 = vmatmul.mubr.bf16.vlgmr.msra.gmra.mrb[0].mxu1 %v6276_v8  ;;  %v6372_v8 = vld [vmem:[%s9285_s1 + $0x2f0] ss:$8 sps:$4 sm:$0xff]  }
  0x83   :  { %4678 = vmatmul.mubr.bf16.vlgmr.msra.gmra.mrb[0].mxu0 %v6282_v10  ;;  %4259 = vmatpush1.bf16.msra.mxu1 %v6279_v9  ;;  %v6375_v9 = vld [vmem:[%s9285_s1 + $0xcf0] ss:$8 sps:$4 sm:$0xff]   ;;  %v6383_v10 = vld [vmem:[%s9285_s1 + $0x304] ss:$8 sps:$4 sm:$0xff]  }
  0x84   :  { %4689 = vmatpush1.bf16.msra.mxu0 %v6285_v11  ;;  %4260 = vmatprep.subr.bf16.mxu1 %v6290_v12  ;;  %v6389_v11 = vld [vmem:[%s9285_s1 + $0xd04] ss:$8 sps:$4 sm:$0xff]   ;;  %v6378_v12 = vld [vmem:[%s9286_s0 + $0x10] ss:$164 sps:$4 sm:$0xff]  }
  0x85   :  { %4690 = vmatprep.subr.bf16.mxu0 %v6293_v13  ;;  %4290 = vmatprep.mubr.bf16.mxu1 %v6380_v19  ;;  %v6381_v13 = vld [vmem:[%s9285_s1 + $0x300] ss:$8 sps:$4 sm:$0xff]   ;;  %v6488_v19 = vld [vmem:[%s9286_s0 + $0x6c] ss:$164 sps:$4 sm:$0xff]  }
  0x86   :  { %4720 = vmatprep.mubr.bf16.mxu0 %v6386_v23  ;;  %v6401_v23 = vld [vmem:[%s9285_s1 + $0xd24] ss:$8 sps:$4 sm:$0xff]  }
  0x87   :  { %4261 = vmatpush1.bf16.msra.mxu1 %v6288_v14  ;;  %v6384_v14 = vld [vmem:[%s9286_s0 + $0x60] ss:$164 sps:$4 sm:$0xff]  }
  0x88   :  { %4691 = vmatpush1.bf16.msra.mxu0 %v6291_v15  ;;  %4262 = vmatprep.subr.bf16.mxu1 %v6296_v16  ;;  %v6387_v15 = vld [vmem:[%s9285_s1 + $0xd00] ss:$8 sps:$4 sm:$0xff]   ;;  %v6392_v16 = vld [vmem:[%s9285_s1 + $0x314] ss:$8 sps:$4 sm:$0xff]  }
  0x89   :  { %4692 = vmatprep.subr.bf16.mxu0 %v6299_v17  ;;  %v6395_v17 = vld [vmem:[%s9285_s1 + $0xd14] ss:$8 sps:$4 sm:$0xff]  }
  0x8b   :  { %4263 = vmatpush1.bf16.msra.mxu1 %v6294_v18  ;;  %v6482_v18 = vld [vmem:[%s9286_s0 + $0x1c] ss:$164 sps:$4 sm:$0xff]  }
  0x8c   :  { %4693 = vmatpush1.bf16.msra.mxu0 %v6297_v20  ;;  %4264 = vmatprep.subr.bf16.mxu1 %v6302_v21  ;;  %v6390_v20 = vld [vmem:[%s9285_s1 + $0x310] ss:$8 sps:$4 sm:$0xff]  }
  0x8d   :  { %4694 = vmatprep.subr.bf16.mxu0 %v6305_v22  ;;  %v6393_v21 = vld [vmem:[%s9285_s1 + $0xd10] ss:$8 sps:$4 sm:$0xff]   ;;  %v6398_v22 = vld [vmem:[%s9285_s1 + $0x324] ss:$8 sps:$4 sm:$0xff]  }
  0x8f   :  { %4265 = vmatpush1.bf16.msra.mxu1 %v6300_v24  ;;  %v6396_v24 = vld [vmem:[%s9285_s1 + $0x320] ss:$8 sps:$4 sm:$0xff]  }
  0x90   :  { %4695 = vmatpush1.bf16.msra.mxu0 %v6303_v25  ;;  %4266 = vmatprep.subr.bf16.mxu1 %v6308_v26  ;;  %v6399_v25 = vld [vmem:[%s9285_s1 + $0xd20] ss:$8 sps:$4 sm:$0xff]   ;;  %v6404_v26 = vld [vmem:[%s9285_s1 + $0x334] ss:$8 sps:$4 sm:$0xff]  }
  0x91   :  { %4696 = vmatprep.subr.bf16.mxu0 %v6311_v27  ;;  %v6407_v27 = vld [vmem:[%s9285_s1 + $0xd34] ss:$8 sps:$4 sm:$0xff]  }
  0x93   :  { %4267 = vmatpush1.bf16.msra.mxu1 %v6306_v28  ;;  %v6402_v28 = vld [vmem:[%s9285_s1 + $0x330] ss:$8 sps:$4 sm:$0xff]  }
  0x94   :  { %4697 = vmatpush1.bf16.msra.mxu0 %v6309_v29  ;;  %4268 = vmatprep.subr.bf16.mxu1 %v6314_v30  ;;  %v6405_v29 = vld [vmem:[%s9285_s1 + $0xd30] ss:$8 sps:$4 sm:$0xff]   ;;  %v6410_v30 = vld [vmem:[%s9285_s1 + $0x344] ss:$8 sps:$4 sm:$0xff]  }
  0x95   :  { %4698 = vmatprep.subr.bf16.mxu0 %v6317_v31  ;;  %v6413_v31 = vld [vmem:[%s9285_s1 + $0xd44] ss:$8 sps:$4 sm:$0xff]  }
  0x97   :  { %4269 = vmatpush1.bf16.msra.mxu1 %v6312_v32  ;;  %v6408_v32 = vld [vmem:[%s9285_s1 + $0x340] ss:$8 sps:$4 sm:$0xff]  }
  0x98   :  { %4699 = vmatpush1.bf16.msra.mxu0 %v6315_v33  ;;  %4270 = vmatprep.subr.bf16.mxu1 %v6320_v34  ;;  %v6411_v33 = vld [vmem:[%s9285_s1 + $0xd40] ss:$8 sps:$4 sm:$0xff]   ;;  %v6416_v34 = vld [vmem:[%s9285_s1 + $0x354] ss:$8 sps:$4 sm:$0xff]  }
  0x99   :  { %4700 = vmatprep.subr.bf16.mxu0 %v6323_v35  ;;  %v6419_v35 = vld [vmem:[%s9285_s1 + $0xd54] ss:$8 sps:$4 sm:$0xff]  }
  0x9b   :  { %4271 = vmatpush1.bf16.msra.mxu1 %v6318_v36  ;;  %v6414_v36 = vld [vmem:[%s9285_s1 + $0x350] ss:$8 sps:$4 sm:$0xff]  }
  0x9c   :  { %4701 = vmatpush1.bf16.msra.mxu0 %v6321_v37  ;;  %4272 = vmatprep.subr.bf16.mxu1 %v6326_v38  ;;  %v6417_v37 = vld [vmem:[%s9285_s1 + $0xd50] ss:$8 sps:$4 sm:$0xff]   ;;  %v6422_v38 = vld [vmem:[%s9285_s1 + $0x364] ss:$8 sps:$4 sm:$0xff]  }
  0x9d   :  { %4702 = vmatprep.subr.bf16.mxu0 %v6329_v39  ;;  %v6425_v39 = vld [vmem:[%s9285_s1 + $0xd64] ss:$8 sps:$4 sm:$0xff]  }
  0x9f   :  { %4273 = vmatpush1.bf16.msra.mxu1 %v6324_v40  ;;  %v6420_v40 = vld [vmem:[%s9285_s1 + $0x360] ss:$8 sps:$4 sm:$0xff]  }
  0xa0   :  { %4703 = vmatpush1.bf16.msra.mxu0 %v6327_v41  ;;  %4274 = vmatprep.subr.bf16.mxu1 %v6332_v42  ;;  %v6423_v41 = vld [vmem:[%s9285_s1 + $0xd60] ss:$8 sps:$4 sm:$0xff]   ;;  %v6428_v42 = vld [vmem:[%s9285_s1 + $0x374] ss:$8 sps:$4 sm:$0xff]  }
  0xa1   :  { %4704 = vmatprep.subr.bf16.mxu0 %v6335_v43  ;;  %v6431_v43 = vld [vmem:[%s9285_s1 + $0xd74] ss:$8 sps:$4 sm:$0xff]  }
  0xa3   :  { %4275 = vmatpush1.bf16.msra.mxu1 %v6330_v44  ;;  %v6426_v44 = vld [vmem:[%s9285_s1 + $0x370] ss:$8 sps:$4 sm:$0xff]  }
  0xa4   :  { %4705 = vmatpush1.bf16.msra.mxu0 %v6333_v45  ;;  %4276 = vmatprep.subr.bf16.mxu1 %v6338_v46  ;;  %v6429_v45 = vld [vmem:[%s9285_s1 + $0xd70] ss:$8 sps:$4 sm:$0xff]   ;;  %v6434_v46 = vld [vmem:[%s9285_s1 + $0x384] ss:$8 sps:$4 sm:$0xff]  }
  0xa5   :  { %4706 = vmatprep.subr.bf16.mxu0 %v6341_v47  ;;  %v6437_v47 = vld [vmem:[%s9285_s1 + $0xd84] ss:$8 sps:$4 sm:$0xff]  }
  0xa7   :  { %4277 = vmatpush1.bf16.msra.mxu1 %v6336_v48  ;;  %v6432_v48 = vld [vmem:[%s9285_s1 + $0x380] ss:$8 sps:$4 sm:$0xff]  }
  0xa8   :  { %4707 = vmatpush1.bf16.msra.mxu0 %v6339_v49  ;;  %4278 = vmatprep.subr.bf16.mxu1 %v6344_v50  ;;  %v6435_v49 = vld [vmem:[%s9285_s1 + $0xd80] ss:$8 sps:$4 sm:$0xff]   ;;  %v6440_v50 = vld [vmem:[%s9285_s1 + $0x394] ss:$8 sps:$4 sm:$0xff]  }
  0xa9   :  { %4708 = vmatprep.subr.bf16.mxu0 %v6347_v51  ;;  %v6443_v51 = vld [vmem:[%s9285_s1 + $0xd94] ss:$8 sps:$4 sm:$0xff]  }
  0xab   :  { %4279 = vmatpush1.bf16.msra.mxu1 %v6342_v52  ;;  %v6438_v52 = vld [vmem:[%s9285_s1 + $0x390] ss:$8 sps:$4 sm:$0xff]  }
  0xac   :  { %4709 = vmatpush1.bf16.msra.mxu0 %v6345_v53  ;;  %4280 = vmatprep.subr.bf16.mxu1 %v6350_v54  ;;  %v6441_v53 = vld [vmem:[%s9285_s1 + $0xd90] ss:$8 sps:$4 sm:$0xff]   ;;  %v6446_v54 = vld [vmem:[%s9285_s1 + $0x3a4] ss:$8 sps:$4 sm:$0xff]  }
  0xad   :  { %4710 = vmatprep.subr.bf16.mxu0 %v6353_v55  ;;  %v6449_v55 = vld [vmem:[%s9285_s1 + $0xda4] ss:$8 sps:$4 sm:$0xff]  }
  0xaf   :  { %4281 = vmatpush1.bf16.msra.mxu1 %v6348_v56  ;;  %v6444_v56 = vld [vmem:[%s9285_s1 + $0x3a0] ss:$8 sps:$4 sm:$0xff]  }
  0xb0   :  { %4711 = vmatpush1.bf16.msra.mxu0 %v6351_v57  ;;  %4282 = vmatprep.subr.bf16.mxu1 %v6356_v58  ;;  %v6447_v57 = vld [vmem:[%s9285_s1 + $0xda0] ss:$8 sps:$4 sm:$0xff]   ;;  %v6452_v58 = vld [vmem:[%s9285_s1 + $0x3b4] ss:$8 sps:$4 sm:$0xff]  }
  0xb1   :  { %4712 = vmatprep.subr.bf16.mxu0 %v6359_v59  ;;  %v6455_v59 = vld [vmem:[%s9285_s1 + $0xdb4] ss:$8 sps:$4 sm:$0xff]  }
  0xb3   :  { %4283 = vmatpush1.bf16.msra.mxu1 %v6354_v60  ;;  %v6450_v60 = vld [vmem:[%s9285_s1 + $0x3b0] ss:$8 sps:$4 sm:$0xff]  }
  0xb4   :  { %4713 = vmatpush1.bf16.msra.mxu0 %v6357_v61  ;;  %4284 = vmatprep.subr.bf16.mxu1 %v6362_v62  ;;  %v6453_v61 = vld [vmem:[%s9285_s1 + $0xdb0] ss:$8 sps:$4 sm:$0xff]   ;;  %v6458_v62 = vld [vmem:[%s9285_s1 + $0x3c4] ss:$8 sps:$4 sm:$0xff]  }
  0xb5   :  { %4714 = vmatprep.subr.bf16.mxu0 %v6365_v63  ;;  %v6461_v63 = vld [vmem:[%s9285_s1 + $0xdc4] ss:$8 sps:$4 sm:$0xff]  }
  0xb7   :  { %4285 = vmatpush1.bf16.msra.mxu1 %v6360_v0  ;;  %v6456_v0 = vld [vmem:[%s9285_s1 + $0x3c0] ss:$8 sps:$4 sm:$0xff]  }
  0xb8   :  { %4715 = vmatpush1.bf16.msra.mxu0 %v6363_v1  ;;  %4286 = vmatprep.subr.bf16.mxu1 %v6368_v2  ;;  %v6459_v1 = vld [vmem:[%s9285_s1 + $0xdc0] ss:$8 sps:$4 sm:$0xff]   ;;  %v6464_v2 = vld [vmem:[%s9285_s1 + $0x3d4] ss:$8 sps:$4 sm:$0xff]  }
  0xb9   :  { %4716 = vmatprep.subr.bf16.mxu0 %v6371_v3  ;;  %v6467_v3 = vld [vmem:[%s9285_s1 + $0xdd4] ss:$8 sps:$4 sm:$0xff]  }
  0xbb   :  { %4287 = vmatpush1.bf16.msra.mxu1 %v6366_v4  ;;  %v6462_v4 = vld [vmem:[%s9285_s1 + $0x3d0] ss:$8 sps:$4 sm:$0xff]  }
  0xbc   :  { %4717 = vmatpush1.bf16.msra.mxu0 %v6369_v5  ;;  %4288 = vmatprep.subr.bf16.mxu1 %v6374_v6  ;;  %v6465_v5 = vld [vmem:[%s9285_s1 + $0xdd0] ss:$8 sps:$4 sm:$0xff]   ;;  %v6470_v6 = vld [vmem:[%s9285_s1 + $0x3e4] ss:$8 sps:$4 sm:$0xff]  }
  0xbd   :  { %4718 = vmatprep.subr.bf16.mxu0 %v6377_v7  ;;  %v6473_v7 = vld [vmem:[%s9285_s1 + $0xde4] ss:$8 sps:$4 sm:$0xff]  }
  0xbf   :  { %4289 = vmatpush1.bf16.msra.mxu1 %v6372_v8  ;;  %v6468_v8 = vld [vmem:[%s9285_s1 + $0x3e0] ss:$8 sps:$4 sm:$0xff]  }
  0xc0   :  { %4719 = vmatpush1.bf16.msra.mxu0 %v6375_v9  ;;  %4301 = vmatprep.subr.bf16.mxu1 %v6383_v10  ;;  %v6471_v9 = vld [vmem:[%s9285_s1 + $0xde0] ss:$8 sps:$4 sm:$0xff]   ;;  %v6476_v10 = vld [vmem:[%s9285_s1 + $0x3f4] ss:$8 sps:$4 sm:$0xff]  }
  0xc1   :  { %4731 = vmatprep.subr.bf16.mxu0 %v6389_v11  ;;  %v6479_v11 = vld [vmem:[%s9285_s1 + $0xdf4] ss:$8 sps:$4 sm:$0xff]  }
  0xc2   :  { %4291 = vmatmul.mubr.bf16.vlgmr.msra.gmra.mrb[0].mxu1 %v6378_v12  ;;  %v6474_v12 = vld [vmem:[%s9285_s1 + $0x3f0] ss:$8 sps:$4 sm:$0xff]  }
  0xc3   :  { %4721 = vmatmul.mubr.bf16.vlgmr.msra.gmra.mrb[0].mxu0 %v6384_v14  ;;  %4302 = vmatpush1.bf16.msra.mxu1 %v6381_v13  ;;  %v6477_v13 = vld [vmem:[%s9285_s1 + $0xdf0] ss:$8 sps:$4 sm:$0xff]   ;;  %v6485_v14 = vld [vmem:[%s9285_s1 + $0x404] ss:$8 sps:$4 sm:$0xff]  }
  0xc4   :  { %4732 = vmatpush1.bf16.msra.mxu0 %v6387_v15  ;;  %4303 = vmatprep.subr.bf16.mxu1 %v6392_v16  ;;  %v6491_v15 = vld [vmem:[%s9285_s1 + $0xe04] ss:$8 sps:$4 sm:$0xff]   ;;  %v6480_v16 = vld [vmem:[%s9286_s0 + $0x18] ss:$164 sps:$4 sm:$0xff]  }
  0xc5   :  { %4733 = vmatprep.subr.bf16.mxu0 %v6395_v17  ;;  %4333 = vmatprep.mubr.bf16.mxu1 %v6482_v18  ;;  %v6483_v17 = vld [vmem:[%s9285_s1 + $0x400] ss:$8 sps:$4 sm:$0xff]  }
  0xc6   :  { %4763 = vmatprep.mubr.bf16.mxu0 %v6488_v19  ;;  %v6486_v18 = vld [vmem:[%s9286_s0 + $0x68] ss:$164 sps:$4 sm:$0xff]  }
  0xc7   :  { %4304 = vmatpush1.bf16.msra.mxu1 %v6390_v20  ;;  %v6489_v19 = vld [vmem:[%s9285_s1 + $0xe00] ss:$8 sps:$4 sm:$0xff]   ;;  %v6494_v20 = vld [vmem:[%s9285_s1 + $0x414] ss:$8 sps:$4 sm:$0xff]  }
  0xc8   :  { %4734 = vmatpush1.bf16.msra.mxu0 %v6393_v21  ;;  %4305 = vmatprep.subr.bf16.mxu1 %v6398_v22  ;;  %v6497_v21 = vld [vmem:[%s9285_s1 + $0xe14] ss:$8 sps:$4 sm:$0xff]   ;;  %v6584_v22 = vld [vmem:[%s9286_s0 + $0x24] ss:$164 sps:$4 sm:$0xff]  }
  0xc9   :  { %4735 = vmatprep.subr.bf16.mxu0 %v6401_v23  ;;  %v6590_v23 = vld [vmem:[%s9286_s0 + $0x74] ss:$164 sps:$4 sm:$0xff]  }
  0xcb   :  { %4306 = vmatpush1.bf16.msra.mxu1 %v6396_v24  ;;  %v6492_v24 = vld [vmem:[%s9285_s1 + $0x410] ss:$8 sps:$4 sm:$0xff]  }
  0xcc   :  { %4736 = vmatpush1.bf16.msra.mxu0 %v6399_v25  ;;  %4307 = vmatprep.subr.bf16.mxu1 %v6404_v26  ;;  %v6495_v25 = vld [vmem:[%s9285_s1 + $0xe10] ss:$8 sps:$4 sm:$0xff]   ;;  %v6500_v26 = vld [vmem:[%s9285_s1 + $0x424] ss:$8 sps:$4 sm:$0xff]  }
  0xcd   :  { %4737 = vmatprep.subr.bf16.mxu0 %v6407_v27  ;;  %v6503_v27 = vld [vmem:[%s9285_s1 + $0xe24] ss:$8 sps:$4 sm:$0xff]  }
  0xcf   :  { %4308 = vmatpush1.bf16.msra.mxu1 %v6402_v28  ;;  %v6498_v28 = vld [vmem:[%s9285_s1 + $0x420] ss:$8 sps:$4 sm:$0xff]  }
  0xd0   :  { %4738 = vmatpush1.bf16.msra.mxu0 %v6405_v29  ;;  %4309 = vmatprep.subr.bf16.mxu1 %v6410_v30  ;;  %v6501_v29 = vld [vmem:[%s9285_s1 + $0xe20] ss:$8 sps:$4 sm:$0xff]   ;;  %v6506_v30 = vld [vmem:[%s9285_s1 + $0x434] ss:$8 sps:$4 sm:$0xff]  }
  0xd1   :  { %4739 = vmatprep.subr.bf16.mxu0 %v6413_v31  ;;  %v6509_v31 = vld [vmem:[%s9285_s1 + $0xe34] ss:$8 sps:$4 sm:$0xff]  }
  0xd3   :  { %4310 = vmatpush1.bf16.msra.mxu1 %v6408_v32  ;;  %v6504_v32 = vld [vmem:[%s9285_s1 + $0x430] ss:$8 sps:$4 sm:$0xff]  }
  0xd4   :  { %4740 = vmatpush1.bf16.msra.mxu0 %v6411_v33  ;;  %4311 = vmatprep.subr.bf16.mxu1 %v6416_v34  ;;  %v6507_v33 = vld [vmem:[%s9285_s1 + $0xe30] ss:$8 sps:$4 sm:$0xff]   ;;  %v6512_v34 = vld [vmem:[%s9285_s1 + $0x444] ss:$8 sps:$4 sm:$0xff]  }
  0xd5   :  { %4741 = vmatprep.subr.bf16.mxu0 %v6419_v35  ;;  %v6515_v35 = vld [vmem:[%s9285_s1 + $0xe44] ss:$8 sps:$4 sm:$0xff]  }
  0xd7   :  { %4312 = vmatpush1.bf16.msra.mxu1 %v6414_v36  ;;  %v6510_v36 = vld [vmem:[%s9285_s1 + $0x440] ss:$8 sps:$4 sm:$0xff]  }
  0xd8   :  { %4742 = vmatpush1.bf16.msra.mxu0 %v6417_v37  ;;  %4313 = vmatprep.subr.bf16.mxu1 %v6422_v38  ;;  %v6513_v37 = vld [vmem:[%s9285_s1 + $0xe40] ss:$8 sps:$4 sm:$0xff]   ;;  %v6518_v38 = vld [vmem:[%s9285_s1 + $0x454] ss:$8 sps:$4 sm:$0xff]  }
  0xd9   :  { %4743 = vmatprep.subr.bf16.mxu0 %v6425_v39  ;;  %v6521_v39 = vld [vmem:[%s9285_s1 + $0xe54] ss:$8 sps:$4 sm:$0xff]  }
  0xdb   :  { %4314 = vmatpush1.bf16.msra.mxu1 %v6420_v40  ;;  %v6516_v40 = vld [vmem:[%s9285_s1 + $0x450] ss:$8 sps:$4 sm:$0xff]  }
  0xdc   :  { %4744 = vmatpush1.bf16.msra.mxu0 %v6423_v41  ;;  %4315 = vmatprep.subr.bf16.mxu1 %v6428_v42  ;;  %v6519_v41 = vld [vmem:[%s9285_s1 + $0xe50] ss:$8 sps:$4 sm:$0xff]   ;;  %v6524_v42 = vld [vmem:[%s9285_s1 + $0x464] ss:$8 sps:$4 sm:$0xff]  }
  0xdd   :  { %4745 = vmatprep.subr.bf16.mxu0 %v6431_v43  ;;  %v6527_v43 = vld [vmem:[%s9285_s1 + $0xe64] ss:$8 sps:$4 sm:$0xff]  }
  0xdf   :  { %4316 = vmatpush1.bf16.msra.mxu1 %v6426_v44  ;;  %v6522_v44 = vld [vmem:[%s9285_s1 + $0x460] ss:$8 sps:$4 sm:$0xff]  }
  0xe0   :  { %4746 = vmatpush1.bf16.msra.mxu0 %v6429_v45  ;;  %4317 = vmatprep.subr.bf16.mxu1 %v6434_v46  ;;  %v6525_v45 = vld [vmem:[%s9285_s1 + $0xe60] ss:$8 sps:$4 sm:$0xff]   ;;  %v6530_v46 = vld [vmem:[%s9285_s1 + $0x474] ss:$8 sps:$4 sm:$0xff]  }
  0xe1   :  { %4747 = vmatprep.subr.bf16.mxu0 %v6437_v47  ;;  %v6533_v47 = vld [vmem:[%s9285_s1 + $0xe74] ss:$8 sps:$4 sm:$0xff]  }
  0xe3   :  { %4318 = vmatpush1.bf16.msra.mxu1 %v6432_v48  ;;  %v6528_v48 = vld [vmem:[%s9285_s1 + $0x470] ss:$8 sps:$4 sm:$0xff]  }
  0xe4   :  { %4748 = vmatpush1.bf16.msra.mxu0 %v6435_v49  ;;  %4319 = vmatprep.subr.bf16.mxu1 %v6440_v50  ;;  %v6531_v49 = vld [vmem:[%s9285_s1 + $0xe70] ss:$8 sps:$4 sm:$0xff]   ;;  %v6536_v50 = vld [vmem:[%s9285_s1 + $0x484] ss:$8 sps:$4 sm:$0xff]  }
  0xe5   :  { %4749 = vmatprep.subr.bf16.mxu0 %v6443_v51  ;;  %v6539_v51 = vld [vmem:[%s9285_s1 + $0xe84] ss:$8 sps:$4 sm:$0xff]  }
  0xe7   :  { %4320 = vmatpush1.bf16.msra.mxu1 %v6438_v52  ;;  %v6534_v52 = vld [vmem:[%s9285_s1 + $0x480] ss:$8 sps:$4 sm:$0xff]  }
  0xe8   :  { %4750 = vmatpush1.bf16.msra.mxu0 %v6441_v53  ;;  %4321 = vmatprep.subr.bf16.mxu1 %v6446_v54  ;;  %v6537_v53 = vld [vmem:[%s9285_s1 + $0xe80] ss:$8 sps:$4 sm:$0xff]   ;;  %v6542_v54 = vld [vmem:[%s9285_s1 + $0x494] ss:$8 sps:$4 sm:$0xff]  }
  0xe9   :  { %4751 = vmatprep.subr.bf16.mxu0 %v6449_v55  ;;  %v6545_v55 = vld [vmem:[%s9285_s1 + $0xe94] ss:$8 sps:$4 sm:$0xff]  }
  0xeb   :  { %4322 = vmatpush1.bf16.msra.mxu1 %v6444_v56  ;;  %v6540_v56 = vld [vmem:[%s9285_s1 + $0x490] ss:$8 sps:$4 sm:$0xff]  }
  0xec   :  { %4752 = vmatpush1.bf16.msra.mxu0 %v6447_v57  ;;  %4323 = vmatprep.subr.bf16.mxu1 %v6452_v58  ;;  %v6543_v57 = vld [vmem:[%s9285_s1 + $0xe90] ss:$8 sps:$4 sm:$0xff]   ;;  %v6548_v58 = vld [vmem:[%s9285_s1 + $0x4a4] ss:$8 sps:$4 sm:$0xff]  }
  0xed   :  { %4753 = vmatprep.subr.bf16.mxu0 %v6455_v59  ;;  %v6551_v59 = vld [vmem:[%s9285_s1 + $0xea4] ss:$8 sps:$4 sm:$0xff]  }
  0xef   :  { %4324 = vmatpush1.bf16.msra.mxu1 %v6450_v60  ;;  %v6546_v60 = vld [vmem:[%s9285_s1 + $0x4a0] ss:$8 sps:$4 sm:$0xff]  }
  0xf0   :  { %4754 = vmatpush1.bf16.msra.mxu0 %v6453_v61  ;;  %4325 = vmatprep.subr.bf16.mxu1 %v6458_v62  ;;  %v6549_v61 = vld [vmem:[%s9285_s1 + $0xea0] ss:$8 sps:$4 sm:$0xff]   ;;  %v6554_v62 = vld [vmem:[%s9285_s1 + $0x4b4] ss:$8 sps:$4 sm:$0xff]  }
  0xf1   :  { %4755 = vmatprep.subr.bf16.mxu0 %v6461_v63  ;;  %v6557_v63 = vld [vmem:[%s9285_s1 + $0xeb4] ss:$8 sps:$4 sm:$0xff]  }
  0xf3   :  { %4326 = vmatpush1.bf16.msra.mxu1 %v6456_v0  ;;  %v6552_v0 = vld [vmem:[%s9285_s1 + $0x4b0] ss:$8 sps:$4 sm:$0xff]  }
  0xf4   :  { %4756 = vmatpush1.bf16.msra.mxu0 %v6459_v1  ;;  %4327 = vmatprep.subr.bf16.mxu1 %v6464_v2  ;;  %v6555_v1 = vld [vmem:[%s9285_s1 + $0xeb0] ss:$8 sps:$4 sm:$0xff]   ;;  %v6560_v2 = vld [vmem:[%s9285_s1 + $0x4c4] ss:$8 sps:$4 sm:$0xff]  }
  0xf5   :  { %4757 = vmatprep.subr.bf16.mxu0 %v6467_v3  ;;  %v6563_v3 = vld [vmem:[%s9285_s1 + $0xec4] ss:$8 sps:$4 sm:$0xff]  }
  0xf7   :  { %4328 = vmatpush1.bf16.msra.mxu1 %v6462_v4  ;;  %v6558_v4 = vld [vmem:[%s9285_s1 + $0x4c0] ss:$8 sps:$4 sm:$0xff]  }
  0xf8   :  { %4758 = vmatpush1.bf16.msra.mxu0 %v6465_v5  ;;  %4329 = vmatprep.subr.bf16.mxu1 %v6470_v6  ;;  %v6561_v5 = vld [vmem:[%s9285_s1 + $0xec0] ss:$8 sps:$4 sm:$0xff]   ;;  %v6566_v6 = vld [vmem:[%s9285_s1 + $0x4d4] ss:$8 sps:$4 sm:$0xff]  }
  0xf9   :  { %4759 = vmatprep.subr.bf16.mxu0 %v6473_v7  ;;  %v6569_v7 = vld [vmem:[%s9285_s1 + $0xed4] ss:$8 sps:$4 sm:$0xff]  }
  0xfb   :  { %4330 = vmatpush1.bf16.msra.mxu1 %v6468_v8  ;;  %v6564_v8 = vld [vmem:[%s9285_s1 + $0x4d0] ss:$8 sps:$4 sm:$0xff]  }
  0xfc   :  { %4760 = vmatpush1.bf16.msra.mxu0 %v6471_v9  ;;  %4331 = vmatprep.subr.bf16.mxu1 %v6476_v10  ;;  %v6567_v9 = vld [vmem:[%s9285_s1 + $0xed0] ss:$8 sps:$4 sm:$0xff]   ;;  %v6572_v10 = vld [vmem:[%s9285_s1 + $0x4e4] ss:$8 sps:$4 sm:$0xff]  }
  0xfd   :  { %4761 = vmatprep.subr.bf16.mxu0 %v6479_v11  ;;  %v6575_v11 = vld [vmem:[%s9285_s1 + $0xee4] ss:$8 sps:$4 sm:$0xff]  }
  0xff   :  { %4332 = vmatpush1.bf16.msra.mxu1 %v6474_v12  ;;  %v6570_v12 = vld [vmem:[%s9285_s1 + $0x4e0] ss:$8 sps:$4 sm:$0xff]  }
 0x100   :  { %4762 = vmatpush1.bf16.msra.mxu0 %v6477_v13  ;;  %4344 = vmatprep.subr.bf16.mxu1 %v6485_v14  ;;  %v6573_v13 = vld [vmem:[%s9285_s1 + $0xee0] ss:$8 sps:$4 sm:$0xff]   ;;  %v6578_v14 = vld [vmem:[%s9285_s1 + $0x4f4] ss:$8 sps:$4 sm:$0xff]  }
 0x101   :  { %4774 = vmatprep.subr.bf16.mxu0 %v6491_v15  ;;  %v6581_v15 = vld [vmem:[%s9285_s1 + $0xef4] ss:$8 sps:$4 sm:$0xff]  }
 0x102   :  { %4334 = vmatmul.mubr.bf16.vlgmr.msra.gmra.mrb[0].mxu1 %v6480_v16  ;;  %v6576_v16 = vld [vmem:[%s9285_s1 + $0x4f0] ss:$8 sps:$4 sm:$0xff]  }
 0x103   :  { %4764 = vmatmul.mubr.bf16.vlgmr.msra.gmra.mrb[0].mxu0 %v6486_v18  ;;  %4345 = vmatpush1.bf16.msra.mxu1 %v6483_v17  ;;  %v6579_v17 = vld [vmem:[%s9285_s1 + $0xef0] ss:$8 sps:$4 sm:$0xff]   ;;  %v6587_v18 = vld [vmem:[%s9285_s1 + $0x504] ss:$8 sps:$4 sm:$0xff]  }
 0x104   :  { %4775 = vmatpush1.bf16.msra.mxu0 %v6489_v19  ;;  %4346 = vmatprep.subr.bf16.mxu1 %v6494_v20  ;;  %v6582_v19 = vld [vmem:[%s9286_s0 + $0x20] ss:$164 sps:$4 sm:$0xff]   ;;  %v6588_v20 = vld [vmem:[%s9286_s0 + $0x70] ss:$164 sps:$4 sm:$0xff]  }
 0x105   :  { %4776 = vmatprep.subr.bf16.mxu0 %v6497_v21  ;;  %4376 = vmatprep.mubr.bf16.mxu1 %v6584_v22  ;;  %v6593_v21 = vld [vmem:[%s9285_s1 + $0xf04] ss:$8 sps:$4 sm:$0xff]   ;;  %v6585_v22 = vld [vmem:[%s9285_s1 + $0x500] ss:$8 sps:$4 sm:$0xff]  }
 0x106   :  { %4806 = vmatprep.mubr.bf16.mxu0 %v6590_v23  ;;  %v6591_v23 = vld [vmem:[%s9285_s1 + $0xf00] ss:$8 sps:$4 sm:$0xff]  }
 0x107   :  { %4347 = vmatpush1.bf16.msra.mxu1 %v6492_v24  ;;  %v6596_v24 = vld [vmem:[%s9285_s1 + $0x514] ss:$8 sps:$4 sm:$0xff]  }
 0x108   :  { %4777 = vmatpush1.bf16.msra.mxu0 %v6495_v25  ;;  %4348 = vmatprep.subr.bf16.mxu1 %v6500_v26  ;;  %v6599_v25 = vld [vmem:[%s9285_s1 + $0xf14] ss:$8 sps:$4 sm:$0xff]   ;;  %v6686_v26 = vld [vmem:[%s9286_s0 + $0x2c] ss:$164 sps:$4 sm:$0xff]  }
 0x109   :  { %4778 = vmatprep.subr.bf16.mxu0 %v6503_v27  ;;  %v6692_v27 = vld [vmem:[%s9286_s0 + $0x7c] ss:$164 sps:$4 sm:$0xff]  }
 0x10b   :  { %4349 = vmatpush1.bf16.msra.mxu1 %v6498_v28  ;;  %v6594_v28 = vld [vmem:[%s9285_s1 + $0x510] ss:$8 sps:$4 sm:$0xff]  }
 0x10c   :  { %4779 = vmatpush1.bf16.msra.mxu0 %v6501_v29  ;;  %4350 = vmatprep.subr.bf16.mxu1 %v6506_v30  ;;  %v6597_v29 = vld [vmem:[%s9285_s1 + $0xf10] ss:$8 sps:$4 sm:$0xff]   ;;  %v6602_v30 = vld [vmem:[%s9285_s1 + $0x524] ss:$8 sps:$4 sm:$0xff]  }
 0x10d   :  { %4780 = vmatprep.subr.bf16.mxu0 %v6509_v31  ;;  %v6605_v31 = vld [vmem:[%s9285_s1 + $0xf24] ss:$8 sps:$4 sm:$0xff]  }
 0x10f   :  { %4351 = vmatpush1.bf16.msra.mxu1 %v6504_v32  ;;  %v6600_v32 = vld [vmem:[%s9285_s1 + $0x520] ss:$8 sps:$4 sm:$0xff]  }
 0x110   :  { %4781 = vmatpush1.bf16.msra.mxu0 %v6507_v33  ;;  %4352 = vmatprep.subr.bf16.mxu1 %v6512_v34  ;;  %v6603_v33 = vld [vmem:[%s9285_s1 + $0xf20] ss:$8 sps:$4 sm:$0xff]   ;;  %v6608_v34 = vld [vmem:[%s9285_s1 + $0x534] ss:$8 sps:$4 sm:$0xff]  }
 0x111   :  { %4782 = vmatprep.subr.bf16.mxu0 %v6515_v35  ;;  %v6611_v35 = vld [vmem:[%s9285_s1 + $0xf34] ss:$8 sps:$4 sm:$0xff]  }
 0x113   :  { %4353 = vmatpush1.bf16.msra.mxu1 %v6510_v36  ;;  %v6606_v36 = vld [vmem:[%s9285_s1 + $0x530] ss:$8 sps:$4 sm:$0xff]  }
 0x114   :  { %4783 = vmatpush1.bf16.msra.mxu0 %v6513_v37  ;;  %4354 = vmatprep.subr.bf16.mxu1 %v6518_v38  ;;  %v6609_v37 = vld [vmem:[%s9285_s1 + $0xf30] ss:$8 sps:$4 sm:$0xff]   ;;  %v6614_v38 = vld [vmem:[%s9285_s1 + $0x544] ss:$8 sps:$4 sm:$0xff]  }
 0x115   :  { %4784 = vmatprep.subr.bf16.mxu0 %v6521_v39  ;;  %v6617_v39 = vld [vmem:[%s9285_s1 + $0xf44] ss:$8 sps:$4 sm:$0xff]  }
 0x117   :  { %4355 = vmatpush1.bf16.msra.mxu1 %v6516_v40  ;;  %v6612_v40 = vld [vmem:[%s9285_s1 + $0x540] ss:$8 sps:$4 sm:$0xff]  }
 0x118   :  { %4785 = vmatpush1.bf16.msra.mxu0 %v6519_v41  ;;  %4356 = vmatprep.subr.bf16.mxu1 %v6524_v42  ;;  %v6615_v41 = vld [vmem:[%s9285_s1 + $0xf40] ss:$8 sps:$4 sm:$0xff]   ;;  %v6620_v42 = vld [vmem:[%s9285_s1 + $0x554] ss:$8 sps:$4 sm:$0xff]  }
 0x119   :  { %4786 = vmatprep.subr.bf16.mxu0 %v6527_v43  ;;  %v6623_v43 = vld [vmem:[%s9285_s1 + $0xf54] ss:$8 sps:$4 sm:$0xff]  }
 0x11b   :  { %4357 = vmatpush1.bf16.msra.mxu1 %v6522_v44  ;;  %v6618_v44 = vld [vmem:[%s9285_s1 + $0x550] ss:$8 sps:$4 sm:$0xff]  }
 0x11c   :  { %4787 = vmatpush1.bf16.msra.mxu0 %v6525_v45  ;;  %4358 = vmatprep.subr.bf16.mxu1 %v6530_v46  ;;  %v6621_v45 = vld [vmem:[%s9285_s1 + $0xf50] ss:$8 sps:$4 sm:$0xff]   ;;  %v6626_v46 = vld [vmem:[%s9285_s1 + $0x564] ss:$8 sps:$4 sm:$0xff]  }
 0x11d   :  { %4788 = vmatprep.subr.bf16.mxu0 %v6533_v47  ;;  %v6629_v47 = vld [vmem:[%s9285_s1 + $0xf64] ss:$8 sps:$4 sm:$0xff]  }
 0x11f   :  { %4359 = vmatpush1.bf16.msra.mxu1 %v6528_v48  ;;  %v6624_v48 = vld [vmem:[%s9285_s1 + $0x560] ss:$8 sps:$4 sm:$0xff]  }
 0x120   :  { %4789 = vmatpush1.bf16.msra.mxu0 %v6531_v49  ;;  %4360 = vmatprep.subr.bf16.mxu1 %v6536_v50  ;;  %v6627_v49 = vld [vmem:[%s9285_s1 + $0xf60] ss:$8 sps:$4 sm:$0xff]   ;;  %v6632_v50 = vld [vmem:[%s9285_s1 + $0x574] ss:$8 sps:$4 sm:$0xff]  }
 0x121   :  { %4790 = vmatprep.subr.bf16.mxu0 %v6539_v51  ;;  %v6635_v51 = vld [vmem:[%s9285_s1 + $0xf74] ss:$8 sps:$4 sm:$0xff]  }
 0x123   :  { %4361 = vmatpush1.bf16.msra.mxu1 %v6534_v52  ;;  %v6630_v52 = vld [vmem:[%s9285_s1 + $0x570] ss:$8 sps:$4 sm:$0xff]  }
 0x124   :  { %4791 = vmatpush1.bf16.msra.mxu0 %v6537_v53  ;;  %4362 = vmatprep.subr.bf16.mxu1 %v6542_v54  ;;  %v6633_v53 = vld [vmem:[%s9285_s1 + $0xf70] ss:$8 sps:$4 sm:$0xff]   ;;  %v6638_v54 = vld [vmem:[%s9285_s1 + $0x584] ss:$8 sps:$4 sm:$0xff]  }
 0x125   :  { %4792 = vmatprep.subr.bf16.mxu0 %v6545_v55  ;;  %v6641_v55 = vld [vmem:[%s9285_s1 + $0xf84] ss:$8 sps:$4 sm:$0xff]  }
 0x127   :  { %4363 = vmatpush1.bf16.msra.mxu1 %v6540_v56  ;;  %v6636_v56 = vld [vmem:[%s9285_s1 + $0x580] ss:$8 sps:$4 sm:$0xff]  }
 0x128   :  { %4793 = vmatpush1.bf16.msra.mxu0 %v6543_v57  ;;  %4364 = vmatprep.subr.bf16.mxu1 %v6548_v58  ;;  %v6639_v57 = vld [vmem:[%s9285_s1 + $0xf80] ss:$8 sps:$4 sm:$0xff]   ;;  %v6644_v58 = vld [vmem:[%s9285_s1 + $0x594] ss:$8 sps:$4 sm:$0xff]  }
 0x129   :  { %4794 = vmatprep.subr.bf16.mxu0 %v6551_v59  ;;  %v6647_v59 = vld [vmem:[%s9285_s1 + $0xf94] ss:$8 sps:$4 sm:$0xff]  }
 0x12b   :  { %4365 = vmatpush1.bf16.msra.mxu1 %v6546_v60  ;;  %v6642_v60 = vld [vmem:[%s9285_s1 + $0x590] ss:$8 sps:$4 sm:$0xff]  }
 0x12c   :  { %4795 = vmatpush1.bf16.msra.mxu0 %v6549_v61  ;;  %4366 = vmatprep.subr.bf16.mxu1 %v6554_v62  ;;  %v6645_v61 = vld [vmem:[%s9285_s1 + $0xf90] ss:$8 sps:$4 sm:$0xff]   ;;  %v6650_v62 = vld [vmem:[%s9285_s1 + $0x5a4] ss:$8 sps:$4 sm:$0xff]  }
 0x12d   :  { %4796 = vmatprep.subr.bf16.mxu0 %v6557_v63  ;;  %v6653_v63 = vld [vmem:[%s9285_s1 + $0xfa4] ss:$8 sps:$4 sm:$0xff]  }
 0x12f   :  { %4367 = vmatpush1.bf16.msra.mxu1 %v6552_v0  ;;  %v6648_v0 = vld [vmem:[%s9285_s1 + $0x5a0] ss:$8 sps:$4 sm:$0xff]  }
 0x130   :  { %4797 = vmatpush1.bf16.msra.mxu0 %v6555_v1  ;;  %4368 = vmatprep.subr.bf16.mxu1 %v6560_v2  ;;  %v6651_v1 = vld [vmem:[%s9285_s1 + $0xfa0] ss:$8 sps:$4 sm:$0xff]   ;;  %v6656_v2 = vld [vmem:[%s9285_s1 + $0x5b4] ss:$8 sps:$4 sm:$0xff]  }
 0x131   :  { %4798 = vmatprep.subr.bf16.mxu0 %v6563_v3  ;;  %v6659_v3 = vld [vmem:[%s9285_s1 + $0xfb4] ss:$8 sps:$4 sm:$0xff]  }
 0x133   :  { %4369 = vmatpush1.bf16.msra.mxu1 %v6558_v4  ;;  %v6654_v4 = vld [vmem:[%s9285_s1 + $0x5b0] ss:$8 sps:$4 sm:$0xff]  }
 0x134   :  { %4799 = vmatpush1.bf16.msra.mxu0 %v6561_v5  ;;  %4370 = vmatprep.subr.bf16.mxu1 %v6566_v6  ;;  %v6657_v5 = vld [vmem:[%s9285_s1 + $0xfb0] ss:$8 sps:$4 sm:$0xff]   ;;  %v6662_v6 = vld [vmem:[%s9285_s1 + $0x5c4] ss:$8 sps:$4 sm:$0xff]  }
 0x135   :  { %4800 = vmatprep.subr.bf16.mxu0 %v6569_v7  ;;  %v6665_v7 = vld [vmem:[%s9285_s1 + $0xfc4] ss:$8 sps:$4 sm:$0xff]  }
 0x137   :  { %4371 = vmatpush1.bf16.msra.mxu1 %v6564_v8  ;;  %v6660_v8 = vld [vmem:[%s9285_s1 + $0x5c0] ss:$8 sps:$4 sm:$0xff]  }
 0x138   :  { %4801 = vmatpush1.bf16.msra.mxu0 %v6567_v9  ;;  %4372 = vmatprep.subr.bf16.mxu1 %v6572_v10  ;;  %v6663_v9 = vld [vmem:[%s9285_s1 + $0xfc0] ss:$8 sps:$4 sm:$0xff]   ;;  %v6668_v10 = vld [vmem:[%s9285_s1 + $0x5d4] ss:$8 sps:$4 sm:$0xff]  }
 0x139   :  { %4802 = vmatprep.subr.bf16.mxu0 %v6575_v11  ;;  %v6671_v11 = vld [vmem:[%s9285_s1 + $0xfd4] ss:$8 sps:$4 sm:$0xff]  }
 0x13b   :  { %4373 = vmatpush1.bf16.msra.mxu1 %v6570_v12  ;;  %v6666_v12 = vld [vmem:[%s9285_s1 + $0x5d0] ss:$8 sps:$4 sm:$0xff]  }
 0x13c   :  { %4803 = vmatpush1.bf16.msra.mxu0 %v6573_v13  ;;  %4374 = vmatprep.subr.bf16.mxu1 %v6578_v14  ;;  %v6669_v13 = vld [vmem:[%s9285_s1 + $0xfd0] ss:$8 sps:$4 sm:$0xff]   ;;  %v6674_v14 = vld [vmem:[%s9285_s1 + $0x5e4] ss:$8 sps:$4 sm:$0xff]  }
 0x13d   :  { %4804 = vmatprep.subr.bf16.mxu0 %v6581_v15  ;;  %v6677_v15 = vld [vmem:[%s9285_s1 + $0xfe4] ss:$8 sps:$4 sm:$0xff]  }
 0x13f   :  { %4375 = vmatpush1.bf16.msra.mxu1 %v6576_v16  ;;  %v6672_v16 = vld [vmem:[%s9285_s1 + $0x5e0] ss:$8 sps:$4 sm:$0xff]  }
 0x140   :  { %4805 = vmatpush1.bf16.msra.mxu0 %v6579_v17  ;;  %4387 = vmatprep.subr.bf16.mxu1 %v6587_v18  ;;  %v6675_v17 = vld [vmem:[%s9285_s1 + $0xfe0] ss:$8 sps:$4 sm:$0xff]   ;;  %v6680_v18 = vld [vmem:[%s9285_s1 + $0x5f4] ss:$8 sps:$4 sm:$0xff]  }
 0x141   :  { %4817 = vmatprep.subr.bf16.mxu0 %v6593_v21  ;;  %v6681_v21 = vld [vmem:[%s9285_s1 + $0xff0] ss:$8 sps:$4 sm:$0xff]  }
 0x142   :  { %4377 = vmatmul.mubr.bf16.vlgmr.msra.gmra.mrb[0].mxu1 %v6582_v19  ;;  %v6683_v19 = vld [vmem:[%s9285_s1 + $0xff4] ss:$8 sps:$4 sm:$0xff]  }
 0x143   :  { %4807 = vmatmul.mubr.bf16.vlgmr.msra.gmra.mrb[0].mxu0 %v6588_v20  ;;  %4388 = vmatpush1.bf16.msra.mxu1 %v6585_v22  ;;  %v6678_v20 = vld [vmem:[%s9285_s1 + $0x5f0] ss:$8 sps:$4 sm:$0xff]   ;;  %v6689_v22 = vld [vmem:[%s9285_s1 + $0x604] ss:$8 sps:$4 sm:$0xff]  }
 0x144   :  { %4818 = vmatpush1.bf16.msra.mxu0 %v6591_v23  ;;  %4389 = vmatprep.subr.bf16.mxu1 %v6596_v24  ;;  %v6684_v23 = vld [vmem:[%s9286_s0 + $0x28] ss:$164 sps:$4 sm:$0xff]   ;;  %v6690_v24 = vld [vmem:[%s9286_s0 + $0x78] ss:$164 sps:$4 sm:$0xff]  }
 0x145   :  { %4819 = vmatprep.subr.bf16.mxu0 %v6599_v25  ;;  %4419 = vmatprep.mubr.bf16.mxu1 %v6686_v26  ;;  %v6695_v25 = vld [vmem:[%s9285_s1 + $0x1004] ss:$8 sps:$4 sm:$0xff]   ;;  %v6687_v26 = vld [vmem:[%s9285_s1 + $0x600] ss:$8 sps:$4 sm:$0xff]  }
 0x146   :  { %4849 = vmatprep.mubr.bf16.mxu0 %v6692_v27  ;;  %v6693_v27 = vld [vmem:[%s9285_s1 + $0x1000] ss:$8 sps:$4 sm:$0xff]  }
 0x147   :  { %4390 = vmatpush1.bf16.msra.mxu1 %v6594_v28  ;;  %v6698_v28 = vld [vmem:[%s9285_s1 + $0x614] ss:$8 sps:$4 sm:$0xff]  }
 0x148   :  { %4820 = vmatpush1.bf16.msra.mxu0 %v6597_v29  ;;  %4391 = vmatprep.subr.bf16.mxu1 %v6602_v30  ;;  %v6701_v29 = vld [vmem:[%s9285_s1 + $0x1014] ss:$8 sps:$4 sm:$0xff]  }
 0x149   :  { %4821 = vmatprep.subr.bf16.mxu0 %v6605_v31  ;;  %v6788_v30 = vld [vmem:[%s9286_s0 + $0x34] ss:$164 sps:$4 sm:$0xff]   ;;  %v6794_v31 = vld [vmem:[%s9286_s0 + $0x84] ss:$164 sps:$4 sm:$0xff]  }
 0x14b   :  { %4392 = vmatpush1.bf16.msra.mxu1 %v6600_v32  ;;  %v6696_v32 = vld [vmem:[%s9285_s1 + $0x610] ss:$8 sps:$4 sm:$0xff]  }
 0x14c   :  { %4822 = vmatpush1.bf16.msra.mxu0 %v6603_v33  ;;  %4393 = vmatprep.subr.bf16.mxu1 %v6608_v34  ;;  %v6699_v33 = vld [vmem:[%s9285_s1 + $0x1010] ss:$8 sps:$4 sm:$0xff]   ;;  %v6704_v34 = vld [vmem:[%s9285_s1 + $0x624] ss:$8 sps:$4 sm:$0xff]  }
 0x14d   :  { %4823 = vmatprep.subr.bf16.mxu0 %v6611_v35  ;;  %v6707_v35 = vld [vmem:[%s9285_s1 + $0x1024] ss:$8 sps:$4 sm:$0xff]  }
 0x14f   :  { %4394 = vmatpush1.bf16.msra.mxu1 %v6606_v36  ;;  %v6702_v36 = vld [vmem:[%s9285_s1 + $0x620] ss:$8 sps:$4 sm:$0xff]  }
 0x150   :  { %4824 = vmatpush1.bf16.msra.mxu0 %v6609_v37  ;;  %4395 = vmatprep.subr.bf16.mxu1 %v6614_v38  ;;  %v6705_v37 = vld [vmem:[%s9285_s1 + $0x1020] ss:$8 sps:$4 sm:$0xff]   ;;  %v6710_v38 = vld [vmem:[%s9285_s1 + $0x634] ss:$8 sps:$4 sm:$0xff]  }
 0x151   :  { %4825 = vmatprep.subr.bf16.mxu0 %v6617_v39  ;;  %v6713_v39 = vld [vmem:[%s9285_s1 + $0x1034] ss:$8 sps:$4 sm:$0xff]  }
 0x153   :  { %4396 = vmatpush1.bf16.msra.mxu1 %v6612_v40  ;;  %v6708_v40 = vld [vmem:[%s9285_s1 + $0x630] ss:$8 sps:$4 sm:$0xff]  }
 0x154   :  { %4826 = vmatpush1.bf16.msra.mxu0 %v6615_v41  ;;  %4397 = vmatprep.subr.bf16.mxu1 %v6620_v42  ;;  %v6711_v41 = vld [vmem:[%s9285_s1 + $0x1030] ss:$8 sps:$4 sm:$0xff]   ;;  %v6716_v42 = vld [vmem:[%s9285_s1 + $0x644] ss:$8 sps:$4 sm:$0xff]  }
 0x155   :  { %4827 = vmatprep.subr.bf16.mxu0 %v6623_v43  ;;  %v6719_v43 = vld [vmem:[%s9285_s1 + $0x1044] ss:$8 sps:$4 sm:$0xff]  }
 0x157   :  { %4398 = vmatpush1.bf16.msra.mxu1 %v6618_v44  ;;  %v6714_v44 = vld [vmem:[%s9285_s1 + $0x640] ss:$8 sps:$4 sm:$0xff]  }
 0x158   :  { %4828 = vmatpush1.bf16.msra.mxu0 %v6621_v45  ;;  %4399 = vmatprep.subr.bf16.mxu1 %v6626_v46  ;;  %v6717_v45 = vld [vmem:[%s9285_s1 + $0x1040] ss:$8 sps:$4 sm:$0xff]   ;;  %v6722_v46 = vld [vmem:[%s9285_s1 + $0x654] ss:$8 sps:$4 sm:$0xff]  }
 0x159   :  { %4829 = vmatprep.subr.bf16.mxu0 %v6629_v47  ;;  %v6725_v47 = vld [vmem:[%s9285_s1 + $0x1054] ss:$8 sps:$4 sm:$0xff]  }
 0x15b   :  { %4400 = vmatpush1.bf16.msra.mxu1 %v6624_v48  ;;  %v6720_v48 = vld [vmem:[%s9285_s1 + $0x650] ss:$8 sps:$4 sm:$0xff]  }
 0x15c   :  { %4830 = vmatpush1.bf16.msra.mxu0 %v6627_v49  ;;  %4401 = vmatprep.subr.bf16.mxu1 %v6632_v50  ;;  %v6723_v49 = vld [vmem:[%s9285_s1 + $0x1050] ss:$8 sps:$4 sm:$0xff]   ;;  %v6728_v50 = vld [vmem:[%s9285_s1 + $0x664] ss:$8 sps:$4 sm:$0xff]  }
 0x15d   :  { %4831 = vmatprep.subr.bf16.mxu0 %v6635_v51  ;;  %v6731_v51 = vld [vmem:[%s9285_s1 + $0x1064] ss:$8 sps:$4 sm:$0xff]  }
 0x15f   :  { %4402 = vmatpush1.bf16.msra.mxu1 %v6630_v52  ;;  %v6726_v52 = vld [vmem:[%s9285_s1 + $0x660] ss:$8 sps:$4 sm:$0xff]  }
 0x160   :  { %4832 = vmatpush1.bf16.msra.mxu0 %v6633_v53  ;;  %4403 = vmatprep.subr.bf16.mxu1 %v6638_v54  ;;  %v6729_v53 = vld [vmem:[%s9285_s1 + $0x1060] ss:$8 sps:$4 sm:$0xff]   ;;  %v6734_v54 = vld [vmem:[%s9285_s1 + $0x674] ss:$8 sps:$4 sm:$0xff]  }
 0x161   :  { %4833 = vmatprep.subr.bf16.mxu0 %v6641_v55  ;;  %v6737_v55 = vld [vmem:[%s9285_s1 + $0x1074] ss:$8 sps:$4 sm:$0xff]  }
 0x163   :  { %4404 = vmatpush1.bf16.msra.mxu1 %v6636_v56  ;;  %v6732_v56 = vld [vmem:[%s9285_s1 + $0x670] ss:$8 sps:$4 sm:$0xff]  }
 0x164   :  { %4834 = vmatpush1.bf16.msra.mxu0 %v6639_v57  ;;  %4405 = vmatprep.subr.bf16.mxu1 %v6644_v58  ;;  %v6735_v57 = vld [vmem:[%s9285_s1 + $0x1070] ss:$8 sps:$4 sm:$0xff]   ;;  %v6740_v58 = vld [vmem:[%s9285_s1 + $0x684] ss:$8 sps:$4 sm:$0xff]  }
 0x165   :  { %4835 = vmatprep.subr.bf16.mxu0 %v6647_v59  ;;  %v6743_v59 = vld [vmem:[%s9285_s1 + $0x1084] ss:$8 sps:$4 sm:$0xff]  }
 0x167   :  { %4406 = vmatpush1.bf16.msra.mxu1 %v6642_v60  ;;  %v6738_v60 = vld [vmem:[%s9285_s1 + $0x680] ss:$8 sps:$4 sm:$0xff]  }
 0x168   :  { %4836 = vmatpush1.bf16.msra.mxu0 %v6645_v61  ;;  %4407 = vmatprep.subr.bf16.mxu1 %v6650_v62  ;;  %v6741_v61 = vld [vmem:[%s9285_s1 + $0x1080] ss:$8 sps:$4 sm:$0xff]   ;;  %v6746_v62 = vld [vmem:[%s9285_s1 + $0x694] ss:$8 sps:$4 sm:$0xff]  }
 0x169   :  { %4837 = vmatprep.subr.bf16.mxu0 %v6653_v63  ;;  %v6749_v63 = vld [vmem:[%s9285_s1 + $0x1094] ss:$8 sps:$4 sm:$0xff]  }
 0x16b   :  { %4408 = vmatpush1.bf16.msra.mxu1 %v6648_v0  ;;  %v6744_v0 = vld [vmem:[%s9285_s1 + $0x690] ss:$8 sps:$4 sm:$0xff]  }
 0x16c   :  { %4838 = vmatpush1.bf16.msra.mxu0 %v6651_v1  ;;  %4409 = vmatprep.subr.bf16.mxu1 %v6656_v2  ;;  %v6747_v1 = vld [vmem:[%s9285_s1 + $0x1090] ss:$8 sps:$4 sm:$0xff]   ;;  %v6752_v2 = vld [vmem:[%s9285_s1 + $0x6a4] ss:$8 sps:$4 sm:$0xff]  }
 0x16d   :  { %4839 = vmatprep.subr.bf16.mxu0 %v6659_v3  ;;  %v6755_v3 = vld [vmem:[%s9285_s1 + $0x10a4] ss:$8 sps:$4 sm:$0xff]  }
 0x16f   :  { %4410 = vmatpush1.bf16.msra.mxu1 %v6654_v4  ;;  %v6750_v4 = vld [vmem:[%s9285_s1 + $0x6a0] ss:$8 sps:$4 sm:$0xff]  }
 0x170   :  { %4840 = vmatpush1.bf16.msra.mxu0 %v6657_v5  ;;  %4411 = vmatprep.subr.bf16.mxu1 %v6662_v6  ;;  %v6753_v5 = vld [vmem:[%s9285_s1 + $0x10a0] ss:$8 sps:$4 sm:$0xff]   ;;  %v6758_v6 = vld [vmem:[%s9285_s1 + $0x6b4] ss:$8 sps:$4 sm:$0xff]  }
 0x171   :  { %4841 = vmatprep.subr.bf16.mxu0 %v6665_v7  ;;  %v6761_v7 = vld [vmem:[%s9285_s1 + $0x10b4] ss:$8 sps:$4 sm:$0xff]  }
 0x173   :  { %4412 = vmatpush1.bf16.msra.mxu1 %v6660_v8  ;;  %v6756_v8 = vld [vmem:[%s9285_s1 + $0x6b0] ss:$8 sps:$4 sm:$0xff]  }
 0x174   :  { %4842 = vmatpush1.bf16.msra.mxu0 %v6663_v9  ;;  %4413 = vmatprep.subr.bf16.mxu1 %v6668_v10  ;;  %v6759_v9 = vld [vmem:[%s9285_s1 + $0x10b0] ss:$8 sps:$4 sm:$0xff]   ;;  %v6764_v10 = vld [vmem:[%s9285_s1 + $0x6c4] ss:$8 sps:$4 sm:$0xff]  }
 0x175   :  { %4843 = vmatprep.subr.bf16.mxu0 %v6671_v11  ;;  %v6767_v11 = vld [vmem:[%s9285_s1 + $0x10c4] ss:$8 sps:$4 sm:$0xff]  }
 0x177   :  { %4414 = vmatpush1.bf16.msra.mxu1 %v6666_v12  ;;  %v6762_v12 = vld [vmem:[%s9285_s1 + $0x6c0] ss:$8 sps:$4 sm:$0xff]  }
 0x178   :  { %4844 = vmatpush1.bf16.msra.mxu0 %v6669_v13  ;;  %4415 = vmatprep.subr.bf16.mxu1 %v6674_v14  ;;  %v6765_v13 = vld [vmem:[%s9285_s1 + $0x10c0] ss:$8 sps:$4 sm:$0xff]   ;;  %v6770_v14 = vld [vmem:[%s9285_s1 + $0x6d4] ss:$8 sps:$4 sm:$0xff]  }
 0x179   :  { %4845 = vmatprep.subr.bf16.mxu0 %v6677_v15  ;;  %v6773_v15 = vld [vmem:[%s9285_s1 + $0x10d4] ss:$8 sps:$4 sm:$0xff]  }
 0x17b   :  { %4416 = vmatpush1.bf16.msra.mxu1 %v6672_v16  ;;  %v6768_v16 = vld [vmem:[%s9285_s1 + $0x6d0] ss:$8 sps:$4 sm:$0xff]  }
 0x17c   :  { %4846 = vmatpush1.bf16.msra.mxu0 %v6675_v17  ;;  %4417 = vmatprep.subr.bf16.mxu1 %v6680_v18  ;;  %v6771_v17 = vld [vmem:[%s9285_s1 + $0x10d0] ss:$8 sps:$4 sm:$0xff]   ;;  %v6776_v18 = vld [vmem:[%s9285_s1 + $0x6e4] ss:$8 sps:$4 sm:$0xff]  }
 0x17d   :  { %4847 = vmatprep.subr.bf16.mxu0 %v6683_v19  ;;  %v6779_v19 = vld [vmem:[%s9285_s1 + $0x10e4] ss:$8 sps:$4 sm:$0xff]  }
 0x17f   :  { %4418 = vmatpush1.bf16.msra.mxu1 %v6678_v20  ;;  %v6774_v20 = vld [vmem:[%s9285_s1 + $0x6e0] ss:$8 sps:$4 sm:$0xff]  }
 0x180   :  { %4848 = vmatpush1.bf16.msra.mxu0 %v6681_v21  ;;  %4430 = vmatprep.subr.bf16.mxu1 %v6689_v22  ;;  %v6777_v21 = vld [vmem:[%s9285_s1 + $0x10e0] ss:$8 sps:$4 sm:$0xff]   ;;  %v6782_v22 = vld [vmem:[%s9285_s1 + $0x6f4] ss:$8 sps:$4 sm:$0xff]  }
 0x181   :  { %4860 = vmatprep.subr.bf16.mxu0 %v6695_v25  ;;  %v6783_v25 = vld [vmem:[%s9285_s1 + $0x10f0] ss:$8 sps:$4 sm:$0xff]  }
 0x182   :  { %4420 = vmatmul.mubr.bf16.vlgmr.msra.gmra.mrb[0].mxu1 %v6684_v23  ;;  %v6785_v23 = vld [vmem:[%s9285_s1 + $0x10f4] ss:$8 sps:$4 sm:$0xff]  }
 0x183   :  { %4850 = vmatmul.mubr.bf16.vlgmr.msra.gmra.mrb[0].mxu0 %v6690_v24  ;;  %4431 = vmatpush1.bf16.msra.mxu1 %v6687_v26  ;;  %v6780_v24 = vld [vmem:[%s9285_s1 + $0x6f0] ss:$8 sps:$4 sm:$0xff]   ;;  %v6791_v26 = vld [vmem:[%s9285_s1 + $0x704] ss:$8 sps:$4 sm:$0xff]  }
 0x184   :  { %4861 = vmatpush1.bf16.msra.mxu0 %v6693_v27  ;;  %4432 = vmatprep.subr.bf16.mxu1 %v6698_v28  ;;  %v6797_v27 = vld [vmem:[%s9285_s1 + $0x1104] ss:$8 sps:$4 sm:$0xff]   ;;  %v6786_v28 = vld [vmem:[%s9286_s0 + $0x30] ss:$164 sps:$4 sm:$0xff]  }
 0x185   :  { %4862 = vmatprep.subr.bf16.mxu0 %v6701_v29  ;;  %4462 = vmatprep.mubr.bf16.mxu1 %v6788_v30  ;;  %v6792_v29 = vld [vmem:[%s9286_s0 + $0x80] ss:$164 sps:$4 sm:$0xff]  }
 0x186   :  { %4892 = vmatprep.mubr.bf16.mxu0 %v6794_v31  ;;  %v6789_v30 = vld [vmem:[%s9285_s1 + $0x700] ss:$8 sps:$4 sm:$0xff]  }
 0x187   :  { %4433 = vmatpush1.bf16.msra.mxu1 %v6696_v32  ;;  %v6795_v31 = vld [vmem:[%s9285_s1 + $0x1100] ss:$8 sps:$4 sm:$0xff]   ;;  %v6800_v32 = vld [vmem:[%s9285_s1 + $0x714] ss:$8 sps:$4 sm:$0xff]  }
 0x188   :  { %4863 = vmatpush1.bf16.msra.mxu0 %v6699_v33  ;;  %4434 = vmatprep.subr.bf16.mxu1 %v6704_v34  ;;  %v6803_v33 = vld [vmem:[%s9285_s1 + $0x1114] ss:$8 sps:$4 sm:$0xff]  }
 0x189   :  { %4864 = vmatprep.subr.bf16.mxu0 %v6707_v35  ;;  %v6890_v34 = vld [vmem:[%s9286_s0 + $0x3c] ss:$164 sps:$4 sm:$0xff]   ;;  %v6896_v35 = vld [vmem:[%s9286_s0 + $0x8c] ss:$164 sps:$4 sm:$0xff]  }
 0x18b   :  { %4435 = vmatpush1.bf16.msra.mxu1 %v6702_v36  ;;  %v6798_v36 = vld [vmem:[%s9285_s1 + $0x710] ss:$8 sps:$4 sm:$0xff]  }
 0x18c   :  { %4865 = vmatpush1.bf16.msra.mxu0 %v6705_v37  ;;  %4436 = vmatprep.subr.bf16.mxu1 %v6710_v38  ;;  %v6801_v37 = vld [vmem:[%s9285_s1 + $0x1110] ss:$8 sps:$4 sm:$0xff]   ;;  %v6806_v38 = vld [vmem:[%s9285_s1 + $0x724] ss:$8 sps:$4 sm:$0xff]  }
 0x18d   :  { %4866 = vmatprep.subr.bf16.mxu0 %v6713_v39  ;;  %v6809_v39 = vld [vmem:[%s9285_s1 + $0x1124] ss:$8 sps:$4 sm:$0xff]  }
 0x18f   :  { %4437 = vmatpush1.bf16.msra.mxu1 %v6708_v40  ;;  %v6804_v40 = vld [vmem:[%s9285_s1 + $0x720] ss:$8 sps:$4 sm:$0xff]  }
 0x190   :  { %4867 = vmatpush1.bf16.msra.mxu0 %v6711_v41  ;;  %4438 = vmatprep.subr.bf16.mxu1 %v6716_v42  ;;  %v6807_v41 = vld [vmem:[%s9285_s1 + $0x1120] ss:$8 sps:$4 sm:$0xff]   ;;  %v6812_v42 = vld [vmem:[%s9285_s1 + $0x734] ss:$8 sps:$4 sm:$0xff]  }
 0x191   :  { %4868 = vmatprep.subr.bf16.mxu0 %v6719_v43  ;;  %v6815_v43 = vld [vmem:[%s9285_s1 + $0x1134] ss:$8 sps:$4 sm:$0xff]  }
 0x193   :  { %4439 = vmatpush1.bf16.msra.mxu1 %v6714_v44  ;;  %v6810_v44 = vld [vmem:[%s9285_s1 + $0x730] ss:$8 sps:$4 sm:$0xff]  }
 0x194   :  { %4869 = vmatpush1.bf16.msra.mxu0 %v6717_v45  ;;  %4440 = vmatprep.subr.bf16.mxu1 %v6722_v46  ;;  %v6813_v45 = vld [vmem:[%s9285_s1 + $0x1130] ss:$8 sps:$4 sm:$0xff]   ;;  %v6818_v46 = vld [vmem:[%s9285_s1 + $0x744] ss:$8 sps:$4 sm:$0xff]  }
 0x195   :  { %4870 = vmatprep.subr.bf16.mxu0 %v6725_v47  ;;  %v6821_v47 = vld [vmem:[%s9285_s1 + $0x1144] ss:$8 sps:$4 sm:$0xff]  }
 0x197   :  { %4441 = vmatpush1.bf16.msra.mxu1 %v6720_v48  ;;  %v6816_v48 = vld [vmem:[%s9285_s1 + $0x740] ss:$8 sps:$4 sm:$0xff]  }
 0x198   :  { %4871 = vmatpush1.bf16.msra.mxu0 %v6723_v49  ;;  %4442 = vmatprep.subr.bf16.mxu1 %v6728_v50  ;;  %v6819_v49 = vld [vmem:[%s9285_s1 + $0x1140] ss:$8 sps:$4 sm:$0xff]   ;;  %v6824_v50 = vld [vmem:[%s9285_s1 + $0x754] ss:$8 sps:$4 sm:$0xff]  }
 0x199   :  { %4872 = vmatprep.subr.bf16.mxu0 %v6731_v51  ;;  %v6827_v51 = vld [vmem:[%s9285_s1 + $0x1154] ss:$8 sps:$4 sm:$0xff]  }
 0x19b   :  { %4443 = vmatpush1.bf16.msra.mxu1 %v6726_v52  ;;  %v6822_v52 = vld [vmem:[%s9285_s1 + $0x750] ss:$8 sps:$4 sm:$0xff]  }
 0x19c   :  { %4873 = vmatpush1.bf16.msra.mxu0 %v6729_v53  ;;  %4444 = vmatprep.subr.bf16.mxu1 %v6734_v54  ;;  %v6825_v53 = vld [vmem:[%s9285_s1 + $0x1150] ss:$8 sps:$4 sm:$0xff]   ;;  %v6830_v54 = vld [vmem:[%s9285_s1 + $0x764] ss:$8 sps:$4 sm:$0xff]  }
 0x19d   :  { %4874 = vmatprep.subr.bf16.mxu0 %v6737_v55  ;;  %v6833_v55 = vld [vmem:[%s9285_s1 + $0x1164] ss:$8 sps:$4 sm:$0xff]  }
 0x19f   :  { %4445 = vmatpush1.bf16.msra.mxu1 %v6732_v56  ;;  %v6828_v56 = vld [vmem:[%s9285_s1 + $0x760] ss:$8 sps:$4 sm:$0xff]  }
 0x1a0   :  { %4875 = vmatpush1.bf16.msra.mxu0 %v6735_v57  ;;  %4446 = vmatprep.subr.bf16.mxu1 %v6740_v58  ;;  %v6831_v57 = vld [vmem:[%s9285_s1 + $0x1160] ss:$8 sps:$4 sm:$0xff]   ;;  %v6836_v58 = vld [vmem:[%s9285_s1 + $0x774] ss:$8 sps:$4 sm:$0xff]  }
 0x1a1   :  { %4876 = vmatprep.subr.bf16.mxu0 %v6743_v59  ;;  %v6839_v59 = vld [vmem:[%s9285_s1 + $0x1174] ss:$8 sps:$4 sm:$0xff]  }
 0x1a3   :  { %4447 = vmatpush1.bf16.msra.mxu1 %v6738_v60  ;;  %v6834_v60 = vld [vmem:[%s9285_s1 + $0x770] ss:$8 sps:$4 sm:$0xff]  }
 0x1a4   :  { %4877 = vmatpush1.bf16.msra.mxu0 %v6741_v61  ;;  %4448 = vmatprep.subr.bf16.mxu1 %v6746_v62  ;;  %v6837_v61 = vld [vmem:[%s9285_s1 + $0x1170] ss:$8 sps:$4 sm:$0xff]   ;;  %v6842_v62 = vld [vmem:[%s9285_s1 + $0x784] ss:$8 sps:$4 sm:$0xff]  }
 0x1a5   :  { %4878 = vmatprep.subr.bf16.mxu0 %v6749_v63  ;;  %v6845_v63 = vld [vmem:[%s9285_s1 + $0x1184] ss:$8 sps:$4 sm:$0xff]  }
 0x1a7   :  { %4449 = vmatpush1.bf16.msra.mxu1 %v6744_v0  ;;  %v6840_v0 = vld [vmem:[%s9285_s1 + $0x780] ss:$8 sps:$4 sm:$0xff]  }
 0x1a8   :  { %4879 = vmatpush1.bf16.msra.mxu0 %v6747_v1  ;;  %4450 = vmatprep.subr.bf16.mxu1 %v6752_v2  ;;  %v6843_v1 = vld [vmem:[%s9285_s1 + $0x1180] ss:$8 sps:$4 sm:$0xff]   ;;  %v6848_v2 = vld [vmem:[%s9285_s1 + $0x794] ss:$8 sps:$4 sm:$0xff]  }
 0x1a9   :  { %4880 = vmatprep.subr.bf16.mxu0 %v6755_v3  ;;  %v6851_v3 = vld [vmem:[%s9285_s1 + $0x1194] ss:$8 sps:$4 sm:$0xff]  }
 0x1ab   :  { %4451 = vmatpush1.bf16.msra.mxu1 %v6750_v4  ;;  %v6846_v4 = vld [vmem:[%s9285_s1 + $0x790] ss:$8 sps:$4 sm:$0xff]  }
 0x1ac   :  { %4881 = vmatpush1.bf16.msra.mxu0 %v6753_v5  ;;  %4452 = vmatprep.subr.bf16.mxu1 %v6758_v6  ;;  %v6849_v5 = vld [vmem:[%s9285_s1 + $0x1190] ss:$8 sps:$4 sm:$0xff]   ;;  %v6854_v6 = vld [vmem:[%s9285_s1 + $0x7a4] ss:$8 sps:$4 sm:$0xff]  }
 0x1ad   :  { %4882 = vmatprep.subr.bf16.mxu0 %v6761_v7  ;;  %v6857_v7 = vld [vmem:[%s9285_s1 + $0x11a4] ss:$8 sps:$4 sm:$0xff]  }
 0x1af   :  { %4453 = vmatpush1.bf16.msra.mxu1 %v6756_v8  ;;  %v6852_v8 = vld [vmem:[%s9285_s1 + $0x7a0] ss:$8 sps:$4 sm:$0xff]  }
 0x1b0   :  { %4883 = vmatpush1.bf16.msra.mxu0 %v6759_v9  ;;  %4454 = vmatprep.subr.bf16.mxu1 %v6764_v10  ;;  %v6855_v9 = vld [vmem:[%s9285_s1 + $0x11a0] ss:$8 sps:$4 sm:$0xff]   ;;  %v6860_v10 = vld [vmem:[%s9285_s1 + $0x7b4] ss:$8 sps:$4 sm:$0xff]  }
 0x1b1   :  { %4884 = vmatprep.subr.bf16.mxu0 %v6767_v11  ;;  %v6863_v11 = vld [vmem:[%s9285_s1 + $0x11b4] ss:$8 sps:$4 sm:$0xff]  }
 0x1b3   :  { %4455 = vmatpush1.bf16.msra.mxu1 %v6762_v12  ;;  %v6858_v12 = vld [vmem:[%s9285_s1 + $0x7b0] ss:$8 sps:$4 sm:$0xff]  }
 0x1b4   :  { %4885 = vmatpush1.bf16.msra.mxu0 %v6765_v13  ;;  %4456 = vmatprep.subr.bf16.mxu1 %v6770_v14  ;;  %v6861_v13 = vld [vmem:[%s9285_s1 + $0x11b0] ss:$8 sps:$4 sm:$0xff]   ;;  %v6866_v14 = vld [vmem:[%s9285_s1 + $0x7c4] ss:$8 sps:$4 sm:$0xff]  }
 0x1b5   :  { %4886 = vmatprep.subr.bf16.mxu0 %v6773_v15  ;;  %v6869_v15 = vld [vmem:[%s9285_s1 + $0x11c4] ss:$8 sps:$4 sm:$0xff]  }
 0x1b7   :  { %4457 = vmatpush1.bf16.msra.mxu1 %v6768_v16  ;;  %v6864_v16 = vld [vmem:[%s9285_s1 + $0x7c0] ss:$8 sps:$4 sm:$0xff]  }
 0x1b8   :  { %4887 = vmatpush1.bf16.msra.mxu0 %v6771_v17  ;;  %4458 = vmatprep.subr.bf16.mxu1 %v6776_v18  ;;  %v6867_v17 = vld [vmem:[%s9285_s1 + $0x11c0] ss:$8 sps:$4 sm:$0xff]   ;;  %v6872_v18 = vld [vmem:[%s9285_s1 + $0x7d4] ss:$8 sps:$4 sm:$0xff]  }
 0x1b9   :  { %4888 = vmatprep.subr.bf16.mxu0 %v6779_v19  ;;  %v6875_v19 = vld [vmem:[%s9285_s1 + $0x11d4] ss:$8 sps:$4 sm:$0xff]  }
 0x1bb   :  { %4459 = vmatpush1.bf16.msra.mxu1 %v6774_v20  ;;  %v6870_v20 = vld [vmem:[%s9285_s1 + $0x7d0] ss:$8 sps:$4 sm:$0xff]  }
 0x1bc   :  { %4889 = vmatpush1.bf16.msra.mxu0 %v6777_v21  ;;  %4460 = vmatprep.subr.bf16.mxu1 %v6782_v22  ;;  %v6873_v21 = vld [vmem:[%s9285_s1 + $0x11d0] ss:$8 sps:$4 sm:$0xff]   ;;  %v6878_v22 = vld [vmem:[%s9285_s1 + $0x7e4] ss:$8 sps:$4 sm:$0xff]  }
 0x1bd   :  { %4890 = vmatprep.subr.bf16.mxu0 %v6785_v23  ;;  %v6881_v23 = vld [vmem:[%s9285_s1 + $0x11e4] ss:$8 sps:$4 sm:$0xff]  }
 0x1bf   :  { %4461 = vmatpush1.bf16.msra.mxu1 %v6780_v24  ;;  %v6876_v24 = vld [vmem:[%s9285_s1 + $0x7e0] ss:$8 sps:$4 sm:$0xff]  }
 0x1c0   :  { %4891 = vmatpush1.bf16.msra.mxu0 %v6783_v25  ;;  %4473 = vmatprep.subr.bf16.mxu1 %v6791_v26  ;;  %v6879_v25 = vld [vmem:[%s9285_s1 + $0x11e0] ss:$8 sps:$4 sm:$0xff]   ;;  %v6884_v26 = vld [vmem:[%s9285_s1 + $0x7f4] ss:$8 sps:$4 sm:$0xff]  }
 0x1c1   :  { %4903 = vmatprep.subr.bf16.mxu0 %v6797_v27  ;;  %v6887_v27 = vld [vmem:[%s9285_s1 + $0x11f4] ss:$8 sps:$4 sm:$0xff]  }
 0x1c2   :  { %4463 = vmatmul.mubr.bf16.vlgmr.msra.gmra.mrb[0].mxu1 %v6786_v28  ;;  %v6882_v28 = vld [vmem:[%s9285_s1 + $0x7f0] ss:$8 sps:$4 sm:$0xff]  }
 0x1c3   :  { %4893 = vmatmul.mubr.bf16.vlgmr.msra.gmra.mrb[0].mxu0 %v6792_v29  ;;  %4474 = vmatpush1.bf16.msra.mxu1 %v6789_v30  ;;  %v6885_v29 = vld [vmem:[%s9285_s1 + $0x11f0] ss:$8 sps:$4 sm:$0xff]   ;;  %v6893_v30 = vld [vmem:[%s9285_s1 + $0x804] ss:$8 sps:$4 sm:$0xff]  }
 0x1c4   :  { %4904 = vmatpush1.bf16.msra.mxu0 %v6795_v31  ;;  %4475 = vmatprep.subr.bf16.mxu1 %v6800_v32  ;;  %v6899_v31 = vld [vmem:[%s9285_s1 + $0x1204] ss:$8 sps:$4 sm:$0xff]   ;;  %v6888_v32 = vld [vmem:[%s9286_s0 + $0x38] ss:$164 sps:$4 sm:$0xff]  }
 0x1c5   :  { %4905 = vmatprep.subr.bf16.mxu0 %v6803_v33  ;;  %4505 = vmatprep.mubr.bf16.mxu1 %v6890_v34  ;;  %v6894_v33 = vld [vmem:[%s9286_s0 + $0x88] ss:$164 sps:$4 sm:$0xff]  }
 0x1c6   :  { %4935 = vmatprep.mubr.bf16.mxu0 %v6896_v35  ;;  %v6891_v34 = vld [vmem:[%s9285_s1 + $0x800] ss:$8 sps:$4 sm:$0xff]  }
 0x1c7   :  { %4476 = vmatpush1.bf16.msra.mxu1 %v6798_v36  ;;  %v6897_v35 = vld [vmem:[%s9285_s1 + $0x1200] ss:$8 sps:$4 sm:$0xff]   ;;  %v6902_v36 = vld [vmem:[%s9285_s1 + $0x814] ss:$8 sps:$4 sm:$0xff]  }
 0x1c8   :  { %4906 = vmatpush1.bf16.msra.mxu0 %v6801_v37  ;;  %4477 = vmatprep.subr.bf16.mxu1 %v6806_v38  ;;  %v6905_v37 = vld [vmem:[%s9285_s1 + $0x1214] ss:$8 sps:$4 sm:$0xff]   ;;  %v6992_v38 = vld [vmem:[%s9286_s0 + $0x44] ss:$164 sps:$4 sm:$0xff]  }
 0x1c9   :  { %4907 = vmatprep.subr.bf16.mxu0 %v6809_v39  ;;  %v6998_v39 = vld [vmem:[%s9286_s0 + $0x94] ss:$164 sps:$4 sm:$0xff]  }
 0x1cb   :  { %4478 = vmatpush1.bf16.msra.mxu1 %v6804_v40  ;;  %v6900_v40 = vld [vmem:[%s9285_s1 + $0x810] ss:$8 sps:$4 sm:$0xff]  }
 0x1cc   :  { %4908 = vmatpush1.bf16.msra.mxu0 %v6807_v41  ;;  %4479 = vmatprep.subr.bf16.mxu1 %v6812_v42  ;;  %v6903_v41 = vld [vmem:[%s9285_s1 + $0x1210] ss:$8 sps:$4 sm:$0xff]   ;;  %v6908_v42 = vld [vmem:[%s9285_s1 + $0x824] ss:$8 sps:$4 sm:$0xff]  }
 0x1cd   :  { %4909 = vmatprep.subr.bf16.mxu0 %v6815_v43  ;;  %v6911_v43 = vld [vmem:[%s9285_s1 + $0x1224] ss:$8 sps:$4 sm:$0xff]  }
 0x1cf   :  { %4480 = vmatpush1.bf16.msra.mxu1 %v6810_v44  ;;  %v6906_v44 = vld [vmem:[%s9285_s1 + $0x820] ss:$8 sps:$4 sm:$0xff]  }
 0x1d0   :  { %4910 = vmatpush1.bf16.msra.mxu0 %v6813_v45  ;;  %4481 = vmatprep.subr.bf16.mxu1 %v6818_v46  ;;  %v6909_v45 = vld [vmem:[%s9285_s1 + $0x1220] ss:$8 sps:$4 sm:$0xff]   ;;  %v6914_v46 = vld [vmem:[%s9285_s1 + $0x834] ss:$8 sps:$4 sm:$0xff]  }
 0x1d1   :  { %4911 = vmatprep.subr.bf16.mxu0 %v6821_v47  ;;  %v6917_v47 = vld [vmem:[%s9285_s1 + $0x1234] ss:$8 sps:$4 sm:$0xff]  }
 0x1d3   :  { %4482 = vmatpush1.bf16.msra.mxu1 %v6816_v48  ;;  %v6912_v48 = vld [vmem:[%s9285_s1 + $0x830] ss:$8 sps:$4 sm:$0xff]  }
 0x1d4   :  { %4912 = vmatpush1.bf16.msra.mxu0 %v6819_v49  ;;  %4483 = vmatprep.subr.bf16.mxu1 %v6824_v50  ;;  %v6915_v49 = vld [vmem:[%s9285_s1 + $0x1230] ss:$8 sps:$4 sm:$0xff]   ;;  %v6920_v50 = vld [vmem:[%s9285_s1 + $0x844] ss:$8 sps:$4 sm:$0xff]  }
 0x1d5   :  { %4913 = vmatprep.subr.bf16.mxu0 %v6827_v51  ;;  %v6923_v51 = vld [vmem:[%s9285_s1 + $0x1244] ss:$8 sps:$4 sm:$0xff]  }
 0x1d7   :  { %4484 = vmatpush1.bf16.msra.mxu1 %v6822_v52  ;;  %v6918_v52 = vld [vmem:[%s9285_s1 + $0x840] ss:$8 sps:$4 sm:$0xff]  }
 0x1d8   :  { %4914 = vmatpush1.bf16.msra.mxu0 %v6825_v53  ;;  %4485 = vmatprep.subr.bf16.mxu1 %v6830_v54  ;;  %v6921_v53 = vld [vmem:[%s9285_s1 + $0x1240] ss:$8 sps:$4 sm:$0xff]   ;;  %v6926_v54 = vld [vmem:[%s9285_s1 + $0x854] ss:$8 sps:$4 sm:$0xff]  }
 0x1d9   :  { %4915 = vmatprep.subr.bf16.mxu0 %v6833_v55  ;;  %v6929_v55 = vld [vmem:[%s9285_s1 + $0x1254] ss:$8 sps:$4 sm:$0xff]  }
 0x1db   :  { %4486 = vmatpush1.bf16.msra.mxu1 %v6828_v56  ;;  %v6924_v56 = vld [vmem:[%s9285_s1 + $0x850] ss:$8 sps:$4 sm:$0xff]  }
 0x1dc   :  { %4916 = vmatpush1.bf16.msra.mxu0 %v6831_v57  ;;  %4487 = vmatprep.subr.bf16.mxu1 %v6836_v58  ;;  %v6927_v57 = vld [vmem:[%s9285_s1 + $0x1250] ss:$8 sps:$4 sm:$0xff]   ;;  %v6932_v58 = vld [vmem:[%s9285_s1 + $0x864] ss:$8 sps:$4 sm:$0xff]  }
 0x1dd   :  { %4917 = vmatprep.subr.bf16.mxu0 %v6839_v59  ;;  %v6935_v59 = vld [vmem:[%s9285_s1 + $0x1264] ss:$8 sps:$4 sm:$0xff]  }
 0x1df   :  { %4488 = vmatpush1.bf16.msra.mxu1 %v6834_v60  ;;  %v6930_v60 = vld [vmem:[%s9285_s1 + $0x860] ss:$8 sps:$4 sm:$0xff]  }
 0x1e0   :  { %4918 = vmatpush1.bf16.msra.mxu0 %v6837_v61  ;;  %4489 = vmatprep.subr.bf16.mxu1 %v6842_v62  ;;  %v6933_v61 = vld [vmem:[%s9285_s1 + $0x1260] ss:$8 sps:$4 sm:$0xff]   ;;  %v6938_v62 = vld [vmem:[%s9285_s1 + $0x874] ss:$8 sps:$4 sm:$0xff]  }
 0x1e1   :  { %4919 = vmatprep.subr.bf16.mxu0 %v6845_v63  ;;  %v6941_v63 = vld [vmem:[%s9285_s1 + $0x1274] ss:$8 sps:$4 sm:$0xff]  }
 0x1e3   :  { %4490 = vmatpush1.bf16.msra.mxu1 %v6840_v0  ;;  %v6936_v0 = vld [vmem:[%s9285_s1 + $0x870] ss:$8 sps:$4 sm:$0xff]  }
 0x1e4   :  { %4920 = vmatpush1.bf16.msra.mxu0 %v6843_v1  ;;  %4491 = vmatprep.subr.bf16.mxu1 %v6848_v2  ;;  %v6939_v1 = vld [vmem:[%s9285_s1 + $0x1270] ss:$8 sps:$4 sm:$0xff]   ;;  %v6944_v2 = vld [vmem:[%s9285_s1 + $0x884] ss:$8 sps:$4 sm:$0xff]  }
 0x1e5   :  { %4921 = vmatprep.subr.bf16.mxu0 %v6851_v3  ;;  %v6947_v3 = vld [vmem:[%s9285_s1 + $0x1284] ss:$8 sps:$4 sm:$0xff]  }
 0x1e7   :  { %4492 = vmatpush1.bf16.msra.mxu1 %v6846_v4  ;;  %v6942_v4 = vld [vmem:[%s9285_s1 + $0x880] ss:$8 sps:$4 sm:$0xff]  }
 0x1e8   :  { %4922 = vmatpush1.bf16.msra.mxu0 %v6849_v5  ;;  %4493 = vmatprep.subr.bf16.mxu1 %v6854_v6  ;;  %v6945_v5 = vld [vmem:[%s9285_s1 + $0x1280] ss:$8 sps:$4 sm:$0xff]   ;;  %v6950_v6 = vld [vmem:[%s9285_s1 + $0x894] ss:$8 sps:$4 sm:$0xff]  }
 0x1e9   :  { %4923 = vmatprep.subr.bf16.mxu0 %v6857_v7  ;;  %v6953_v7 = vld [vmem:[%s9285_s1 + $0x1294] ss:$8 sps:$4 sm:$0xff]  }
 0x1eb   :  { %4494 = vmatpush1.bf16.msra.mxu1 %v6852_v8  ;;  %v6948_v8 = vld [vmem:[%s9285_s1 + $0x890] ss:$8 sps:$4 sm:$0xff]  }
 0x1ec   :  { %4924 = vmatpush1.bf16.msra.mxu0 %v6855_v9  ;;  %4495 = vmatprep.subr.bf16.mxu1 %v6860_v10  ;;  %v6951_v9 = vld [vmem:[%s9285_s1 + $0x1290] ss:$8 sps:$4 sm:$0xff]   ;;  %v6956_v10 = vld [vmem:[%s9285_s1 + $0x8a4] ss:$8 sps:$4 sm:$0xff]  }
 0x1ed   :  { %4925 = vmatprep.subr.bf16.mxu0 %v6863_v11  ;;  %v6959_v11 = vld [vmem:[%s9285_s1 + $0x12a4] ss:$8 sps:$4 sm:$0xff]  }
 0x1ef   :  { %4496 = vmatpush1.bf16.msra.mxu1 %v6858_v12  ;;  %v6954_v12 = vld [vmem:[%s9285_s1 + $0x8a0] ss:$8 sps:$4 sm:$0xff]  }
 0x1f0   :  { %4926 = vmatpush1.bf16.msra.mxu0 %v6861_v13  ;;  %4497 = vmatprep.subr.bf16.mxu1 %v6866_v14  ;;  %v6957_v13 = vld [vmem:[%s9285_s1 + $0x12a0] ss:$8 sps:$4 sm:$0xff]   ;;  %v6962_v14 = vld [vmem:[%s9285_s1 + $0x8b4] ss:$8 sps:$4 sm:$0xff]  }
 0x1f1   :  { %4927 = vmatprep.subr.bf16.mxu0 %v6869_v15  ;;  %v6965_v15 = vld [vmem:[%s9285_s1 + $0x12b4] ss:$8 sps:$4 sm:$0xff]  }
 0x1f3   :  { %4498 = vmatpush1.bf16.msra.mxu1 %v6864_v16  ;;  %v6960_v16 = vld [vmem:[%s9285_s1 + $0x8b0] ss:$8 sps:$4 sm:$0xff]  }
 0x1f4   :  { %4928 = vmatpush1.bf16.msra.mxu0 %v6867_v17  ;;  %4499 = vmatprep.subr.bf16.mxu1 %v6872_v18  ;;  %v6963_v17 = vld [vmem:[%s9285_s1 + $0x12b0] ss:$8 sps:$4 sm:$0xff]   ;;  %v6968_v18 = vld [vmem:[%s9285_s1 + $0x8c4] ss:$8 sps:$4 sm:$0xff]  }
 0x1f5   :  { %4929 = vmatprep.subr.bf16.mxu0 %v6875_v19  ;;  %v6971_v19 = vld [vmem:[%s9285_s1 + $0x12c4] ss:$8 sps:$4 sm:$0xff]  }
 0x1f7   :  { %4500 = vmatpush1.bf16.msra.mxu1 %v6870_v20  ;;  %v6966_v20 = vld [vmem:[%s9285_s1 + $0x8c0] ss:$8 sps:$4 sm:$0xff]  }
 0x1f8   :  { %4930 = vmatpush1.bf16.msra.mxu0 %v6873_v21  ;;  %4501 = vmatprep.subr.bf16.mxu1 %v6878_v22  ;;  %v6969_v21 = vld [vmem:[%s9285_s1 + $0x12c0] ss:$8 sps:$4 sm:$0xff]   ;;  %v6974_v22 = vld [vmem:[%s9285_s1 + $0x8d4] ss:$8 sps:$4 sm:$0xff]  }
 0x1f9   :  { %4931 = vmatprep.subr.bf16.mxu0 %v6881_v23  ;;  %v6977_v23 = vld [vmem:[%s9285_s1 + $0x12d4] ss:$8 sps:$4 sm:$0xff]  }
 0x1fb   :  { %4502 = vmatpush1.bf16.msra.mxu1 %v6876_v24  ;;  %v6972_v24 = vld [vmem:[%s9285_s1 + $0x8d0] ss:$8 sps:$4 sm:$0xff]  }
 0x1fc   :  { %4932 = vmatpush1.bf16.msra.mxu0 %v6879_v25  ;;  %4503 = vmatprep.subr.bf16.mxu1 %v6884_v26  ;;  %v6975_v25 = vld [vmem:[%s9285_s1 + $0x12d0] ss:$8 sps:$4 sm:$0xff]   ;;  %v6980_v26 = vld [vmem:[%s9285_s1 + $0x8e4] ss:$8 sps:$4 sm:$0xff]  }
 0x1fd   :  { %4933 = vmatprep.subr.bf16.mxu0 %v6887_v27  ;;  %v6983_v27 = vld [vmem:[%s9285_s1 + $0x12e4] ss:$8 sps:$4 sm:$0xff]  }
 0x1ff   :  { %4504 = vmatpush1.bf16.msra.mxu1 %v6882_v28  ;;  %v6978_v28 = vld [vmem:[%s9285_s1 + $0x8e0] ss:$8 sps:$4 sm:$0xff]  }
 0x200   :  { %4934 = vmatpush1.bf16.msra.mxu0 %v6885_v29  ;;  %4516 = vmatprep.subr.bf16.mxu1 %v6893_v30  ;;  %v6981_v29 = vld [vmem:[%s9285_s1 + $0x12e0] ss:$8 sps:$4 sm:$0xff]   ;;  %v6986_v30 = vld [vmem:[%s9285_s1 + $0x8f4] ss:$8 sps:$4 sm:$0xff]  }
 0x201   :  { %4946 = vmatprep.subr.bf16.mxu0 %v6899_v31  ;;  %v6989_v31 = vld [vmem:[%s9285_s1 + $0x12f4] ss:$8 sps:$4 sm:$0xff]  }
 0x202   :  { %4506 = vmatmul.mubr.bf16.vlgmr.msra.gmra.mrb[0].mxu1 %v6888_v32  ;;  %v6984_v32 = vld [vmem:[%s9285_s1 + $0x8f0] ss:$8 sps:$4 sm:$0xff]  }
 0x203   :  { %4936 = vmatmul.mubr.bf16.vlgmr.msra.gmra.mrb[0].mxu0 %v6894_v33  ;;  %4517 = vmatpush1.bf16.msra.mxu1 %v6891_v34  ;;  %v6987_v33 = vld [vmem:[%s9285_s1 + $0x12f0] ss:$8 sps:$4 sm:$0xff]   ;;  %v6995_v34 = vld [vmem:[%s9285_s1 + $0x904] ss:$8 sps:$4 sm:$0xff]  }
 0x204   :  { %4947 = vmatpush1.bf16.msra.mxu0 %v6897_v35  ;;  %4518 = vmatprep.subr.bf16.mxu1 %v6902_v36  ;;  %v7001_v35 = vld [vmem:[%s9285_s1 + $0x1304] ss:$8 sps:$4 sm:$0xff]  }
 0x205   :  { %4948 = vmatprep.subr.bf16.mxu0 %v6905_v37  ;;  %4548 = vmatprep.mubr.bf16.mxu1 %v6992_v38  ;;  %v6990_v36 = vld [vmem:[%s9286_s0 + $0x40] ss:$164 sps:$4 sm:$0xff]   ;;  %v6996_v37 = vld [vmem:[%s9286_s0 + $0x90] ss:$164 sps:$4 sm:$0xff]  }
 0x206   :  { %4978 = vmatprep.mubr.bf16.mxu0 %v6998_v39  ;;  %v6993_v38 = vld [vmem:[%s9285_s1 + $0x900] ss:$8 sps:$4 sm:$0xff]  }
 0x207   :  { %4519 = vmatpush1.bf16.msra.mxu1 %v6900_v40  ;;  %v6999_v39 = vld [vmem:[%s9285_s1 + $0x1300] ss:$8 sps:$4 sm:$0xff]   ;;  %v7004_v40 = vld [vmem:[%s9285_s1 + $0x914] ss:$8 sps:$4 sm:$0xff]  }
 0x208   :  { %4949 = vmatpush1.bf16.msra.mxu0 %v6903_v41  ;;  %4520 = vmatprep.subr.bf16.mxu1 %v6908_v42  ;;  %v7007_v41 = vld [vmem:[%s9285_s1 + $0x1314] ss:$8 sps:$4 sm:$0xff]   ;;  %v7094_v42 = vld [vmem:[%s9286_s0 + $0x4c] ss:$164 sps:$4 sm:$0xff]  }
 0x209   :  { %4950 = vmatprep.subr.bf16.mxu0 %v6911_v43  ;;  %v7097_v43 = vld [vmem:[%s9286_s0 + $0x9c] ss:$164 sps:$4 sm:$0xff]  }
 0x20b   :  { %4521 = vmatpush1.bf16.msra.mxu1 %v6906_v44  ;;  %v7002_v44 = vld [vmem:[%s9285_s1 + $0x910] ss:$8 sps:$4 sm:$0xff]  }
 0x20c   :  { %4951 = vmatpush1.bf16.msra.mxu0 %v6909_v45  ;;  %4522 = vmatprep.subr.bf16.mxu1 %v6914_v46  ;;  %v7005_v45 = vld [vmem:[%s9285_s1 + $0x1310] ss:$8 sps:$4 sm:$0xff]   ;;  %v7010_v46 = vld [vmem:[%s9285_s1 + $0x924] ss:$8 sps:$4 sm:$0xff]  }
 0x20d   :  { %4952 = vmatprep.subr.bf16.mxu0 %v6917_v47  ;;  %v7013_v47 = vld [vmem:[%s9285_s1 + $0x1324] ss:$8 sps:$4 sm:$0xff]  }
 0x20f   :  { %4523 = vmatpush1.bf16.msra.mxu1 %v6912_v48  ;;  %v7008_v48 = vld [vmem:[%s9285_s1 + $0x920] ss:$8 sps:$4 sm:$0xff]  }
 0x210   :  { %4953 = vmatpush1.bf16.msra.mxu0 %v6915_v49  ;;  %4524 = vmatprep.subr.bf16.mxu1 %v6920_v50  ;;  %v7011_v49 = vld [vmem:[%s9285_s1 + $0x1320] ss:$8 sps:$4 sm:$0xff]   ;;  %v7016_v50 = vld [vmem:[%s9285_s1 + $0x934] ss:$8 sps:$4 sm:$0xff]  }
 0x211   :  { %4954 = vmatprep.subr.bf16.mxu0 %v6923_v51  ;;  %v7019_v51 = vld [vmem:[%s9285_s1 + $0x1334] ss:$8 sps:$4 sm:$0xff]  }
 0x213   :  { %4525 = vmatpush1.bf16.msra.mxu1 %v6918_v52  ;;  %v7014_v52 = vld [vmem:[%s9285_s1 + $0x930] ss:$8 sps:$4 sm:$0xff]  }
 0x214   :  { %4955 = vmatpush1.bf16.msra.mxu0 %v6921_v53  ;;  %4526 = vmatprep.subr.bf16.mxu1 %v6926_v54  ;;  %v7017_v53 = vld [vmem:[%s9285_s1 + $0x1330] ss:$8 sps:$4 sm:$0xff]   ;;  %v7022_v54 = vld [vmem:[%s9285_s1 + $0x944] ss:$8 sps:$4 sm:$0xff]  }
 0x215   :  { %4956 = vmatprep.subr.bf16.mxu0 %v6929_v55  ;;  %v7025_v55 = vld [vmem:[%s9285_s1 + $0x1344] ss:$8 sps:$4 sm:$0xff]  }
 0x217   :  { %4527 = vmatpush1.bf16.msra.mxu1 %v6924_v56  ;;  %v7020_v56 = vld [vmem:[%s9285_s1 + $0x940] ss:$8 sps:$4 sm:$0xff]  }
 0x218   :  { %4957 = vmatpush1.bf16.msra.mxu0 %v6927_v57  ;;  %4528 = vmatprep.subr.bf16.mxu1 %v6932_v58  ;;  %v7023_v57 = vld [vmem:[%s9285_s1 + $0x1340] ss:$8 sps:$4 sm:$0xff]   ;;  %v7028_v58 = vld [vmem:[%s9285_s1 + $0x954] ss:$8 sps:$4 sm:$0xff]  }
 0x219   :  { %4958 = vmatprep.subr.bf16.mxu0 %v6935_v59  ;;  %v7031_v59 = vld [vmem:[%s9285_s1 + $0x1354] ss:$8 sps:$4 sm:$0xff]  }
 0x21b   :  { %4529 = vmatpush1.bf16.msra.mxu1 %v6930_v60  ;;  %v7026_v60 = vld [vmem:[%s9285_s1 + $0x950] ss:$8 sps:$4 sm:$0xff]  }
 0x21c   :  { %4959 = vmatpush1.bf16.msra.mxu0 %v6933_v61  ;;  %4530 = vmatprep.subr.bf16.mxu1 %v6938_v62  ;;  %v7029_v61 = vld [vmem:[%s9285_s1 + $0x1350] ss:$8 sps:$4 sm:$0xff]   ;;  %v7034_v62 = vld [vmem:[%s9285_s1 + $0x964] ss:$8 sps:$4 sm:$0xff]  }
 0x21d   :  { %4960 = vmatprep.subr.bf16.mxu0 %v6941_v63  ;;  %v7037_v63 = vld [vmem:[%s9285_s1 + $0x1364] ss:$8 sps:$4 sm:$0xff]  }
 0x21f   :  { %4531 = vmatpush1.bf16.msra.mxu1 %v6936_v0  ;;  %v7032_v0 = vld [vmem:[%s9285_s1 + $0x960] ss:$8 sps:$4 sm:$0xff]  }
 0x220   :  { %4961 = vmatpush1.bf16.msra.mxu0 %v6939_v1  ;;  %4532 = vmatprep.subr.bf16.mxu1 %v6944_v2  ;;  %v7035_v1 = vld [vmem:[%s9285_s1 + $0x1360] ss:$8 sps:$4 sm:$0xff]   ;;  %v7040_v2 = vld [vmem:[%s9285_s1 + $0x974] ss:$8 sps:$4 sm:$0xff]  }
 0x221   :  { %4962 = vmatprep.subr.bf16.mxu0 %v6947_v3  ;;  %v7043_v3 = vld [vmem:[%s9285_s1 + $0x1374] ss:$8 sps:$4 sm:$0xff]  }
 0x223   :  { %4533 = vmatpush1.bf16.msra.mxu1 %v6942_v4  ;;  %v7038_v4 = vld [vmem:[%s9285_s1 + $0x970] ss:$8 sps:$4 sm:$0xff]  }
 0x224   :  { %4963 = vmatpush1.bf16.msra.mxu0 %v6945_v5  ;;  %4534 = vmatprep.subr.bf16.mxu1 %v6950_v6  ;;  %v7041_v5 = vld [vmem:[%s9285_s1 + $0x1370] ss:$8 sps:$4 sm:$0xff]   ;;  %v7046_v6 = vld [vmem:[%s9285_s1 + $0x984] ss:$8 sps:$4 sm:$0xff]  }
 0x225   :  { %4964 = vmatprep.subr.bf16.mxu0 %v6953_v7  ;;  %v7049_v7 = vld [vmem:[%s9285_s1 + $0x1384] ss:$8 sps:$4 sm:$0xff]  }
 0x227   :  { %4535 = vmatpush1.bf16.msra.mxu1 %v6948_v8  ;;  %v7044_v8 = vld [vmem:[%s9285_s1 + $0x980] ss:$8 sps:$4 sm:$0xff]  }
 0x228   :  { %4965 = vmatpush1.bf16.msra.mxu0 %v6951_v9  ;;  %4536 = vmatprep.subr.bf16.mxu1 %v6956_v10  ;;  %v7047_v9 = vld [vmem:[%s9285_s1 + $0x1380] ss:$8 sps:$4 sm:$0xff]   ;;  %v7052_v10 = vld [vmem:[%s9285_s1 + $0x994] ss:$8 sps:$4 sm:$0xff]  }
 0x229   :  { %4966 = vmatprep.subr.bf16.mxu0 %v6959_v11  ;;  %v7055_v11 = vld [vmem:[%s9285_s1 + $0x1394] ss:$8 sps:$4 sm:$0xff]  }
 0x22b   :  { %4537 = vmatpush1.bf16.msra.mxu1 %v6954_v12  ;;  %v7050_v12 = vld [vmem:[%s9285_s1 + $0x990] ss:$8 sps:$4 sm:$0xff]  }
 0x22c   :  { %4967 = vmatpush1.bf16.msra.mxu0 %v6957_v13  ;;  %4538 = vmatprep.subr.bf16.mxu1 %v6962_v14  ;;  %v7053_v13 = vld [vmem:[%s9285_s1 + $0x1390] ss:$8 sps:$4 sm:$0xff]   ;;  %v7058_v14 = vld [vmem:[%s9285_s1 + $0x9a4] ss:$8 sps:$4 sm:$0xff]  }
 0x22d   :  { %4968 = vmatprep.subr.bf16.mxu0 %v6965_v15  ;;  %v7061_v15 = vld [vmem:[%s9285_s1 + $0x13a4] ss:$8 sps:$4 sm:$0xff]  }
 0x22f   :  { %4539 = vmatpush1.bf16.msra.mxu1 %v6960_v16  ;;  %v7056_v16 = vld [vmem:[%s9285_s1 + $0x9a0] ss:$8 sps:$4 sm:$0xff]  }
 0x230   :  { %4969 = vmatpush1.bf16.msra.mxu0 %v6963_v17  ;;  %4540 = vmatprep.subr.bf16.mxu1 %v6968_v18  ;;  %v7059_v17 = vld [vmem:[%s9285_s1 + $0x13a0] ss:$8 sps:$4 sm:$0xff]   ;;  %v7064_v18 = vld [vmem:[%s9285_s1 + $0x9b4] ss:$8 sps:$4 sm:$0xff]  }
 0x231   :  { %4970 = vmatprep.subr.bf16.mxu0 %v6971_v19  ;;  %v7067_v19 = vld [vmem:[%s9285_s1 + $0x13b4] ss:$8 sps:$4 sm:$0xff]  }
 0x233   :  { %4541 = vmatpush1.bf16.msra.mxu1 %v6966_v20  ;;  %v7062_v20 = vld [vmem:[%s9285_s1 + $0x9b0] ss:$8 sps:$4 sm:$0xff]  }
 0x234   :  { %4971 = vmatpush1.bf16.msra.mxu0 %v6969_v21  ;;  %4542 = vmatprep.subr.bf16.mxu1 %v6974_v22  ;;  %v7065_v21 = vld [vmem:[%s9285_s1 + $0x13b0] ss:$8 sps:$4 sm:$0xff]   ;;  %v7070_v22 = vld [vmem:[%s9285_s1 + $0x9c4] ss:$8 sps:$4 sm:$0xff]  }
 0x235   :  { %4972 = vmatprep.subr.bf16.mxu0 %v6977_v23  ;;  %v7073_v23 = vld [vmem:[%s9285_s1 + $0x13c4] ss:$8 sps:$4 sm:$0xff]  }
 0x237   :  { %4543 = vmatpush1.bf16.msra.mxu1 %v6972_v24  ;;  %v7068_v24 = vld [vmem:[%s9285_s1 + $0x9c0] ss:$8 sps:$4 sm:$0xff]  }
 0x238   :  { %4973 = vmatpush1.bf16.msra.mxu0 %v6975_v25  ;;  %4544 = vmatprep.subr.bf16.mxu1 %v6980_v26  ;;  %v7071_v25 = vld [vmem:[%s9285_s1 + $0x13c0] ss:$8 sps:$4 sm:$0xff]   ;;  %v7076_v26 = vld [vmem:[%s9285_s1 + $0x9d4] ss:$8 sps:$4 sm:$0xff]  }
 0x239   :  { %4974 = vmatprep.subr.bf16.mxu0 %v6983_v27  ;;  %v7079_v27 = vld [vmem:[%s9285_s1 + $0x13d4] ss:$8 sps:$4 sm:$0xff]  }
 0x23b   :  { %4545 = vmatpush1.bf16.msra.mxu1 %v6978_v28  ;;  %v7074_v28 = vld [vmem:[%s9285_s1 + $0x9d0] ss:$8 sps:$4 sm:$0xff]  }
 0x23c   :  { %4975 = vmatpush1.bf16.msra.mxu0 %v6981_v29  ;;  %4546 = vmatprep.subr.bf16.mxu1 %v6986_v30  ;;  %v7077_v29 = vld [vmem:[%s9285_s1 + $0x13d0] ss:$8 sps:$4 sm:$0xff]   ;;  %v7082_v30 = vld [vmem:[%s9285_s1 + $0x9e4] ss:$8 sps:$4 sm:$0xff]  }
 0x23d   :  { %4976 = vmatprep.subr.bf16.mxu0 %v6989_v31  ;;  %v7085_v31 = vld [vmem:[%s9285_s1 + $0x13e4] ss:$8 sps:$4 sm:$0xff]  }
 0x23f   :  { %4547 = vmatpush1.bf16.msra.mxu1 %v6984_v32  ;;  %v7080_v32 = vld [vmem:[%s9285_s1 + $0x9e0] ss:$8 sps:$4 sm:$0xff]  }
 0x240   :  { %4977 = vmatpush1.bf16.msra.mxu0 %v6987_v33  ;;  %4559 = vmatprep.subr.bf16.mxu1 %v6995_v34  ;;  %v7083_v33 = vld [vmem:[%s9285_s1 + $0x13e0] ss:$8 sps:$4 sm:$0xff]   ;;  %v7088_v34 = vld [vmem:[%s9285_s1 + $0x9f4] ss:$8 sps:$4 sm:$0xff]  }
 0x241   :  { %4989 = vmatprep.subr.bf16.mxu0 %v7001_v35  ;;  %v7091_v35 = vld [vmem:[%s9285_s1 + $0x13f4] ss:$8 sps:$4 sm:$0xff]  }
 0x242   :  { %4549 = vmatmul.mubr.bf16.vlgmr.msra.gmra.mrb[0].mxu1 %v6990_v36  ;;  %v7086_v36 = vld [vmem:[%s9285_s1 + $0x9f0] ss:$8 sps:$4 sm:$0xff]  }
 0x243   :  { %4979 = vmatmul.mubr.bf16.vlgmr.msra.gmra.mrb[0].mxu0 %v6996_v37  ;;  %4560 = vmatpush1.bf16.msra.mxu1 %v6993_v38  ;;  %v7089_v37 = vld [vmem:[%s9285_s1 + $0x13f0] ss:$8 sps:$4 sm:$0xff]   ;;  %v7100_v38 = vld [vmem:[%s9285_s1 + $0x1404] ss:$8 sps:$4 sm:$0xff]  }
 0x244   :  { %4990 = vmatpush1.bf16.msra.mxu0 %v6999_v39  ;;  %4561 = vmatprep.subr.bf16.mxu1 %v7004_v40  ;;  %v7111_v39 = vld [vmem:[%s9287_s3 + $0x40] sm:$0xff]   ;;  %v7092_v40 = vld [vmem:[%s9286_s0 + $0x48] ss:$164 sps:$4 sm:$0xff]  }
 0x245   :  { %4991 = vmatprep.subr.bf16.mxu0 %v7007_v41  ;;  %4591 = vmatprep.mubr.bf16.mxu1 %v7094_v42  ;;  %v7095_v41 = vld [vmem:[%s9286_s0 + $0x98] ss:$164 sps:$4 sm:$0xff]   ;;  %v7098_v42 = vld [vmem:[%s9285_s1 + $0x1400] ss:$8 sps:$4 sm:$0xff]  }
 0x246   :  { %5021 = vmatprep.mubr.bf16.mxu0 %v7097_v43  ;;  %v7103_v43 = vld [vmem:[%s9285_s1 + $0x1414] ss:$8 sps:$4 sm:$0xff]  }
 0x247   :  { %4562 = vmatpush1.bf16.msra.mxu1 %v7002_v44  ;;  %v7112_v44 = vld [vmem:[%s9287_s3] sm:$0xff]  }
 0x248   :  { %4992 = vmatpush1.bf16.msra.mxu0 %v7005_v45  ;;  %4563 = vmatprep.subr.bf16.mxu1 %v7010_v46  ;;  %v7113_v45 = vld [vmem:[%s9287_s3 + $0x48] sm:$0xff]   ;;  %v7101_v46 = vld [vmem:[%s9285_s1 + $0x1410] ss:$8 sps:$4 sm:$0xff]  }
 0x249   :  { %4993 = vmatprep.subr.bf16.mxu0 %v7013_v47  ;;  %v7127_v47 = vmov 0  }
 0x24b   :  { %4564 = vmatpush1.bf16.msra.mxu1 %v7008_v48  ;;  %v7106_v48 = vld [vmem:[%s9285_s1 + $0x1424] ss:$8 sps:$4 sm:$0xff]  }
 0x24c   :  { %4994 = vmatpush1.bf16.msra.mxu0 %v7011_v49  ;;  %4565 = vmatprep.subr.bf16.mxu1 %v7016_v50  ;;  %v7104_v49 = vld [vmem:[%s9285_s1 + $0x1420] ss:$8 sps:$4 sm:$0xff]   ;;  %v7109_v50 = vld [vmem:[%s9285_s1 + $0x1434] ss:$8 sps:$4 sm:$0xff]  }
 0x24d   :  { %4995 = vmatprep.subr.bf16.mxu0 %v7019_v51  ;;  %v7107_v51 = vld [vmem:[%s9285_s1 + $0x1430] ss:$8 sps:$4 sm:$0xff]  }
 0x24f   :  { %4566 = vmatpush1.bf16.msra.mxu1 %v7014_v52  ;;  %v7110_v52 = vld [vmem:[%s9286_s0 + $0xa0] ss:$164 sps:$4 sm:$0xff]  }
 0x250   :  { %4996 = vmatpush1.bf16.msra.mxu0 %v7017_v53  ;;  %4567 = vmatprep.subr.bf16.mxu1 %v7022_v54  ;;  %v7114_v53 = vld [vmem:[%s9287_s3 + $0x8] sm:$0xff]   ;;  %v7115_v54 = vld [vmem:[%s9287_s3 + $0x50] sm:$0xff]  }
 0x251   :  { %4997 = vmatprep.subr.bf16.mxu0 %v7025_v55  ;;  %v7116_v55 = vld [vmem:[%s9287_s3 + $0x10] sm:$0xff]  }
 0x253   :  { %4568 = vmatpush1.bf16.msra.mxu1 %v7020_v56  ;;  %v7117_v56 = vld [vmem:[%s9287_s3 + $0x58] sm:$0xff]  }
 0x254   :  { %4998 = vmatpush1.bf16.msra.mxu0 %v7023_v57  ;;  %4569 = vmatprep.subr.bf16.mxu1 %v7028_v58  ;;  %v7118_v57 = vld [vmem:[%s9287_s3 + $0x18] sm:$0xff]   ;;  %v7119_v58 = vld [vmem:[%s9287_s3 + $0x60] sm:$0xff]  }
 0x255   :  { %4999 = vmatprep.subr.bf16.mxu0 %v7031_v59  ;;  %v7120_v59 = vld [vmem:[%s9287_s3 + $0x20] sm:$0xff]  }
 0x257   :  { %4570 = vmatpush1.bf16.msra.mxu1 %v7026_v60  ;;  %v7121_v60 = vld [vmem:[%s9287_s3 + $0x68] sm:$0xff]  }
 0x258   :  { %5000 = vmatpush1.bf16.msra.mxu0 %v7029_v61  ;;  %4571 = vmatprep.subr.bf16.mxu1 %v7034_v62  ;;  %v7122_v61 = vld [vmem:[%s9287_s3 + $0x28] sm:$0xff]   ;;  %v7123_v62 = vld [vmem:[%s9287_s3 + $0x70] sm:$0xff]  }
 0x259   :  { %5001 = vmatprep.subr.bf16.mxu0 %v7037_v63  ;;  %v7124_v63 = vld [vmem:[%s9287_s3 + $0x30] sm:$0xff]  }
 0x25b   :  { %4572 = vmatpush1.bf16.msra.mxu1 %v7032_v0  ;;  %v7125_v0 = vld [vmem:[%s9287_s3 + $0x78] sm:$0xff]  }
 0x25c   :  { %5002 = vmatpush1.bf16.msra.mxu0 %v7035_v1  ;;  %4573 = vmatprep.subr.bf16.mxu1 %v7040_v2  ;;  %v7126_v1 = vld [vmem:[%s9287_s3 + $0x38] sm:$0xff]   ;;  %v713_v2 = vlaneseq }
 0x25d   :  { %5003 = vmatprep.subr.bf16.mxu0 %v7043_v3 }
 0x25f   :  { %4574 = vmatpush1.bf16.msra.mxu1 %v7038_v4 }
 0x260   :  { %5004 = vmatpush1.bf16.msra.mxu0 %v7041_v5  ;;  %4575 = vmatprep.subr.bf16.mxu1 %v7046_v6  ;;  %v714_v6 = vshrl.u32 %v713_v2, 7 }
 0x261   :  { %5005 = vmatprep.subr.bf16.mxu0 %v7049_v7 }
 0x263   :  { %4576 = vmatpush1.bf16.msra.mxu1 %v7044_v8  ;;  %v715_v8 = vsub.s32 0, %v714_v6 }
 0x264   :  { %5006 = vmatpush1.bf16.msra.mxu0 %v7047_v9  ;;  %4577 = vmatprep.subr.bf16.mxu1 %v7052_v10  ;;  %v711_v9 = vld [vmem:[%s9288_s2] sm:$0x3]  ;;  %v719_v10 = vsub.s32 1, %v714_v6 }
 0x265   :  { %5007 = vmatprep.subr.bf16.mxu0 %v7055_v11  ;;  %v716_v11 = vrot.slane %v711_v9, %v715_v8 }
 0x267   :  { %4578 = vmatpush1.bf16.msra.mxu1 %v7050_v12  ;;  %v720_v12 = vrot.slane %v711_v9, %v719_v10 }
 0x268   :  { %5008 = vmatpush1.bf16.msra.mxu0 %v7053_v13  ;;  %4579 = vmatprep.subr.bf16.mxu1 %v7058_v14 }
 0x269   :  { %5009 = vmatprep.subr.bf16.mxu0 %v7061_v15 }
 0x26b   :  { %4580 = vmatpush1.bf16.msra.mxu1 %v7056_v16 }
 0x26c   :  { %5010 = vmatpush1.bf16.msra.mxu0 %v7059_v17  ;;  %4581 = vmatprep.subr.bf16.mxu1 %v7064_v18 }
 0x26d   :  { %5011 = vmatprep.subr.bf16.mxu0 %v7067_v19 }
 0x26f   :  { %4582 = vmatpush1.bf16.msra.mxu1 %v7062_v20 }
 0x270   :  { %5012 = vmatpush1.bf16.msra.mxu0 %v7065_v21  ;;  %4583 = vmatprep.subr.bf16.mxu1 %v7070_v22 }
 0x271   :  { %5013 = vmatprep.subr.bf16.mxu0 %v7073_v23 }
 0x273   :  { %4584 = vmatpush1.bf16.msra.mxu1 %v7068_v24 }
 0x274   :  { %5014 = vmatpush1.bf16.msra.mxu0 %v7071_v25  ;;  %4585 = vmatprep.subr.bf16.mxu1 %v7076_v26 }
 0x275   :  { %5015 = vmatprep.subr.bf16.mxu0 %v7079_v27 }
 0x277   :  { %4586 = vmatpush1.bf16.msra.mxu1 %v7074_v28 }
 0x278   :  { %5016 = vmatpush1.bf16.msra.mxu0 %v7077_v29  ;;  %4587 = vmatprep.subr.bf16.mxu1 %v7082_v30 }
 0x279   :  { %5017 = vmatprep.subr.bf16.mxu0 %v7085_v31 }
 0x27b   :  { %4588 = vmatpush1.bf16.msra.mxu1 %v7080_v32  ;;  %v5954_v32 = vld [vmem:[%s9289_s4] ss:$0 sm:$0xff] }
 0x27c   :  { %5018 = vmatpush1.bf16.msra.mxu0 %v7083_v33  ;;  %4589 = vmatprep.subr.bf16.mxu1 %v7088_v34 }
 0x27d   :  { %5019 = vmatprep.subr.bf16.mxu0 %v7091_v35 }
 0x27f   :  { %4590 = vmatpush1.bf16.msra.mxu1 %v7086_v36 }
 0x280   :  { %5020 = vmatpush1.bf16.msra.mxu0 %v7089_v37  ;;  %5971 = vmatprep.subr.bf16.mxu1 %v7111_v39 }
 0x281   :  { %5032 = vmatprep.subr.bf16.mxu0 %v7100_v38 }
 0x282   :  { %4592 = vmatmul.mubr.bf16.vlgmr.msra.gmra.mrb[0].mxu1 %v7092_v40 }
 0x283   :  { %5022 = vmatmul.mubr.bf16.vlgmr.msra.gmra.mrb[0].mxu0 %v7095_v41  ;;  %5972 = vmatpush3.bf16.msra.mxu1 %v7112_v44 }
 0x284   :  { %5033 = vmatpush1.bf16.msra.mxu0 %v7098_v42  ;;  %5064 = vmatprep.mubr.bf16.mxu0 %v7127_v47 }
 0x285   :  { %5034 = vmatprep.subr.bf16.mxu0 %v7103_v43  ;;  %5973 = vmatprep.subr.bf16.mxu1 %v7113_v45 }
 0x287   :  { %5974 = vmatpush3.bf16.msra.mxu1 %v7114_v53 }
 0x288   :  { %5035 = vmatpush1.bf16.msra.mxu0 %v7101_v46  ;;  %5975 = vmatprep.subr.bf16.mxu1 %v7115_v54 }
 0x289   :  { %5036 = vmatprep.subr.bf16.mxu0 %v7106_v48 }
 0x28b   :  { %5976 = vmatpush3.bf16.msra.mxu1 %v7116_v55 }
 0x28c   :  { %5037 = vmatpush1.bf16.msra.mxu0 %v7104_v49  ;;  %5977 = vmatprep.subr.bf16.mxu1 %v7117_v56 }
 0x28d   :  { %5038 = vmatprep.subr.bf16.mxu0 %v7109_v50 }
 0x28f   :  { %5978 = vmatpush3.bf16.msra.mxu1 %v7118_v57 }
 0x290   :  { %5039 = vmatpush1.bf16.msra.mxu0 %v7107_v51  ;;  %5979 = vmatprep.subr.bf16.mxu1 %v7119_v58 }
 0x293   :  { %5953 = vmatmul.mubr.msk.bf16.vlgmr.msra.gmra.mrb[0].mxu0 %vm4168_vm0, %v7110_v52  ;;  %5980 = vmatpush3.bf16.msra.mxu1 %v7120_v59 }
 0x294   :  { %5981 = vmatprep.subr.bf16.mxu1 %v7121_v60 }
 0x297   :  { %5982 = vmatpush3.bf16.msra.mxu1 %v7122_v61 }
 0x298   :  { %5983 = vmatprep.subr.bf16.mxu1 %v7123_v62 }
 0x29b   :  { %5984 = vmatpush3.bf16.msra.mxu1 %v7124_v63 }
 0x29c   :  { %5985 = vmatprep.subr.bf16.mxu1 %v7125_v0 }
 0x29f   :  { %5986 = vmatpush3.bf16.msra.mxu1 %v7126_v1 }
 0x355   :  { %v4593_v3 = vpop.f32.mrb[0].mxu1 }
 0x356   :  { %v4595_v4 = vpop.f32.mrb[1].mxu1  ;;  %v5993_v13 = vadd.f32 %v4593_v3, %v716_v11 }
 0x357   :  { %v4597_v5 = vpop.f32.mrb[2].mxu1  ;;  %v5995_v14 = vadd.f32 %v4595_v4, %v720_v12 }
 0x358   :  { %v4599_v7 = vpop.f32.mrb[3].mxu1  ;;  %v5997_v16 = vadd.f32 %v4597_v5, %v716_v11 }
 0x359   :  { %v5999_v19 = vadd.f32 %v4599_v7, %v720_v12 }
 0x366   :  { %v5066_v15 = vpop.f32.mrb[0].mxu0 }
 0x367   :  { %v5994_v17 = vadd.f32 %v5993_v13, %v5066_v15  ;;  %v5068_v18 = vpop.f32.mrb[1].mxu0 }
 0x368   :  { %v5996_v20 = vadd.f32 %v5995_v14, %v5068_v18  ;;  %v5070_v21 = vpop.f32.mrb[2].mxu0 }
 0x369   :  { %v5998_v22 = vadd.f32 %v5997_v16, %v5070_v21  ;;  %v5072_v23 = vpop.f32.mrb[3].mxu0  ;;  %v5075_v25 = vmax.f32 %v5994_v17, 0.0 }
 0x36a   :  { %v6000_v24 = vadd.f32 %v5999_v19, %v5072_v23  ;;  %v5076_v27 = vmax.f32 %v5996_v20, 0.0 }
 0x36b   :  { %v5077_v26 = vmax.f32 %v5998_v22, 0.0 }
 0x36c   :  { %v5078_v28 = vmax.f32 %v6000_v24, 0.0 }
 0x36d   :  { %v5079_v29 = vpack.c.bf16 %v5077_v26, %v5075_v25 }
 0x36e   :  { %v5080_v30 = vpack.c.bf16 %v5078_v28, %v5076_v27 }
 0x370   :  { %5248 = vmatprep.mubr.bf16.mxu1 %v5080_v30 }
 0x371   :  { %5249 = vmatmul.mubr.bf16.vlgmr.msra.gmra.mrb[4].mxu1 %v5079_v29 }
 0x444   :  { %v5987_v31 = vpop.f32.mrb[4].mxu1 }
 0x445   :  { %v5988_v33 = vpop.f32.mrb[5].mxu1 }
 0x446   :  { %v5989_v34 = vadd.f32 %v5988_v33, %v5987_v31  ;;  %v5990_v35 = vpop.f32.mrb[6].mxu1 }
 0x447   :  { %v5991_v36 = vpop.f32.mrb[7].mxu1 }
 0x448   :  { %v5251_v37 = vadd.f32 %v5989_v34, %v5954_v32  ;;  %v5992_v38 = vadd.f32 %v5991_v36, %v5990_v35 }
 0x44a   :  { %5258 = vst.msk [vmem:[%s9290_s5] sm:$0xff] %vm5257_vm1, %v5251_v37  ;;  %v5254_v39 = vadd.f32 %v5992_v38, %v5954_v32 }
 0x44c   :  { %5259 = vst.msk [vmem:[%s9290_s5 + $0x8] sm:$0xff] %vm5257_vm1, %v5254_v39 }

</bundles_post_ra>
